<compile_context>
chip_gen: v6e
topology: v6e:2x2x1
jax: 0.10.0
libtpu: 0.0.40
codegen_flags: <defaults>
</compile_context>

<pallas_src>
import functools

import jax
import jax.numpy as jnp
from jax import lax
from jax.experimental import pallas as pl
from jax.experimental.pallas import tpu as pltpu


def _round_up(x, m):
    return (x + m - 1) // m * m


def _vmem_capacity_bytes():
    try:
        return int(pltpu.get_tpu_info().vmem_capacity_bytes)
    except Exception:
        return 64 * 1024 * 1024          # conservative: works on v5e/v6e/v7x


# ---------------------------------------------------------------------------
# Wavefront kernel builder
# ---------------------------------------------------------------------------
def _make_wavefront_kernel(L, chunk, B_pad, H, LH, G, include_epilogue,
                           unroll, mm_dtype):
    """Fused LSTM stack (layer wavefront) + optional Linear+Sigmoid epilogue.

    Layouts (time-major flat: row = t*B_pad + b):
      x_ref    : (chunk*B_pad, D)          input chunk (mm_dtype)
      w_in_ref : (D, G)    layer-0 W_ih scattered into permuted [I|F|O|G] cols
      b_in_ref : (1, G)    all layers' biases (permuted cols), f32
      w_rec_ref: (LH, G)   block-diag W_hh + sub-diag W_ih (layers >= 1)
      w_out_ref: (LH, O_pad)  scaling weight in last-layer rows (epilogue only)
      out_ref  : (chunk*B_pad, O_pad) or (chunk*B_pad, H)
      scratch  : gx (chunk*B_pad, G), hbuf (chunk*B_pad, LH),
                 h_st / c_st (B_pad, LH)  -- carried across chunks
    """

    def kernel(*refs):
        if include_epilogue:
            (x_ref, w_in_ref, b_in_ref, w_rec_ref, w_out_ref, b_out_ref,
             out_ref, gx_ref, hbuf_ref, h_st, c_st) = refs
        else:
            (x_ref, w_in_ref, b_in_ref, w_rec_ref,
             out_ref, gx_ref, hbuf_ref, h_st, c_st) = refs

        # Zero the carried recurrent state on the first time-chunk only.
        @pl.when(pl.program_id(0) == 0)
        def _init():
            h_st[...] = jnp.zeros_like(h_st)
            c_st[...] = jnp.zeros_like(c_st)

        # Hoisted layer-0 input projection (+ every layer's bias) for the whole
        # chunk: one big MXU matmul instead of per-step work.
        gx_ref[...] = (
            jnp.dot(x_ref[...], w_in_ref[...],
                    preferred_element_type=jnp.float32)
            + b_in_ref[...])

        def row(t):
            start = t * B_pad
            if not isinstance(start, int):
                start = pl.multiple_of(start, B_pad)
            return pl.ds(start, B_pad)

        def wave_step(t0, t_out, lo_layer, hi_layer, write_hbuf):
            """One wavefront step; lo/hi_layer are static python ints."""
            h_prev = h_st[...]
            c_prev = c_st[...]
            gates = gx_ref[row(t0), :] + jnp.dot(
                h_prev.astype(mm_dtype), w_rec_ref[...],
                preferred_element_type=jnp.float32)
            # Single full-width sigmoid over [I|F|O]; tanh only over [G].
            sig = jax.nn.sigmoid(gates[:, 0:3 * LH])
            i_g = sig[:, 0:LH]
            f_g = sig[:, LH:2 * LH]
            o_g = sig[:, 2 * LH:3 * LH]
            g_g = jnp.tanh(gates[:, 3 * LH:4 * LH])
            c_new = f_g * c_prev + i_g * g_g
            h_new = o_g * jnp.tanh(c_new)
            if lo_layer == 0 and hi_layer == L:
                h_st[...] = h_new
                c_st[...] = c_new
            else:
                lo = lo_layer * H
                hi = hi_layer * H
                h_st[:, lo:hi] = h_new[:, lo:hi]
                c_st[:, lo:hi] = c_new[:, lo:hi]
            if write_hbuf:
                hbuf_ref[row(t_out), :] = h_new

        # Pipeline fill: wavefront steps 0 .. L-2 (static; layers 0..p active).
        for p in range(L - 1):
            wave_step(p, 0, 0, p + 1, write_hbuf=False)

        # Steady state: all layers active, no masking.
        def steady_body(p, carry):
            wave_step(p, p - (L - 1), 0, L, write_hbuf=True)
            return carry

        lax.fori_loop(L - 1, chunk, steady_body, 0, unroll=unroll)

        # Pipeline drain: deepest layers finish the last L-1 time steps.
        for p in range(chunk, chunk + L - 1):
            wave_step(chunk - 1, p - (L - 1), p - chunk + 1, L,
                      write_hbuf=True)

        if include_epilogue:
            # Fused scaling layer over the whole chunk; lane-dense output.
            z = jnp.dot(hbuf_ref[...].astype(mm_dtype), w_out_ref[...],
                        preferred_element_type=jnp.float32) + b_out_ref[...]
            out_ref[...] = jax.nn.sigmoid(z).astype(out_ref.dtype)
        else:
            # cmvn path: last layer's hidden states straight to the output.
            out_ref[...] = hbuf_ref[:, (L - 1) * H:L * H].astype(out_ref.dtype)

    return kernel


# ---------------------------------------------------------------------------
# pallas_call wrapper
# ---------------------------------------------------------------------------
def _lstm_stack(x_bt, lstm_params, scale_params, include_epilogue, use_bf16):
    """x_bt: (B, T, D) f32. Returns (B, T, O) (epilogue) or (B, T, H)."""
    B, T, D = x_bt.shape
    L = len(lstm_params)
    H = lstm_params[0][1].shape[0]       # w_hh is (H, 4H)
    LH = L * H
    G = 4 * LH
    mm_dtype = jnp.bfloat16 if use_bf16 else jnp.float32
    mm_bytes = 2 if use_bf16 else 4
    B_pad = _round_up(max(B, 1), 8)      # sublane-aligned batch

    # --- fused "big" weights, gate columns permuted to [I|F|O|G] -----------
    sec_of_gate = (0, 1, 3, 2)           # PyTorch i,f,g,o -> sections I,F,G,O
    w_in_big = jnp.zeros((D, G), jnp.float32)
    b_in_big = jnp.zeros((1, G), jnp.float32)
    w_rec_big = jnp.zeros((LH, G), jnp.float32)
    for l, (w_ih, w_hh, b) in enumerate(lstm_params):
        for q in range(4):
            src = slice(q * H, (q + 1) * H)
            s = sec_of_gate[q]
            dst = slice(s * LH + l * H, s * LH + (l + 1) * H)
            b_in_big = b_in_big.at[:, dst].set(b[:, src])
            w_rec_big = w_rec_big.at[l * H:(l + 1) * H, dst].set(w_hh[:, src])
            if l == 0:
                w_in_big = w_in_big.at[:, dst].set(w_ih[:, src])
            else:
                w_rec_big = w_rec_big.at[(l - 1) * H:l * H, dst].set(
                    w_ih[:, src])

    if include_epilogue:
        w_s, b_s = scale_params
        O = w_s.shape[1]
        O_out = _round_up(max(O, 128), 128)            # lane-dense output
        w_out_big = jnp.zeros((LH, O_out), jnp.float32)
        w_out_big = w_out_big.at[(L - 1) * H:, :O].set(w_s)
        b_out_big = jnp.zeros((1, O_out), jnp.float32).at[:, :O].set(b_s)
    else:
        O = H
        O_out = H

    # --- VMEM-aware chunk sizing + explicit scoped limit --------------------
    fixed = (2 * (D * G + LH * G) * mm_bytes + 2 * G * 4
             + 2 * B_pad * LH * 4)
    if include_epilogue:
        fixed += 2 * (LH * O_out * mm_bytes + O_out * 4)

    def est(c):
        per_step = (2 * B_pad * D * mm_bytes      # x block, double-buffered
                    + 2 * B_pad * O_out * 4       # out block, double-buffered
                    + B_pad * G * 4               # gx scratch
                    + B_pad * LH * 4)             # hbuf scratch
        return fixed + c * per_step

    vmem_cap = _vmem_capacity_bytes()
    budget = max(8 << 20, vmem_cap - (8 << 20))
    chunk = min(512, max(T, L))
    while chunk > L and est(chunk) > budget:
        chunk = max(L, chunk // 2)
    chunk = _round_up(max(chunk, L), 2)
    vmem_limit = int(min(vmem_cap, max(32 << 20, est(chunk) + (8 << 20))))

    t_pad = pl.cdiv(max(T, chunk), chunk) * chunk
    n_chunks = t_pad // chunk

    steady_len = chunk - (L - 1)
    if steady_len <= 16:
        unroll = True
    else:
        # Keep unroll * live-gate bytes well under the 256 KiB vreg file.
        unroll = max(1, min(8, (96 * 1024) // max(1, B_pad * G * 4)))

    # --- layout: time-major flat (row = t*B_pad + b), padded ----------------
    x = x_bt
    if B_pad != B:
        x = jnp.pad(x, ((0, B_pad - B), (0, 0), (0, 0)))
    x = jnp.transpose(x, (1, 0, 2))                    # (T, B_pad, D)
    if t_pad != T:
        x = jnp.pad(x, ((0, t_pad - T), (0, 0), (0, 0)))
    x_flat = x.reshape(t_pad * B_pad, D).astype(mm_dtype)

    const = lambda t: (0, 0)
    inputs = [x_flat, w_in_big.astype(mm_dtype), b_in_big,
              w_rec_big.astype(mm_dtype)]
    in_specs = [pl.BlockSpec((chunk * B_pad, D), lambda t: (t, 0)),
                pl.BlockSpec((D, G), const),
                pl.BlockSpec((1, G), const),
                pl.BlockSpec((LH, G), const)]
    if include_epilogue:
        inputs += [w_out_big.astype(mm_dtype), b_out_big]
        in_specs += [pl.BlockSpec((LH, O_out), const),
                     pl.BlockSpec((1, O_out), const)]

    kernel = _make_wavefront_kernel(L, chunk, B_pad, H, LH, G,
                                    include_epilogue, unroll, mm_dtype)

    out = pl.pallas_call(
        kernel,
        out_shape=jax.ShapeDtypeStruct((t_pad * B_pad, O_out), jnp.float32),
        grid_spec=pltpu.PrefetchScalarGridSpec(
            num_scalar_prefetch=0,
            grid=(n_chunks,),
            in_specs=in_specs,
            out_specs=pl.BlockSpec((chunk * B_pad, O_out), lambda t: (t, 0)),
            scratch_shapes=[
                pltpu.VMEM((chunk * B_pad, G), jnp.float32),   # hoisted gates
                pltpu.VMEM((chunk * B_pad, LH), jnp.float32),  # wavefront h
                pltpu.VMEM((B_pad, LH), jnp.float32),          # carried h
                pltpu.VMEM((B_pad, LH), jnp.float32),          # carried c
            ]),
        compiler_params=pltpu.CompilerParams(
            dimension_semantics=("arbitrary",),    # recurrence => sequential
            vmem_limit_bytes=vmem_limit),
    )(*inputs)

    out = out.reshape(t_pad, B_pad, O_out)[:T, :B, :O]
    return jnp.transpose(out, (1, 0, 2))               # (B, T, O)


@functools.partial(jax.jit, static_argnames=("cmvn", "use_bf16"))
def residual_forward(features, linears, params, cmvn=False, eps=1e-6,
                     use_bf16=False):
    """Pallas implementation of Residual.forward (unidirectional LSTM).

    features: (B, T, input_size) f32,  linears: (B, T, output_size) f32
    Returns (predicted, {'offset': offset}), both (B, T, output_size).
    """
    lstm_params = params["lstm"]
    scale = params["scale"]
    w_s, b_s = scale

    if cmvn:
        # Raw LSTM output needed to normalize over time BEFORE scaling layer.
        h = _lstm_stack(features, lstm_params, scale,
                        include_epilogue=False, use_bf16=use_bf16)  # (B,T,H)
        mean = jnp.mean(h, axis=1, keepdims=True)
        std = jnp.std(h, axis=1, keepdims=True, ddof=1)   # torch .std(): unbiased (NaN for T==1)
        h = (h - mean) / (std + eps)
        # TODO(synk): cmvn time-global normalization + scaling layer kept in plain JAX.
        offset = jax.nn.sigmoid(h @ w_s + b_s)
    else:
        offset = _lstm_stack(features, lstm_params, scale,
                             include_epilogue=True, use_bf16=use_bf16)

    predicted = linears * offset
    return predicted, {"offset": offset}


# ---------------------------------------------------------------------------
# Deterministic parameter init (mirrors Residual.init_weights)
# ---------------------------------------------------------------------------
def init_params(key, input_size, hidden_size, output_size, num_layers):
    glorot = jax.nn.initializers.glorot_uniform()
    orth = jax.nn.initializers.orthogonal()
    lstm_params = []
    d_in = input_size
    for _ in range(num_layers):
        key, k1, k2 = jax.random.split(key, 3)
        # PyTorch shapes: weight_ih (4H, d_in), weight_hh (4H, H); biases -> 0.
        w_ih = glorot(k1, (4 * hidden_size, d_in), jnp.float32).T        # (d_in, 4H)
        w_hh = orth(k2, (4 * hidden_size, hidden_size), jnp.float32).T   # (H, 4H)
        b = jnp.zeros((1, 4 * hidden_size), jnp.float32)                 # b_ih + b_hh
        lstm_params.append((w_ih, w_hh, b))
        d_in = hidden_size
    key, k3 = jax.random.split(key)
    w_scale = glorot(k3, (output_size, hidden_size), jnp.float32).T      # (H, O)
    b_scale = jnp.zeros((1, output_size), jnp.float32)
    return {"lstm": tuple(lstm_params), "scale": (w_scale, b_scale)}


# ---------------------------------------------------------------------------
# Pure-JAX reference (sanity check)
# ---------------------------------------------------------------------------
def _reference_forward(features, linears, params, cmvn=False, eps=1e-6):
    def lstm_ref(x_tm, w_ih, w_hh, b):
        _, B, _ = x_tm.shape
        H = w_hh.shape[0]

        def step(carry, x_t):
            h, c = carry
            gates = x_t @ w_ih + h @ w_hh + b
            i = jax.nn.sigmoid(gates[:, 0:H])
            f = jax.nn.sigmoid(gates[:, H:2 * H])
            g = jnp.tanh(gates[:, 2 * H:3 * H])
            o = jax.nn.sigmoid(gates[:, 3 * H:4 * H])
            c = f * c + i * g
            h = o * jnp.tanh(c)
            return (h, c), h

        init = (jnp.zeros((B, H)), jnp.zeros((B, H)))
        _, ys = lax.scan(step, init, x_tm)
        return ys

    x = jnp.transpose(features, (1, 0, 2))
    for (w_ih, w_hh, b) in params["lstm"]:
        x = lstm_ref(x, w_ih, w_hh, b)
    h = jnp.transpose(x, (1, 0, 2))
    if cmvn:
        mean = jnp.mean(h, axis=1, keepdims=True)
        std = jnp.std(h, axis=1, keepdims=True, ddof=1)
        h = (h - mean) / (std + eps)
    w_s, b_s = params["scale"]
    offset = jax.nn.sigmoid(h @ w_s + b_s)
    return linears * offset, offset


if __name__ == "__main__":
    # Small shapes consistent with the module's forward (batch_first LSTM).
    B, T = 2, 8
    input_size = hidden_size = output_size = 32
    num_layers = 3

    key = jax.random.PRNGKey(0)
    key, kf, kl, kp = jax.random.split(key, 4)
    features = jax.random.normal(kf, (B, T, input_size), jnp.float32)
    linears = jax.random.normal(kl, (B, T, output_size), jnp.float32)
    params = init_params(kp, input_size, hidden_size, output_size, num_layers)

    # 1) f32 path with fused scaling epilogue.
    predicted, aux = residual_forward(features, linears, params, cmvn=False)
    predicted = jax.block_until_ready(predicted)
    offset = jax.block_until_ready(aux["offset"])
    ref_pred, ref_off = _reference_forward(features, linears, params)
    assert jnp.allclose(predicted, ref_pred, atol=1e-4, rtol=1e-4)
    assert jnp.allclose(offset, ref_off, atol=1e-4, rtol=1e-4)

    # 2) cmvn path (kernel without epilogue; normalization in plain JAX).
    pred_c, _ = residual_forward(features, linears, params, cmvn=True)
    pred_c = jax.block_until_ready(pred_c)
    ref_pred_c, _ = _reference_forward(features, linears, params, cmvn=True)
    assert jnp.allclose(pred_c, ref_pred_c, atol=1e-4, rtol=1e-4)

    # 3) bf16 matmul-operand path (v6e/v7x); f32 accumulation, loose tolerance.
    pred_bf, _ = residual_forward(features, linears, params, cmvn=False,
                                  use_bf16=True)
    pred_bf = jax.block_until_ready(pred_bf)
    assert jnp.allclose(pred_bf, ref_pred, atol=1e-1, rtol=1e-1)

    print("KERNEL_OK")
</pallas_src>

<mosaic_0001>
module attributes {stable_mosaic.version = 11 : i64} {
  func.func @kernel(%arg0: i32, %arg1: memref<64x32xf32, #tpu.memory_space<vmem>>, %arg2: memref<32x384xf32, #tpu.memory_space<vmem>>, %arg3: memref<1x384xf32, #tpu.memory_space<vmem>>, %arg4: memref<96x384xf32, #tpu.memory_space<vmem>>, %arg5: memref<96x128xf32, #tpu.memory_space<vmem>>, %arg6: memref<1x128xf32, #tpu.memory_space<vmem>>, %arg7: memref<64x128xf32, #tpu.memory_space<vmem>>, %arg8: memref<64x384xf32, #tpu.memory_space<vmem>>, %arg9: memref<64x96xf32, #tpu.memory_space<vmem>>, %arg10: memref<8x96xf32, #tpu.memory_space<vmem>>, %arg11: memref<8x96xf32, #tpu.memory_space<vmem>>) attributes {dimension_semantics = [#tpu.dimension_semantics<arbitrary>], iteration_bounds = array<i64: 1>, scalar_prefetch = 0 : i64, scratch_operands = 4 : i64, tpu.core_type = #tpu.core_type<tc>, window_params = [{transform_indices = @transform_0, window_bounds = array<i64: 64, 32>}, {pipeline_mode = #tpu.pipeline_mode<synchronous>, transform_indices = @transform_1, window_bounds = array<i64: 32, 384>}, {pipeline_mode = #tpu.pipeline_mode<synchronous>, transform_indices = @transform_2, window_bounds = array<i64: 1, 384>}, {pipeline_mode = #tpu.pipeline_mode<synchronous>, transform_indices = @transform_3, window_bounds = array<i64: 96, 384>}, {pipeline_mode = #tpu.pipeline_mode<synchronous>, transform_indices = @transform_4, window_bounds = array<i64: 96, 128>}, {pipeline_mode = #tpu.pipeline_mode<synchronous>, transform_indices = @transform_5, window_bounds = array<i64: 1, 128>}, {transform_indices = @transform_6, window_bounds = array<i64: 64, 128>}]} {
    %c0_i32 = arith.constant 0 : i32
    %0 = arith.cmpi eq, %arg0, %c0_i32 : i32
    %1 = arith.extui %0 : i1 to i32
    %c0_i32_0 = arith.constant 0 : i32
    %2 = arith.cmpi ne, %1, %c0_i32_0 : i32
    scf.if %2 {
      %cst_175 = arith.constant 0.000000e+00 : f32
      %320 = vector.broadcast %cst_175 : f32 to vector<8x96xf32>
      %c0_176 = arith.constant 0 : index
      %c0_177 = arith.constant 0 : index
      %321 = vector.load %arg10[%c0_176, %c0_177] : memref<8x96xf32, #tpu.memory_space<vmem>>, vector<8x96xf32>
      tpu.vector_store %arg10[%c0_176, %c0_177], %320 {strides = array<i32>} : memref<8x96xf32, #tpu.memory_space<vmem>>, vector<8x96xf32>,
      %cst_178 = arith.constant 0.000000e+00 : f32
      %322 = vector.broadcast %cst_178 : f32 to vector<8x96xf32>
      %c0_179 = arith.constant 0 : index
      %c0_180 = arith.constant 0 : index
      %323 = vector.load %arg11[%c0_179, %c0_180] : memref<8x96xf32, #tpu.memory_space<vmem>>, vector<8x96xf32>
      tpu.vector_store %arg11[%c0_179, %c0_180], %322 {strides = array<i32>} : memref<8x96xf32, #tpu.memory_space<vmem>>, vector<8x96xf32>,
    } else {
    }
    %c0 = arith.constant 0 : index
    %c0_1 = arith.constant 0 : index
    %3 = vector.load %arg1[%c0, %c0_1] : memref<64x32xf32, #tpu.memory_space<vmem>>, vector<64x32xf32>
    %c0_2 = arith.constant 0 : index
    %c0_3 = arith.constant 0 : index
    %4 = vector.load %arg2[%c0_2, %c0_3] : memref<32x384xf32, #tpu.memory_space<vmem>>, vector<32x384xf32>
    %cst = arith.constant dense<0.000000e+00> : vector<64x384xf32>
    %5 = tpu.matmul %3, %4, %cst {dimension_numbers = #tpu.dot_dimension_numbers<[1], [0], [0], [1], [0, 0, 1, 1], [], []>} : vector<64x32xf32>, vector<32x384xf32>, vector<64x384xf32> -> vector<64x384xf32>
    %c0_4 = arith.constant 0 : index
    %c0_5 = arith.constant 0 : index
    %6 = vector.load %arg3[%c0_4, %c0_5] : memref<1x384xf32, #tpu.memory_space<vmem>>, vector<1x384xf32>
    %7 = vector.broadcast %6 : vector<1x384xf32> to vector<64x384xf32>
    %8 = arith.addf %5, %7 : vector<64x384xf32>
    %c0_6 = arith.constant 0 : index
    %c0_7 = arith.constant 0 : index
    %9 = vector.load %arg8[%c0_6, %c0_7] : memref<64x384xf32, #tpu.memory_space<vmem>>, vector<64x384xf32>
    tpu.vector_store %arg8[%c0_6, %c0_7], %8 {strides = array<i32>} : memref<64x384xf32, #tpu.memory_space<vmem>>, vector<64x384xf32>,
    %c0_8 = arith.constant 0 : index
    %c0_9 = arith.constant 0 : index
    %10 = vector.load %arg10[%c0_8, %c0_9] : memref<8x96xf32, #tpu.memory_space<vmem>>, vector<8x96xf32>
    %c0_10 = arith.constant 0 : index
    %c0_11 = arith.constant 0 : index
    %11 = vector.load %arg11[%c0_10, %c0_11] : memref<8x96xf32, #tpu.memory_space<vmem>>, vector<8x96xf32>
    %c0_12 = arith.constant 0 : index
    %c0_13 = arith.constant 0 : index
    %12 = vector.load %arg8[%c0_12, %c0_13] : memref<64x384xf32, #tpu.memory_space<vmem>>, vector<8x384xf32>
    %c0_14 = arith.constant 0 : index
    %c0_15 = arith.constant 0 : index
    %13 = vector.load %arg4[%c0_14, %c0_15] : memref<96x384xf32, #tpu.memory_space<vmem>>, vector<96x384xf32>
    %cst_16 = arith.constant dense<0.000000e+00> : vector<8x384xf32>
    %14 = tpu.matmul %10, %13, %cst_16 {dimension_numbers = #tpu.dot_dimension_numbers<[1], [0], [0], [1], [0, 0, 1, 1], [], []>} : vector<8x96xf32>, vector<96x384xf32>, vector<8x384xf32> -> vector<8x384xf32>
    %15 = arith.addf %12, %14 : vector<8x384xf32>
    %16 = vector.extract_strided_slice %15 {offsets = [0, 0], sizes = [8, 288], strides = [1, 1]} : vector<8x384xf32> to vector<8x288xf32>
    %17 = arith.negf %16 : vector<8x288xf32>
    %18 = math.exp %17 : vector<8x288xf32>
    %cst_17 = arith.constant 1.000000e+00 : f32
    %19 = vector.broadcast %cst_17 : f32 to vector<8x288xf32>
    %20 = arith.addf %19, %18 : vector<8x288xf32>
    %21 = arith.divf %19, %20 : vector<8x288xf32>
    %22 = vector.extract_strided_slice %21 {offsets = [0, 0], sizes = [8, 96], strides = [1, 1]} : vector<8x288xf32> to vector<8x96xf32>
    %23 = vector.extract_strided_slice %21 {offsets = [0, 96], sizes = [8, 96], strides = [1, 1]} : vector<8x288xf32> to vector<8x96xf32>
    %24 = vector.extract_strided_slice %21 {offsets = [0, 192], sizes = [8, 96], strides = [1, 1]} : vector<8x288xf32> to vector<8x96xf32>
    %25 = vector.extract_strided_slice %15 {offsets = [0, 288], sizes = [8, 96], strides = [1, 1]} : vector<8x384xf32> to vector<8x96xf32>
    %26 = math.tanh %25 : vector<8x96xf32>
    %27 = arith.mulf %23, %11 : vector<8x96xf32>
    %28 = arith.mulf %22, %26 : vector<8x96xf32>
    %29 = arith.addf %27, %28 : vector<8x96xf32>
    %30 = math.tanh %29 : vector<8x96xf32>
    %31 = arith.mulf %24, %30 : vector<8x96xf32>
    %32 = vector.extract_strided_slice %31 {offsets = [0, 0], sizes = [8, 32], strides = [1, 1]} : vector<8x96xf32> to vector<8x32xf32>
    %c0_18 = arith.constant 0 : index
    %c0_19 = arith.constant 0 : index
    %33 = vector.load %arg10[%c0_18, %c0_19] : memref<8x96xf32, #tpu.memory_space<vmem>>, vector<8x32xf32>
    tpu.vector_store %arg10[%c0_18, %c0_19], %32 {strides = array<i32>} : memref<8x96xf32, #tpu.memory_space<vmem>>, vector<8x32xf32>,
    %34 = vector.extract_strided_slice %29 {offsets = [0, 0], sizes = [8, 32], strides = [1, 1]} : vector<8x96xf32> to vector<8x32xf32>
    %c0_20 = arith.constant 0 : index
    %c0_21 = arith.constant 0 : index
    %35 = vector.load %arg11[%c0_20, %c0_21] : memref<8x96xf32, #tpu.memory_space<vmem>>, vector<8x32xf32>
    tpu.vector_store %arg11[%c0_20, %c0_21], %34 {strides = array<i32>} : memref<8x96xf32, #tpu.memory_space<vmem>>, vector<8x32xf32>,
    %c0_22 = arith.constant 0 : index
    %c0_23 = arith.constant 0 : index
    %36 = vector.load %arg10[%c0_22, %c0_23] : memref<8x96xf32, #tpu.memory_space<vmem>>, vector<8x96xf32>
    %c0_24 = arith.constant 0 : index
    %c0_25 = arith.constant 0 : index
    %37 = vector.load %arg11[%c0_24, %c0_25] : memref<8x96xf32, #tpu.memory_space<vmem>>, vector<8x96xf32>
    %c8 = arith.constant 8 : index
    %c0_26 = arith.constant 0 : index
    %38 = vector.load %arg8[%c8, %c0_26] : memref<64x384xf32, #tpu.memory_space<vmem>>, vector<8x384xf32>
    %c0_27 = arith.constant 0 : index
    %c0_28 = arith.constant 0 : index
    %39 = vector.load %arg4[%c0_27, %c0_28] : memref<96x384xf32, #tpu.memory_space<vmem>>, vector<96x384xf32>
    %cst_29 = arith.constant dense<0.000000e+00> : vector<8x384xf32>
    %40 = tpu.matmul %36, %39, %cst_29 {dimension_numbers = #tpu.dot_dimension_numbers<[1], [0], [0], [1], [0, 0, 1, 1], [], []>} : vector<8x96xf32>, vector<96x384xf32>, vector<8x384xf32> -> vector<8x384xf32>
    %41 = arith.addf %38, %40 : vector<8x384xf32>
    %42 = vector.extract_strided_slice %41 {offsets = [0, 0], sizes = [8, 288], strides = [1, 1]} : vector<8x384xf32> to vector<8x288xf32>
    %43 = arith.negf %42 : vector<8x288xf32>
    %44 = math.exp %43 : vector<8x288xf32>
    %cst_30 = arith.constant 1.000000e+00 : f32
    %45 = vector.broadcast %cst_30 : f32 to vector<8x288xf32>
    %46 = arith.addf %45, %44 : vector<8x288xf32>
    %47 = arith.divf %45, %46 : vector<8x288xf32>
    %48 = vector.extract_strided_slice %47 {offsets = [0, 0], sizes = [8, 96], strides = [1, 1]} : vector<8x288xf32> to vector<8x96xf32>
    %49 = vector.extract_strided_slice %47 {offsets = [0, 96], sizes = [8, 96], strides = [1, 1]} : vector<8x288xf32> to vector<8x96xf32>
    %50 = vector.extract_strided_slice %47 {offsets = [0, 192], sizes = [8, 96], strides = [1, 1]} : vector<8x288xf32> to vector<8x96xf32>
    %51 = vector.extract_strided_slice %41 {offsets = [0, 288], sizes = [8, 96], strides = [1, 1]} : vector<8x384xf32> to vector<8x96xf32>
    %52 = math.tanh %51 : vector<8x96xf32>
    %53 = arith.mulf %49, %37 : vector<8x96xf32>
    %54 = arith.mulf %48, %52 : vector<8x96xf32>
    %55 = arith.addf %53, %54 : vector<8x96xf32>
    %56 = math.tanh %55 : vector<8x96xf32>
    %57 = arith.mulf %50, %56 : vector<8x96xf32>
    %58 = vector.extract_strided_slice %57 {offsets = [0, 0], sizes = [8, 64], strides = [1, 1]} : vector<8x96xf32> to vector<8x64xf32>
    %c0_31 = arith.constant 0 : index
    %c0_32 = arith.constant 0 : index
    %59 = vector.load %arg10[%c0_31, %c0_32] : memref<8x96xf32, #tpu.memory_space<vmem>>, vector<8x64xf32>
    tpu.vector_store %arg10[%c0_31, %c0_32], %58 {strides = array<i32>} : memref<8x96xf32, #tpu.memory_space<vmem>>, vector<8x64xf32>,
    %60 = vector.extract_strided_slice %55 {offsets = [0, 0], sizes = [8, 64], strides = [1, 1]} : vector<8x96xf32> to vector<8x64xf32>
    %c0_33 = arith.constant 0 : index
    %c0_34 = arith.constant 0 : index
    %61 = vector.load %arg11[%c0_33, %c0_34] : memref<8x96xf32, #tpu.memory_space<vmem>>, vector<8x64xf32>
    tpu.vector_store %arg11[%c0_33, %c0_34], %60 {strides = array<i32>} : memref<8x96xf32, #tpu.memory_space<vmem>>, vector<8x64xf32>,
    %c2_i32 = arith.constant 2 : i32
    %c2_i32_35 = arith.constant 2 : i32
    %62 = arith.subi %c2_i32, %c2_i32_35 : i32
    %c0_36 = arith.constant 0 : index
    %c0_37 = arith.constant 0 : index
    %63 = vector.load %arg10[%c0_36, %c0_37] : memref<8x96xf32, #tpu.memory_space<vmem>>, vector<8x96xf32>
    %c0_38 = arith.constant 0 : index
    %c0_39 = arith.constant 0 : index
    %64 = vector.load %arg11[%c0_38, %c0_39] : memref<8x96xf32, #tpu.memory_space<vmem>>, vector<8x96xf32>
    %c8_i32 = arith.constant 8 : i32
    %65 = arith.muli %c2_i32, %c8_i32 : i32
    %66 = tpu.assume_multiple %65, 8 : i32
    %67 = arith.index_cast %66 : i32 to index
    %c0_40 = arith.constant 0 : index
    %68 = vector.load %arg8[%67, %c0_40] : memref<64x384xf32, #tpu.memory_space<vmem>>, vector<8x384xf32>
    %c0_41 = arith.constant 0 : index
    %c0_42 = arith.constant 0 : index
    %69 = vector.load %arg4[%c0_41, %c0_42] : memref<96x384xf32, #tpu.memory_space<vmem>>, vector<96x384xf32>
    %cst_43 = arith.constant dense<0.000000e+00> : vector<8x384xf32>
    %70 = tpu.matmul %63, %69, %cst_43 {dimension_numbers = #tpu.dot_dimension_numbers<[1], [0], [0], [1], [0, 0, 1, 1], [], []>} : vector<8x96xf32>, vector<96x384xf32>, vector<8x384xf32> -> vector<8x384xf32>
    %71 = arith.addf %68, %70 : vector<8x384xf32>
    %72 = vector.extract_strided_slice %71 {offsets = [0, 0], sizes = [8, 288], strides = [1, 1]} : vector<8x384xf32> to vector<8x288xf32>
    %73 = arith.negf %72 : vector<8x288xf32>
    %74 = math.exp %73 : vector<8x288xf32>
    %cst_44 = arith.constant 1.000000e+00 : f32
    %75 = vector.broadcast %cst_44 : f32 to vector<8x288xf32>
    %76 = arith.addf %75, %74 : vector<8x288xf32>
    %77 = arith.divf %75, %76 : vector<8x288xf32>
    %78 = vector.extract_strided_slice %77 {offsets = [0, 0], sizes = [8, 96], strides = [1, 1]} : vector<8x288xf32> to vector<8x96xf32>
    %79 = vector.extract_strided_slice %77 {offsets = [0, 96], sizes = [8, 96], strides = [1, 1]} : vector<8x288xf32> to vector<8x96xf32>
    %80 = vector.extract_strided_slice %77 {offsets = [0, 192], sizes = [8, 96], strides = [1, 1]} : vector<8x288xf32> to vector<8x96xf32>
    %81 = vector.extract_strided_slice %71 {offsets = [0, 288], sizes = [8, 96], strides = [1, 1]} : vector<8x384xf32> to vector<8x96xf32>
    %82 = math.tanh %81 : vector<8x96xf32>
    %83 = arith.mulf %79, %64 : vector<8x96xf32>
    %84 = arith.mulf %78, %82 : vector<8x96xf32>
    %85 = arith.addf %83, %84 : vector<8x96xf32>
    %86 = math.tanh %85 : vector<8x96xf32>
    %87 = arith.mulf %80, %86 : vector<8x96xf32>
    %c0_45 = arith.constant 0 : index
    %c0_46 = arith.constant 0 : index
    %88 = vector.load %arg10[%c0_45, %c0_46] : memref<8x96xf32, #tpu.memory_space<vmem>>, vector<8x96xf32>
    tpu.vector_store %arg10[%c0_45, %c0_46], %87 {strides = array<i32>} : memref<8x96xf32, #tpu.memory_space<vmem>>, vector<8x96xf32>,
    %c0_47 = arith.constant 0 : index
    %c0_48 = arith.constant 0 : index
    %89 = vector.load %arg11[%c0_47, %c0_48] : memref<8x96xf32, #tpu.memory_space<vmem>>, vector<8x96xf32>
    tpu.vector_store %arg11[%c0_47, %c0_48], %85 {strides = array<i32>} : memref<8x96xf32, #tpu.memory_space<vmem>>, vector<8x96xf32>,
    %c8_i32_49 = arith.constant 8 : i32
    %90 = arith.muli %62, %c8_i32_49 : i32
    %91 = tpu.assume_multiple %90, 8 : i32
    %92 = arith.index_cast %91 : i32 to index
    %c0_50 = arith.constant 0 : index
    %93 = vector.load %arg9[%92, %c0_50] : memref<64x96xf32, #tpu.memory_space<vmem>>, vector<8x96xf32>
    tpu.vector_store %arg9[%92, %c0_50], %87 {strides = array<i32>} : memref<64x96xf32, #tpu.memory_space<vmem>>, vector<8x96xf32>,
    %c3_i32 = arith.constant 3 : i32
    %c2_i32_51 = arith.constant 2 : i32
    %94 = arith.subi %c3_i32, %c2_i32_51 : i32
    %c0_52 = arith.constant 0 : index
    %c0_53 = arith.constant 0 : index
    %95 = vector.load %arg10[%c0_52, %c0_53] : memref<8x96xf32, #tpu.memory_space<vmem>>, vector<8x96xf32>
    %c0_54 = arith.constant 0 : index
    %c0_55 = arith.constant 0 : index
    %96 = vector.load %arg11[%c0_54, %c0_55] : memref<8x96xf32, #tpu.memory_space<vmem>>, vector<8x96xf32>
    %c8_i32_56 = arith.constant 8 : i32
    %97 = arith.muli %c3_i32, %c8_i32_56 : i32
    %98 = tpu.assume_multiple %97, 8 : i32
    %99 = arith.index_cast %98 : i32 to index
    %c0_57 = arith.constant 0 : index
    %100 = vector.load %arg8[%99, %c0_57] : memref<64x384xf32, #tpu.memory_space<vmem>>, vector<8x384xf32>
    %c0_58 = arith.constant 0 : index
    %c0_59 = arith.constant 0 : index
    %101 = vector.load %arg4[%c0_58, %c0_59] : memref<96x384xf32, #tpu.memory_space<vmem>>, vector<96x384xf32>
    %cst_60 = arith.constant dense<0.000000e+00> : vector<8x384xf32>
    %102 = tpu.matmul %95, %101, %cst_60 {dimension_numbers = #tpu.dot_dimension_numbers<[1], [0], [0], [1], [0, 0, 1, 1], [], []>} : vector<8x96xf32>, vector<96x384xf32>, vector<8x384xf32> -> vector<8x384xf32>
    %103 = arith.addf %100, %102 : vector<8x384xf32>
    %104 = vector.extract_strided_slice %103 {offsets = [0, 0], sizes = [8, 288], strides = [1, 1]} : vector<8x384xf32> to vector<8x288xf32>
    %105 = arith.negf %104 : vector<8x288xf32>
    %106 = math.exp %105 : vector<8x288xf32>
    %cst_61 = arith.constant 1.000000e+00 : f32
    %107 = vector.broadcast %cst_61 : f32 to vector<8x288xf32>
    %108 = arith.addf %107, %106 : vector<8x288xf32>
    %109 = arith.divf %107, %108 : vector<8x288xf32>
    %110 = vector.extract_strided_slice %109 {offsets = [0, 0], sizes = [8, 96], strides = [1, 1]} : vector<8x288xf32> to vector<8x96xf32>
    %111 = vector.extract_strided_slice %109 {offsets = [0, 96], sizes = [8, 96], strides = [1, 1]} : vector<8x288xf32> to vector<8x96xf32>
    %112 = vector.extract_strided_slice %109 {offsets = [0, 192], sizes = [8, 96], strides = [1, 1]} : vector<8x288xf32> to vector<8x96xf32>
    %113 = vector.extract_strided_slice %103 {offsets = [0, 288], sizes = [8, 96], strides = [1, 1]} : vector<8x384xf32> to vector<8x96xf32>
    %114 = math.tanh %113 : vector<8x96xf32>
    %115 = arith.mulf %111, %96 : vector<8x96xf32>
    %116 = arith.mulf %110, %114 : vector<8x96xf32>
    %117 = arith.addf %115, %116 : vector<8x96xf32>
    %118 = math.tanh %117 : vector<8x96xf32>
    %119 = arith.mulf %112, %118 : vector<8x96xf32>
    %c0_62 = arith.constant 0 : index
    %c0_63 = arith.constant 0 : index
    %120 = vector.load %arg10[%c0_62, %c0_63] : memref<8x96xf32, #tpu.memory_space<vmem>>, vector<8x96xf32>
    tpu.vector_store %arg10[%c0_62, %c0_63], %119 {strides = array<i32>} : memref<8x96xf32, #tpu.memory_space<vmem>>, vector<8x96xf32>,
    %c0_64 = arith.constant 0 : index
    %c0_65 = arith.constant 0 : index
    %121 = vector.load %arg11[%c0_64, %c0_65] : memref<8x96xf32, #tpu.memory_space<vmem>>, vector<8x96xf32>
    tpu.vector_store %arg11[%c0_64, %c0_65], %117 {strides = array<i32>} : memref<8x96xf32, #tpu.memory_space<vmem>>, vector<8x96xf32>,
    %c8_i32_66 = arith.constant 8 : i32
    %122 = arith.muli %94, %c8_i32_66 : i32
    %123 = tpu.assume_multiple %122, 8 : i32
    %124 = arith.index_cast %123 : i32 to index
    %c0_67 = arith.constant 0 : index
    %125 = vector.load %arg9[%124, %c0_67] : memref<64x96xf32, #tpu.memory_space<vmem>>, vector<8x96xf32>
    tpu.vector_store %arg9[%124, %c0_67], %119 {strides = array<i32>} : memref<64x96xf32, #tpu.memory_space<vmem>>, vector<8x96xf32>,
    %c4_i32 = arith.constant 4 : i32
    %c2_i32_68 = arith.constant 2 : i32
    %126 = arith.subi %c4_i32, %c2_i32_68 : i32
    %c0_69 = arith.constant 0 : index
    %c0_70 = arith.constant 0 : index
    %127 = vector.load %arg10[%c0_69, %c0_70] : memref<8x96xf32, #tpu.memory_space<vmem>>, vector<8x96xf32>
    %c0_71 = arith.constant 0 : index
    %c0_72 = arith.constant 0 : index
    %128 = vector.load %arg11[%c0_71, %c0_72] : memref<8x96xf32, #tpu.memory_space<vmem>>, vector<8x96xf32>
    %c8_i32_73 = arith.constant 8 : i32
    %129 = arith.muli %c4_i32, %c8_i32_73 : i32
    %130 = tpu.assume_multiple %129, 8 : i32
    %131 = arith.index_cast %130 : i32 to index
    %c0_74 = arith.constant 0 : index
    %132 = vector.load %arg8[%131, %c0_74] : memref<64x384xf32, #tpu.memory_space<vmem>>, vector<8x384xf32>
    %c0_75 = arith.constant 0 : index
    %c0_76 = arith.constant 0 : index
    %133 = vector.load %arg4[%c0_75, %c0_76] : memref<96x384xf32, #tpu.memory_space<vmem>>, vector<96x384xf32>
    %cst_77 = arith.constant dense<0.000000e+00> : vector<8x384xf32>
    %134 = tpu.matmul %127, %133, %cst_77 {dimension_numbers = #tpu.dot_dimension_numbers<[1], [0], [0], [1], [0, 0, 1, 1], [], []>} : vector<8x96xf32>, vector<96x384xf32>, vector<8x384xf32> -> vector<8x384xf32>
    %135 = arith.addf %132, %134 : vector<8x384xf32>
    %136 = vector.extract_strided_slice %135 {offsets = [0, 0], sizes = [8, 288], strides = [1, 1]} : vector<8x384xf32> to vector<8x288xf32>
    %137 = arith.negf %136 : vector<8x288xf32>
    %138 = math.exp %137 : vector<8x288xf32>
    %cst_78 = arith.constant 1.000000e+00 : f32
    %139 = vector.broadcast %cst_78 : f32 to vector<8x288xf32>
    %140 = arith.addf %139, %138 : vector<8x288xf32>
    %141 = arith.divf %139, %140 : vector<8x288xf32>
    %142 = vector.extract_strided_slice %141 {offsets = [0, 0], sizes = [8, 96], strides = [1, 1]} : vector<8x288xf32> to vector<8x96xf32>
    %143 = vector.extract_strided_slice %141 {offsets = [0, 96], sizes = [8, 96], strides = [1, 1]} : vector<8x288xf32> to vector<8x96xf32>
    %144 = vector.extract_strided_slice %141 {offsets = [0, 192], sizes = [8, 96], strides = [1, 1]} : vector<8x288xf32> to vector<8x96xf32>
    %145 = vector.extract_strided_slice %135 {offsets = [0, 288], sizes = [8, 96], strides = [1, 1]} : vector<8x384xf32> to vector<8x96xf32>
    %146 = math.tanh %145 : vector<8x96xf32>
    %147 = arith.mulf %143, %128 : vector<8x96xf32>
    %148 = arith.mulf %142, %146 : vector<8x96xf32>
    %149 = arith.addf %147, %148 : vector<8x96xf32>
    %150 = math.tanh %149 : vector<8x96xf32>
    %151 = arith.mulf %144, %150 : vector<8x96xf32>
    %c0_79 = arith.constant 0 : index
    %c0_80 = arith.constant 0 : index
    %152 = vector.load %arg10[%c0_79, %c0_80] : memref<8x96xf32, #tpu.memory_space<vmem>>, vector<8x96xf32>
    tpu.vector_store %arg10[%c0_79, %c0_80], %151 {strides = array<i32>} : memref<8x96xf32, #tpu.memory_space<vmem>>, vector<8x96xf32>,
    %c0_81 = arith.constant 0 : index
    %c0_82 = arith.constant 0 : index
    %153 = vector.load %arg11[%c0_81, %c0_82] : memref<8x96xf32, #tpu.memory_space<vmem>>, vector<8x96xf32>
    tpu.vector_store %arg11[%c0_81, %c0_82], %149 {strides = array<i32>} : memref<8x96xf32, #tpu.memory_space<vmem>>, vector<8x96xf32>,
    %c8_i32_83 = arith.constant 8 : i32
    %154 = arith.muli %126, %c8_i32_83 : i32
    %155 = tpu.assume_multiple %154, 8 : i32
    %156 = arith.index_cast %155 : i32 to index
    %c0_84 = arith.constant 0 : index
    %157 = vector.load %arg9[%156, %c0_84] : memref<64x96xf32, #tpu.memory_space<vmem>>, vector<8x96xf32>
    tpu.vector_store %arg9[%156, %c0_84], %151 {strides = array<i32>} : memref<64x96xf32, #tpu.memory_space<vmem>>, vector<8x96xf32>,
    %c5_i32 = arith.constant 5 : i32
    %c2_i32_85 = arith.constant 2 : i32
    %158 = arith.subi %c5_i32, %c2_i32_85 : i32
    %c0_86 = arith.constant 0 : index
    %c0_87 = arith.constant 0 : index
    %159 = vector.load %arg10[%c0_86, %c0_87] : memref<8x96xf32, #tpu.memory_space<vmem>>, vector<8x96xf32>
    %c0_88 = arith.constant 0 : index
    %c0_89 = arith.constant 0 : index
    %160 = vector.load %arg11[%c0_88, %c0_89] : memref<8x96xf32, #tpu.memory_space<vmem>>, vector<8x96xf32>
    %c8_i32_90 = arith.constant 8 : i32
    %161 = arith.muli %c5_i32, %c8_i32_90 : i32
    %162 = tpu.assume_multiple %161, 8 : i32
    %163 = arith.index_cast %162 : i32 to index
    %c0_91 = arith.constant 0 : index
    %164 = vector.load %arg8[%163, %c0_91] : memref<64x384xf32, #tpu.memory_space<vmem>>, vector<8x384xf32>
    %c0_92 = arith.constant 0 : index
    %c0_93 = arith.constant 0 : index
    %165 = vector.load %arg4[%c0_92, %c0_93] : memref<96x384xf32, #tpu.memory_space<vmem>>, vector<96x384xf32>
    %cst_94 = arith.constant dense<0.000000e+00> : vector<8x384xf32>
    %166 = tpu.matmul %159, %165, %cst_94 {dimension_numbers = #tpu.dot_dimension_numbers<[1], [0], [0], [1], [0, 0, 1, 1], [], []>} : vector<8x96xf32>, vector<96x384xf32>, vector<8x384xf32> -> vector<8x384xf32>
    %167 = arith.addf %164, %166 : vector<8x384xf32>
    %168 = vector.extract_strided_slice %167 {offsets = [0, 0], sizes = [8, 288], strides = [1, 1]} : vector<8x384xf32> to vector<8x288xf32>
    %169 = arith.negf %168 : vector<8x288xf32>
    %170 = math.exp %169 : vector<8x288xf32>
    %cst_95 = arith.constant 1.000000e+00 : f32
    %171 = vector.broadcast %cst_95 : f32 to vector<8x288xf32>
    %172 = arith.addf %171, %170 : vector<8x288xf32>
    %173 = arith.divf %171, %172 : vector<8x288xf32>
    %174 = vector.extract_strided_slice %173 {offsets = [0, 0], sizes = [8, 96], strides = [1, 1]} : vector<8x288xf32> to vector<8x96xf32>
    %175 = vector.extract_strided_slice %173 {offsets = [0, 96], sizes = [8, 96], strides = [1, 1]} : vector<8x288xf32> to vector<8x96xf32>
    %176 = vector.extract_strided_slice %173 {offsets = [0, 192], sizes = [8, 96], strides = [1, 1]} : vector<8x288xf32> to vector<8x96xf32>
    %177 = vector.extract_strided_slice %167 {offsets = [0, 288], sizes = [8, 96], strides = [1, 1]} : vector<8x384xf32> to vector<8x96xf32>
    %178 = math.tanh %177 : vector<8x96xf32>
    %179 = arith.mulf %175, %160 : vector<8x96xf32>
    %180 = arith.mulf %174, %178 : vector<8x96xf32>
    %181 = arith.addf %179, %180 : vector<8x96xf32>
    %182 = math.tanh %181 : vector<8x96xf32>
    %183 = arith.mulf %176, %182 : vector<8x96xf32>
    %c0_96 = arith.constant 0 : index
    %c0_97 = arith.constant 0 : index
    %184 = vector.load %arg10[%c0_96, %c0_97] : memref<8x96xf32, #tpu.memory_space<vmem>>, vector<8x96xf32>
    tpu.vector_store %arg10[%c0_96, %c0_97], %183 {strides = array<i32>} : memref<8x96xf32, #tpu.memory_space<vmem>>, vector<8x96xf32>,
    %c0_98 = arith.constant 0 : index
    %c0_99 = arith.constant 0 : index
    %185 = vector.load %arg11[%c0_98, %c0_99] : memref<8x96xf32, #tpu.memory_space<vmem>>, vector<8x96xf32>
    tpu.vector_store %arg11[%c0_98, %c0_99], %181 {strides = array<i32>} : memref<8x96xf32, #tpu.memory_space<vmem>>, vector<8x96xf32>,
    %c8_i32_100 = arith.constant 8 : i32
    %186 = arith.muli %158, %c8_i32_100 : i32
    %187 = tpu.assume_multiple %186, 8 : i32
    %188 = arith.index_cast %187 : i32 to index
    %c0_101 = arith.constant 0 : index
    %189 = vector.load %arg9[%188, %c0_101] : memref<64x96xf32, #tpu.memory_space<vmem>>, vector<8x96xf32>
    tpu.vector_store %arg9[%188, %c0_101], %183 {strides = array<i32>} : memref<64x96xf32, #tpu.memory_space<vmem>>, vector<8x96xf32>,
    %c6_i32 = arith.constant 6 : i32
    %c2_i32_102 = arith.constant 2 : i32
    %190 = arith.subi %c6_i32, %c2_i32_102 : i32
    %c0_103 = arith.constant 0 : index
    %c0_104 = arith.constant 0 : index
    %191 = vector.load %arg10[%c0_103, %c0_104] : memref<8x96xf32, #tpu.memory_space<vmem>>, vector<8x96xf32>
    %c0_105 = arith.constant 0 : index
    %c0_106 = arith.constant 0 : index
    %192 = vector.load %arg11[%c0_105, %c0_106] : memref<8x96xf32, #tpu.memory_space<vmem>>, vector<8x96xf32>
    %c8_i32_107 = arith.constant 8 : i32
    %193 = arith.muli %c6_i32, %c8_i32_107 : i32
    %194 = tpu.assume_multiple %193, 8 : i32
    %195 = arith.index_cast %194 : i32 to index
    %c0_108 = arith.constant 0 : index
    %196 = vector.load %arg8[%195, %c0_108] : memref<64x384xf32, #tpu.memory_space<vmem>>, vector<8x384xf32>
    %c0_109 = arith.constant 0 : index
    %c0_110 = arith.constant 0 : index
    %197 = vector.load %arg4[%c0_109, %c0_110] : memref<96x384xf32, #tpu.memory_space<vmem>>, vector<96x384xf32>
    %cst_111 = arith.constant dense<0.000000e+00> : vector<8x384xf32>
    %198 = tpu.matmul %191, %197, %cst_111 {dimension_numbers = #tpu.dot_dimension_numbers<[1], [0], [0], [1], [0, 0, 1, 1], [], []>} : vector<8x96xf32>, vector<96x384xf32>, vector<8x384xf32> -> vector<8x384xf32>
    %199 = arith.addf %196, %198 : vector<8x384xf32>
    %200 = vector.extract_strided_slice %199 {offsets = [0, 0], sizes = [8, 288], strides = [1, 1]} : vector<8x384xf32> to vector<8x288xf32>
    %201 = arith.negf %200 : vector<8x288xf32>
    %202 = math.exp %201 : vector<8x288xf32>
    %cst_112 = arith.constant 1.000000e+00 : f32
    %203 = vector.broadcast %cst_112 : f32 to vector<8x288xf32>
    %204 = arith.addf %203, %202 : vector<8x288xf32>
    %205 = arith.divf %203, %204 : vector<8x288xf32>
    %206 = vector.extract_strided_slice %205 {offsets = [0, 0], sizes = [8, 96], strides = [1, 1]} : vector<8x288xf32> to vector<8x96xf32>
    %207 = vector.extract_strided_slice %205 {offsets = [0, 96], sizes = [8, 96], strides = [1, 1]} : vector<8x288xf32> to vector<8x96xf32>
    %208 = vector.extract_strided_slice %205 {offsets = [0, 192], sizes = [8, 96], strides = [1, 1]} : vector<8x288xf32> to vector<8x96xf32>
    %209 = vector.extract_strided_slice %199 {offsets = [0, 288], sizes = [8, 96], strides = [1, 1]} : vector<8x384xf32> to vector<8x96xf32>
    %210 = math.tanh %209 : vector<8x96xf32>
    %211 = arith.mulf %207, %192 : vector<8x96xf32>
    %212 = arith.mulf %206, %210 : vector<8x96xf32>
    %213 = arith.addf %211, %212 : vector<8x96xf32>
    %214 = math.tanh %213 : vector<8x96xf32>
    %215 = arith.mulf %208, %214 : vector<8x96xf32>
    %c0_113 = arith.constant 0 : index
    %c0_114 = arith.constant 0 : index
    %216 = vector.load %arg10[%c0_113, %c0_114] : memref<8x96xf32, #tpu.memory_space<vmem>>, vector<8x96xf32>
    tpu.vector_store %arg10[%c0_113, %c0_114], %215 {strides = array<i32>} : memref<8x96xf32, #tpu.memory_space<vmem>>, vector<8x96xf32>,
    %c0_115 = arith.constant 0 : index
    %c0_116 = arith.constant 0 : index
    %217 = vector.load %arg11[%c0_115, %c0_116] : memref<8x96xf32, #tpu.memory_space<vmem>>, vector<8x96xf32>
    tpu.vector_store %arg11[%c0_115, %c0_116], %213 {strides = array<i32>} : memref<8x96xf32, #tpu.memory_space<vmem>>, vector<8x96xf32>,
    %c8_i32_117 = arith.constant 8 : i32
    %218 = arith.muli %190, %c8_i32_117 : i32
    %219 = tpu.assume_multiple %218, 8 : i32
    %220 = arith.index_cast %219 : i32 to index
    %c0_118 = arith.constant 0 : index
    %221 = vector.load %arg9[%220, %c0_118] : memref<64x96xf32, #tpu.memory_space<vmem>>, vector<8x96xf32>
    tpu.vector_store %arg9[%220, %c0_118], %215 {strides = array<i32>} : memref<64x96xf32, #tpu.memory_space<vmem>>, vector<8x96xf32>,
    %c7_i32 = arith.constant 7 : i32
    %c2_i32_119 = arith.constant 2 : i32
    %222 = arith.subi %c7_i32, %c2_i32_119 : i32
    %c0_120 = arith.constant 0 : index
    %c0_121 = arith.constant 0 : index
    %223 = vector.load %arg10[%c0_120, %c0_121] : memref<8x96xf32, #tpu.memory_space<vmem>>, vector<8x96xf32>
    %c0_122 = arith.constant 0 : index
    %c0_123 = arith.constant 0 : index
    %224 = vector.load %arg11[%c0_122, %c0_123] : memref<8x96xf32, #tpu.memory_space<vmem>>, vector<8x96xf32>
    %c8_i32_124 = arith.constant 8 : i32
    %225 = arith.muli %c7_i32, %c8_i32_124 : i32
    %226 = tpu.assume_multiple %225, 8 : i32
    %227 = arith.index_cast %226 : i32 to index
    %c0_125 = arith.constant 0 : index
    %228 = vector.load %arg8[%227, %c0_125] : memref<64x384xf32, #tpu.memory_space<vmem>>, vector<8x384xf32>
    %c0_126 = arith.constant 0 : index
    %c0_127 = arith.constant 0 : index
    %229 = vector.load %arg4[%c0_126, %c0_127] : memref<96x384xf32, #tpu.memory_space<vmem>>, vector<96x384xf32>
    %cst_128 = arith.constant dense<0.000000e+00> : vector<8x384xf32>
    %230 = tpu.matmul %223, %229, %cst_128 {dimension_numbers = #tpu.dot_dimension_numbers<[1], [0], [0], [1], [0, 0, 1, 1], [], []>} : vector<8x96xf32>, vector<96x384xf32>, vector<8x384xf32> -> vector<8x384xf32>
    %231 = arith.addf %228, %230 : vector<8x384xf32>
    %232 = vector.extract_strided_slice %231 {offsets = [0, 0], sizes = [8, 288], strides = [1, 1]} : vector<8x384xf32> to vector<8x288xf32>
    %233 = arith.negf %232 : vector<8x288xf32>
    %234 = math.exp %233 : vector<8x288xf32>
    %cst_129 = arith.constant 1.000000e+00 : f32
    %235 = vector.broadcast %cst_129 : f32 to vector<8x288xf32>
    %236 = arith.addf %235, %234 : vector<8x288xf32>
    %237 = arith.divf %235, %236 : vector<8x288xf32>
    %238 = vector.extract_strided_slice %237 {offsets = [0, 0], sizes = [8, 96], strides = [1, 1]} : vector<8x288xf32> to vector<8x96xf32>
    %239 = vector.extract_strided_slice %237 {offsets = [0, 96], sizes = [8, 96], strides = [1, 1]} : vector<8x288xf32> to vector<8x96xf32>
    %240 = vector.extract_strided_slice %237 {offsets = [0, 192], sizes = [8, 96], strides = [1, 1]} : vector<8x288xf32> to vector<8x96xf32>
    %241 = vector.extract_strided_slice %231 {offsets = [0, 288], sizes = [8, 96], strides = [1, 1]} : vector<8x384xf32> to vector<8x96xf32>
    %242 = math.tanh %241 : vector<8x96xf32>
    %243 = arith.mulf %239, %224 : vector<8x96xf32>
    %244 = arith.mulf %238, %242 : vector<8x96xf32>
    %245 = arith.addf %243, %244 : vector<8x96xf32>
    %246 = math.tanh %245 : vector<8x96xf32>
    %247 = arith.mulf %240, %246 : vector<8x96xf32>
    %c0_130 = arith.constant 0 : index
    %c0_131 = arith.constant 0 : index
    %248 = vector.load %arg10[%c0_130, %c0_131] : memref<8x96xf32, #tpu.memory_space<vmem>>, vector<8x96xf32>
    tpu.vector_store %arg10[%c0_130, %c0_131], %247 {strides = array<i32>} : memref<8x96xf32, #tpu.memory_space<vmem>>, vector<8x96xf32>,
    %c0_132 = arith.constant 0 : index
    %c0_133 = arith.constant 0 : index
    %249 = vector.load %arg11[%c0_132, %c0_133] : memref<8x96xf32, #tpu.memory_space<vmem>>, vector<8x96xf32>
    tpu.vector_store %arg11[%c0_132, %c0_133], %245 {strides = array<i32>} : memref<8x96xf32, #tpu.memory_space<vmem>>, vector<8x96xf32>,
    %c8_i32_134 = arith.constant 8 : i32
    %250 = arith.muli %222, %c8_i32_134 : i32
    %251 = tpu.assume_multiple %250, 8 : i32
    %252 = arith.index_cast %251 : i32 to index
    %c0_135 = arith.constant 0 : index
    %253 = vector.load %arg9[%252, %c0_135] : memref<64x96xf32, #tpu.memory_space<vmem>>, vector<8x96xf32>
    tpu.vector_store %arg9[%252, %c0_135], %247 {strides = array<i32>} : memref<64x96xf32, #tpu.memory_space<vmem>>, vector<8x96xf32>,
    %c6_i32_136 = arith.constant 6 : i32
    %c0_137 = arith.constant 0 : index
    %c0_138 = arith.constant 0 : index
    %254 = vector.load %arg10[%c0_137, %c0_138] : memref<8x96xf32, #tpu.memory_space<vmem>>, vector<8x96xf32>
    %c0_139 = arith.constant 0 : index
    %c0_140 = arith.constant 0 : index
    %255 = vector.load %arg11[%c0_139, %c0_140] : memref<8x96xf32, #tpu.memory_space<vmem>>, vector<8x96xf32>
    %c56 = arith.constant 56 : index
    %c0_141 = arith.constant 0 : index
    %256 = vector.load %arg8[%c56, %c0_141] : memref<64x384xf32, #tpu.memory_space<vmem>>, vector<8x384xf32>
    %c0_142 = arith.constant 0 : index
    %c0_143 = arith.constant 0 : index
    %257 = vector.load %arg4[%c0_142, %c0_143] : memref<96x384xf32, #tpu.memory_space<vmem>>, vector<96x384xf32>
    %cst_144 = arith.constant dense<0.000000e+00> : vector<8x384xf32>
    %258 = tpu.matmul %254, %257, %cst_144 {dimension_numbers = #tpu.dot_dimension_numbers<[1], [0], [0], [1], [0, 0, 1, 1], [], []>} : vector<8x96xf32>, vector<96x384xf32>, vector<8x384xf32> -> vector<8x384xf32>
    %259 = arith.addf %256, %258 : vector<8x384xf32>
    %260 = vector.extract_strided_slice %259 {offsets = [0, 0], sizes = [8, 288], strides = [1, 1]} : vector<8x384xf32> to vector<8x288xf32>
    %261 = arith.negf %260 : vector<8x288xf32>
    %262 = math.exp %261 : vector<8x288xf32>
    %cst_145 = arith.constant 1.000000e+00 : f32
    %263 = vector.broadcast %cst_145 : f32 to vector<8x288xf32>
    %264 = arith.addf %263, %262 : vector<8x288xf32>
    %265 = arith.divf %263, %264 : vector<8x288xf32>
    %266 = vector.extract_strided_slice %265 {offsets = [0, 0], sizes = [8, 96], strides = [1, 1]} : vector<8x288xf32> to vector<8x96xf32>
    %267 = vector.extract_strided_slice %265 {offsets = [0, 96], sizes = [8, 96], strides = [1, 1]} : vector<8x288xf32> to vector<8x96xf32>
    %268 = vector.extract_strided_slice %265 {offsets = [0, 192], sizes = [8, 96], strides = [1, 1]} : vector<8x288xf32> to vector<8x96xf32>
    %269 = vector.extract_strided_slice %259 {offsets = [0, 288], sizes = [8, 96], strides = [1, 1]} : vector<8x384xf32> to vector<8x96xf32>
    %270 = math.tanh %269 : vector<8x96xf32>
    %271 = arith.mulf %267, %255 : vector<8x96xf32>
    %272 = arith.mulf %266, %270 : vector<8x96xf32>
    %273 = arith.addf %271, %272 : vector<8x96xf32>
    %274 = math.tanh %273 : vector<8x96xf32>
    %275 = arith.mulf %268, %274 : vector<8x96xf32>
    %276 = vector.extract_strided_slice %275 {offsets = [0, 32], sizes = [8, 64], strides = [1, 1]} : vector<8x96xf32> to vector<8x64xf32>
    %c0_146 = arith.constant 0 : index
    %c32 = arith.constant 32 : index
    %277 = vector.load %arg10[%c0_146, %c32] : memref<8x96xf32, #tpu.memory_space<vmem>>, vector<8x64xf32>
    tpu.vector_store %arg10[%c0_146, %c32], %276 {strides = array<i32>} : memref<8x96xf32, #tpu.memory_space<vmem>>, vector<8x64xf32>,
    %278 = vector.extract_strided_slice %273 {offsets = [0, 32], sizes = [8, 64], strides = [1, 1]} : vector<8x96xf32> to vector<8x64xf32>
    %c0_147 = arith.constant 0 : index
    %c32_148 = arith.constant 32 : index
    %279 = vector.load %arg11[%c0_147, %c32_148] : memref<8x96xf32, #tpu.memory_space<vmem>>, vector<8x64xf32>
    tpu.vector_store %arg11[%c0_147, %c32_148], %278 {strides = array<i32>} : memref<8x96xf32, #tpu.memory_space<vmem>>, vector<8x64xf32>,
    %c48 = arith.constant 48 : index
    %c0_149 = arith.constant 0 : index
    %280 = vector.load %arg9[%c48, %c0_149] : memref<64x96xf32, #tpu.memory_space<vmem>>, vector<8x96xf32>
    tpu.vector_store %arg9[%c48, %c0_149], %275 {strides = array<i32>} : memref<64x96xf32, #tpu.memory_space<vmem>>, vector<8x96xf32>,
    %c0_150 = arith.constant 0 : index
    %c0_151 = arith.constant 0 : index
    %281 = vector.load %arg10[%c0_150, %c0_151] : memref<8x96xf32, #tpu.memory_space<vmem>>, vector<8x96xf32>
    %c0_152 = arith.constant 0 : index
    %c0_153 = arith.constant 0 : index
    %282 = vector.load %arg11[%c0_152, %c0_153] : memref<8x96xf32, #tpu.memory_space<vmem>>, vector<8x96xf32>
    %c56_154 = arith.constant 56 : index
    %c0_155 = arith.constant 0 : index
    %283 = vector.load %arg8[%c56_154, %c0_155] : memref<64x384xf32, #tpu.memory_space<vmem>>, vector<8x384xf32>
    %c0_156 = arith.constant 0 : index
    %c0_157 = arith.constant 0 : index
    %284 = vector.load %arg4[%c0_156, %c0_157] : memref<96x384xf32, #tpu.memory_space<vmem>>, vector<96x384xf32>
    %cst_158 = arith.constant dense<0.000000e+00> : vector<8x384xf32>
    %285 = tpu.matmul %281, %284, %cst_158 {dimension_numbers = #tpu.dot_dimension_numbers<[1], [0], [0], [1], [0, 0, 1, 1], [], []>} : vector<8x96xf32>, vector<96x384xf32>, vector<8x384xf32> -> vector<8x384xf32>
    %286 = arith.addf %283, %285 : vector<8x384xf32>
    %287 = vector.extract_strided_slice %286 {offsets = [0, 0], sizes = [8, 288], strides = [1, 1]} : vector<8x384xf32> to vector<8x288xf32>
    %288 = arith.negf %287 : vector<8x288xf32>
    %289 = math.exp %288 : vector<8x288xf32>
    %cst_159 = arith.constant 1.000000e+00 : f32
    %290 = vector.broadcast %cst_159 : f32 to vector<8x288xf32>
    %291 = arith.addf %290, %289 : vector<8x288xf32>
    %292 = arith.divf %290, %291 : vector<8x288xf32>
    %293 = vector.extract_strided_slice %292 {offsets = [0, 0], sizes = [8, 96], strides = [1, 1]} : vector<8x288xf32> to vector<8x96xf32>
    %294 = vector.extract_strided_slice %292 {offsets = [0, 96], sizes = [8, 96], strides = [1, 1]} : vector<8x288xf32> to vector<8x96xf32>
    %295 = vector.extract_strided_slice %292 {offsets = [0, 192], sizes = [8, 96], strides = [1, 1]} : vector<8x288xf32> to vector<8x96xf32>
    %296 = vector.extract_strided_slice %286 {offsets = [0, 288], sizes = [8, 96], strides = [1, 1]} : vector<8x384xf32> to vector<8x96xf32>
    %297 = math.tanh %296 : vector<8x96xf32>
    %298 = arith.mulf %294, %282 : vector<8x96xf32>
    %299 = arith.mulf %293, %297 : vector<8x96xf32>
    %300 = arith.addf %298, %299 : vector<8x96xf32>
    %301 = math.tanh %300 : vector<8x96xf32>
    %302 = arith.mulf %295, %301 : vector<8x96xf32>
    %303 = vector.extract_strided_slice %302 {offsets = [0, 64], sizes = [8, 32], strides = [1, 1]} : vector<8x96xf32> to vector<8x32xf32>
    %c0_160 = arith.constant 0 : index
    %c64 = arith.constant 64 : index
    %304 = vector.load %arg10[%c0_160, %c64] : memref<8x96xf32, #tpu.memory_space<vmem>>, vector<8x32xf32>
    tpu.vector_store %arg10[%c0_160, %c64], %303 {strides = array<i32>} : memref<8x96xf32, #tpu.memory_space<vmem>>, vector<8x32xf32>,
    %305 = vector.extract_strided_slice %300 {offsets = [0, 64], sizes = [8, 32], strides = [1, 1]} : vector<8x96xf32> to vector<8x32xf32>
    %c0_161 = arith.constant 0 : index
    %c64_162 = arith.constant 64 : index
    %306 = vector.load %arg11[%c0_161, %c64_162] : memref<8x96xf32, #tpu.memory_space<vmem>>, vector<8x32xf32>
    tpu.vector_store %arg11[%c0_161, %c64_162], %305 {strides = array<i32>} : memref<8x96xf32, #tpu.memory_space<vmem>>, vector<8x32xf32>,
    %c56_163 = arith.constant 56 : index
    %c0_164 = arith.constant 0 : index
    %307 = vector.load %arg9[%c56_163, %c0_164] : memref<64x96xf32, #tpu.memory_space<vmem>>, vector<8x96xf32>
    tpu.vector_store %arg9[%c56_163, %c0_164], %302 {strides = array<i32>} : memref<64x96xf32, #tpu.memory_space<vmem>>, vector<8x96xf32>,
    %c0_165 = arith.constant 0 : index
    %c0_166 = arith.constant 0 : index
    %308 = vector.load %arg9[%c0_165, %c0_166] : memref<64x96xf32, #tpu.memory_space<vmem>>, vector<64x96xf32>
    %c0_167 = arith.constant 0 : index
    %c0_168 = arith.constant 0 : index
    %309 = vector.load %arg5[%c0_167, %c0_168] : memref<96x128xf32, #tpu.memory_space<vmem>>, vector<96x128xf32>
    %cst_169 = arith.constant dense<0.000000e+00> : vector<64x128xf32>
    %310 = tpu.matmul %308, %309, %cst_169 {dimension_numbers = #tpu.dot_dimension_numbers<[1], [0], [0], [1], [0, 0, 1, 1], [], []>} : vector<64x96xf32>, vector<96x128xf32>, vector<64x128xf32> -> vector<64x128xf32>
    %c0_170 = arith.constant 0 : index
    %c0_171 = arith.constant 0 : index
    %311 = vector.load %arg6[%c0_170, %c0_171] : memref<1x128xf32, #tpu.memory_space<vmem>>, vector<1x128xf32>
    %312 = vector.broadcast %311 : vector<1x128xf32> to vector<64x128xf32>
    %313 = arith.addf %310, %312 : vector<64x128xf32>
    %314 = arith.negf %313 : vector<64x128xf32>
    %315 = math.exp %314 : vector<64x128xf32>
    %cst_172 = arith.constant 1.000000e+00 : f32
    %316 = vector.broadcast %cst_172 : f32 to vector<64x128xf32>
    %317 = arith.addf %316, %315 : vector<64x128xf32>
    %318 = arith.divf %316, %317 : vector<64x128xf32>
    %c0_173 = arith.constant 0 : index
    %c0_174 = arith.constant 0 : index
    %319 = vector.load %arg7[%c0_173, %c0_174] : memref<64x128xf32, #tpu.memory_space<vmem>>, vector<64x128xf32>
    tpu.vector_store %arg7[%c0_173, %c0_174], %318 {strides = array<i32>} : memref<64x128xf32, #tpu.memory_space<vmem>>, vector<64x128xf32>,
    return
  }
  func.func @transform_0(%arg0: i32) -> (i32, i32) {
    %c0_i32 = arith.constant 0 : i32
    %c0_i32_0 = arith.constant 0 : i32
    return %arg0, %c0_i32 : i32, i32
  }
  func.func @transform_1(%arg0: i32) -> (i32, i32) {
    %c0_i32 = arith.constant 0 : i32
    %c0_i32_0 = arith.constant 0 : i32
    %c0_i32_1 = arith.constant 0 : i32
    return %c0_i32, %c0_i32_0 : i32, i32
  }
  func.func @transform_2(%arg0: i32) -> (i32, i32) {
    %c0_i32 = arith.constant 0 : i32
    %c0_i32_0 = arith.constant 0 : i32
    %c0_i32_1 = arith.constant 0 : i32
    return %c0_i32, %c0_i32_0 : i32, i32
  }
  func.func @transform_3(%arg0: i32) -> (i32, i32) {
    %c0_i32 = arith.constant 0 : i32
    %c0_i32_0 = arith.constant 0 : i32
    %c0_i32_1 = arith.constant 0 : i32
    return %c0_i32, %c0_i32_0 : i32, i32
  }
  func.func @transform_4(%arg0: i32) -> (i32, i32) {
    %c0_i32 = arith.constant 0 : i32
    %c0_i32_0 = arith.constant 0 : i32
    %c0_i32_1 = arith.constant 0 : i32
    return %c0_i32, %c0_i32_0 : i32, i32
  }
  func.func @transform_5(%arg0: i32) -> (i32, i32) {
    %c0_i32 = arith.constant 0 : i32
    %c0_i32_0 = arith.constant 0 : i32
    %c0_i32_1 = arith.constant 0 : i32
    return %c0_i32, %c0_i32_0 : i32, i32
  }
  func.func @transform_6(%arg0: i32) -> (i32, i32) {
    %c0_i32 = arith.constant 0 : i32
    %c0_i32_0 = arith.constant 0 : i32
    return %arg0, %c0_i32 : i32, i32
  }
}

</mosaic_0001>

<bundles_post_ra>
// kernel: residual_forward.1
= control target key start
LH: loop header
LB: loop body
LE: loop exit
PB: predicated region body
PF: predicated region fallthrough
CT: control target
= control target key end

     0   :  { %vm27_vm0 = vcmask 785408   ;;  %v5444_v3 = vmov 0.0   ;;  %vm67_vm1 = vcmask 261120   ;;  %vm3885_vm2 = vmmov 0   ;;  %s3887_s12 = smov 32   ;;  %s3888_s13 = smov 64   ;;  %s5437_s1 = inlined_call_operand.vmem [shape: f32[32,384], index: 1, kind: input, shape index: {}]   ;;  %s5438_s3 = inlined_call_operand.vmem [shape: f32[96,384], index: 3, kind: input, shape index: {}]   ;;  %s5439_s0 = inlined_call_operand.vmem [shape: f32[64,32], index: 0, kind: input, shape index: {}]   ;;  %s5440_s2 = inlined_call_operand.vmem [shape: f32[1,384], index: 2, kind: input, shape index: {}]   ;;  %s5441_s4 = inlined_call_operand.vmem [shape: f32[96,128], index: 4, kind: input, shape index: {}]   ;;  %s5442_s5 = inlined_call_operand.vmem [shape: f32[1,128], index: 5, kind: input, shape index: {}]   ;;  %s5443_s6 = inlined_call_operand.vmem [shape: f32[64,128], index: 6, kind: output, shape index: {}]  }
   0x1   :  { %v48_v0 = vld [vmem:[%s5437_s1 + $0x50] sm:$0xff]  ;;  %v47_v2 = vld [vmem:[%s5437_s1 + $0x48] sm:$0xff]  ;;  %156 = vmatprep.mubr.f32.mxu0 %v5444_v3  ;;  %443 = vmatprep.mubr.f32.mxu1 %v5444_v3  ;;  %28 = vst.msk [vmem:[#allocation4] sm:$0xff] %vm27_vm0, %v5444_v3  ;;  %29 = vst.msk [vmem:[#allocation5] sm:$0xff] %vm27_vm0, %v5444_v3  ;;  %v52_v58 = vlaneseq  ;;  %vm807_vm3 = vcmask 523264   ;;  %vm2622_vm4 = vcmask 785664  }
   0x2   :  { %v3930_v1 = vld [vmem:[%s5438_s3 + $0x110] sm:$0xff]  ;;  %116 = vmatprep.subr.mxu0 %v48_v0  ;;  %v3945_v4 = vld [vmem:[%s5438_s3 + $0x108] sm:$0xff]  ;;  %v45_v5 = vld [vmem:[%s5437_s1 + $0x38] sm:$0xff]  ;;  %vm2871_vm5 = vcmask 785920  }
   0x3   :  { %387 = vmatprep.subr.mxu1 %v3930_v1  ;;  %v3953_v6 = vld [vmem:[%s5438_s3 + $0xf8] sm:$0xff]  ;;  %117 = vmatpush1.msra.mxu0 %v47_v2  ;;  %v44_v7 = vld [vmem:[%s5437_s1 + $0x30] sm:$0xff]  ;;  %v42_v9 = vld [vmem:[%s5437_s1 + $0x20] sm:$0xff]  ;;  %v53_v59 = vshrl.u32 %v52_v58, 7 }
   0x4   :  { %388 = vmatpush1.msra.mxu1 %v3945_v4  ;;  %v3962_v8 = vld [vmem:[%s5438_s3 + $0xf0] sm:$0xff]  ;;  %118 = vmatprep.subr.mxu0 %v45_v5  ;;  %v3971_v10 = vld [vmem:[%s5438_s3 + $0xe0] sm:$0xff]  ;;  %v41_v11 = vld [vmem:[%s5437_s1 + $0x18] sm:$0xff] }
   0x5   :  { %389 = vmatprep.subr.mxu1 %v3953_v6  ;;  %v3979_v12 = vld [vmem:[%s5438_s3 + $0xd8] sm:$0xff]  ;;  %119 = vmatpush1.msra.mxu0 %v44_v7  ;;  %v39_v13 = vld [vmem:[%s5437_s1 + $0x8] sm:$0xff]  ;;  %v38_v15 = vld [vmem:[%s5437_s1] sm:$0xff]  ;;  %v54_v60 = vsub.s32 0, %v53_v59  ;;  %v58_v63 = vsub.s32 1, %v53_v59 }
   0x6   :  { %390 = vmatpush1.msra.mxu1 %v3962_v8  ;;  %v3988_v14 = vld [vmem:[%s5438_s3 + $0xc8] sm:$0xff]  ;;  %120 = vmatprep.subr.mxu0 %v42_v9  ;;  %v3997_v16 = vld [vmem:[%s5438_s3 + $0xc0] sm:$0xff]  ;;  %v49_v18 = vld [vmem:[%s5437_s1 + $0x58] sm:$0xff] }
   0x7   :  { %391 = vmatprep.subr.mxu1 %v3971_v10  ;;  %121 = vmatpush1.msra.mxu0 %v41_v11  ;;  %v4003_v17 = vld [vmem:[%s5439_s0] sm:$0xff]  ;;  %v4012_v19 = vld [vmem:[%s5438_s3 + $0xb0] sm:$0xff]  ;;  %v4018_v20 = vld [vmem:[%s5438_s3 + $0xa8] sm:$0xff] }
   0x8   :  { %392 = vmatpush1.msra.mxu1 %v3979_v12  ;;  %122 = vmatprep.subr.mxu0 %v39_v13  ;;  %v4025_v21 = vld [vmem:[%s5438_s3 + $0x98] sm:$0xff]  ;;  %v46_v22 = vld [vmem:[%s5437_s1 + $0x40] sm:$0xff]  ;;  %v4034_v23 = vld [vmem:[%s5438_s3 + $0x90] sm:$0xff] }
   0x9   :  { %393 = vmatprep.subr.mxu1 %v3988_v14  ;;  %123 = vmatpush1.msra.mxu0 %v38_v15  ;;  %v4039_v24 = vld [vmem:[%s5439_s0 + $0x8] sm:$0xff]  ;;  %v4046_v25 = vld [vmem:[%s5438_s3 + $0x80] sm:$0xff]  ;;  %v4052_v26 = vld [vmem:[%s5438_s3 + $0x78] sm:$0xff] }
   0xa   :  { %394 = vmatpush1.msra.mxu1 %v3997_v16  ;;  %3106 = vmatmul.mubr.msk.f32.vlgmr.msra.gmra.mxu0 %vm67_vm1, %v4003_v17  ;;  %v4060_v27 = vld [vmem:[%s5438_s3 + $0x68] sm:$0xff]  ;;  %v4070_v29 = vld [vmem:[%s5438_s3 + $0x60] sm:$0xff]  ;;  %v4075_v30 = vld [vmem:[%s5439_s0 + $0x10] sm:$0xff] }
   0xb   :  { %3349 = vmatprep.subr.mxu0 %v49_v18  ;;  %395 = vmatprep.subr.mxu1 %v4012_v19  ;;  %v43_v28 = vld [vmem:[%s5437_s1 + $0x28] sm:$0xff]  ;;  %v4081_v31 = vld [vmem:[%s5438_s3 + $0x50] sm:$0xff]  ;;  %v4095_v33 = vld [vmem:[%s5438_s3 + $0x38] sm:$0xff] }
   0xc   :  { %3350 = vmatpush3.msra.mxu0 %v49_v18  ;;  %396 = vmatpush1.msra.mxu1 %v4018_v20  ;;  %v4087_v32 = vld [vmem:[%s5438_s3 + $0x48] sm:$0xff]  ;;  %v40_v34 = vld [vmem:[%s5437_s1 + $0x10] sm:$0xff]  ;;  %v33_v36 = vld [vmem:[%s5439_s0 + $0x18] sm:$0xff] }
   0xd   :  { %162 = vmatprep.mubr.f32.mxu0 %v5444_v3  ;;  %397 = vmatprep.subr.mxu1 %v4025_v21  ;;  %v4105_v35 = vld [vmem:[%s5438_s3 + $0x30] sm:$0xff]  ;;  %v4114_v37 = vld [vmem:[%s5438_s3 + $0x20] sm:$0xff]  ;;  %v4120_v38 = vld [vmem:[%s5438_s3 + $0x18] sm:$0xff] }
   0xe   :  { %3351 = vmatprep.subr.mxu0 %v46_v22  ;;  %398 = vmatpush1.msra.mxu1 %v4034_v23  ;;  %v4127_v39 = vld [vmem:[%s5438_s3 + $0x8] sm:$0xff]  ;;  %v4134_v40 = vld [vmem:[%s5438_s3] sm:$0xff]  ;;  %v36_v44 = vld [vmem:[%s5439_s0 + $0x30] sm:$0xff] }
   0xf   :  { %3107 = vmatmul.mubr.msk.f32.gmra.mxu0 %vm67_vm1, %v4039_v24  ;;  %399 = vmatprep.subr.mxu1 %v4046_v25  ;;  %v34_v41 = vld [vmem:[%s5439_s0 + $0x20] sm:$0xff]  ;;  %v35_v43 = vld [vmem:[%s5439_s0 + $0x28] sm:$0xff]  ;;  %v37_v45 = vld [vmem:[%s5439_s0 + $0x38] sm:$0xff] }
  0x10   :  { %168 = vmatprep.mubr.f32.mxu0 %v5444_v3  ;;  %400 = vmatpush1.msra.mxu1 %v4052_v26  ;;  %v4140_v42 = vld [vmem:[#allocation4] sm:$0xff]  ;;  %v4181_v46 = vld [vmem:[%s5438_s3 + $0x118] sm:$0xff]  ;;  %v4200_v48 = vld [vmem:[%s5438_s3 + $0xe8] sm:$0xff] }
  0x11   :  { %3352 = vmatpush3.msra.mxu0 %v46_v22  ;;  %401 = vmatprep.subr.mxu1 %v4060_v27  ;;  %v4190_v47 = vld [vmem:[%s5438_s3 + $0x100] sm:$0xff]  ;;  %v4209_v49 = vld [vmem:[%s5438_s3 + $0xd0] sm:$0xff]  ;;  %v4218_v50 = vld [vmem:[%s5438_s3 + $0xb8] sm:$0xff] }
  0x12   :  { %3353 = vmatprep.subr.mxu0 %v43_v28  ;;  %402 = vmatpush1.msra.mxu1 %v4070_v29  ;;  %v4227_v51 = vld [vmem:[%s5438_s3 + $0xa0] sm:$0xff]  ;;  %v4236_v52 = vld [vmem:[%s5438_s3 + $0x88] sm:$0xff]  ;;  %v4245_v53 = vld [vmem:[%s5438_s3 + $0x70] sm:$0xff] }
  0x13   :  { %3108 = vmatmul.mubr.msk.f32.gmra.mxu0 %vm67_vm1, %v4075_v30  ;;  %403 = vmatprep.subr.mxu1 %v4081_v31  ;;  %v4255_v54 = vld [vmem:[%s5438_s3 + $0x58] sm:$0xff]  ;;  %v4264_v55 = vld [vmem:[%s5438_s3 + $0x40] sm:$0xff]  ;;  %v4273_v56 = vld [vmem:[%s5438_s3 + $0x28] sm:$0xff] }
  0x14   :  { %174 = vmatprep.mubr.f32.mxu0 %v5444_v3  ;;  %404 = vmatpush1.msra.mxu1 %v4087_v32  ;;  %v4280_v57 = vld [vmem:[%s5438_s3 + $0x10] sm:$0xff]  ;;  %v50_v61 = vld [vmem:[%s5440_s2] sm:$0x7]  ;;  %s3886_s2 = smov 96  }
  0x15   :  { %3354 = vmatpush3.msra.mxu0 %v43_v28  ;;  %405 = vmatprep.subr.mxu1 %v4095_v33  ;;  %v4319_v5 = vrot.slane %v50_v61, %v58_v63 }
  0x16   :  { %3355 = vmatprep.subr.mxu0 %v40_v34  ;;  %406 = vmatpush1.msra.mxu1 %v4105_v35 }
  0x17   :  { %3109 = vmatmul.mubr.msk.f32.gmra.mxu0 %vm67_vm1, %v33_v36  ;;  %407 = vmatprep.subr.mxu1 %v4114_v37 }
  0x18   :  { %180 = vmatprep.mubr.f32.mxu0 %v5444_v3  ;;  %408 = vmatpush1.msra.mxu1 %v4120_v38 }
  0x19   :  { %3356 = vmatpush3.msra.mxu0 %v40_v34  ;;  %409 = vmatprep.subr.mxu1 %v4127_v39 }
  0x1a   :  { %3369 = vmatprep.subr.mxu0 %v5444_v3  ;;  %410 = vmatpush1.msra.mxu1 %v4134_v40 }
  0x1b   :  { %3110 = vmatmul.mubr.msk.f32.gmra.mxu0 %vm67_vm1, %v34_v41  ;;  %3122 = vmatmul.mubr.msk.f32.vlgmr.msra.gmra.mxu1 %vm27_vm0, %v4140_v42 }
  0x1c   :  { %186 = vmatprep.mubr.f32.mxu0 %v5444_v3  ;;  %626 = vmatprep.subr.mxu1 %v3930_v1 }
  0x1d   :  { %682 = vmatprep.mubr.f32.mxu1 %v5444_v3  ;;  %627 = vmatpush1.msra.mxu1 %v3945_v4 }
  0x1e   :  { %628 = vmatprep.subr.mxu1 %v3953_v6 }
  0x1f   :  { %3111 = vmatmul.mubr.msk.f32.gmra.mxu0 %vm67_vm1, %v35_v43  ;;  %629 = vmatpush1.msra.mxu1 %v3962_v8 }
  0x20   :  { %192 = vmatprep.mubr.f32.mxu0 %v5444_v3  ;;  %630 = vmatprep.subr.mxu1 %v3971_v10 }
  0x21   :  { %631 = vmatpush1.msra.mxu1 %v3979_v12 }
  0x22   :  { %632 = vmatprep.subr.mxu1 %v3988_v14 }
  0x23   :  { %3112 = vmatmul.mubr.msk.f32.gmra.mxu0 %vm67_vm1, %v36_v44  ;;  %633 = vmatpush1.msra.mxu1 %v3997_v16 }
  0x24   :  { %198 = vmatprep.mubr.f32.mxu0 %v5444_v3  ;;  %634 = vmatprep.subr.mxu1 %v4012_v19 }
  0x25   :  { %635 = vmatpush1.msra.mxu1 %v4018_v20 }
  0x26   :  { %636 = vmatprep.subr.mxu1 %v4025_v21 }
  0x27   :  { %3113 = vmatmul.mubr.msk.f32.gmra.mxu0 %vm67_vm1, %v37_v45  ;;  %637 = vmatpush1.msra.mxu1 %v4034_v23 }
  0x28   :  { %3357 = vmatprep.mubr.msk.f32.mxu0 %vm67_vm1, %v4003_v17  ;;  %638 = vmatprep.subr.mxu1 %v4046_v25 }
  0x29   :  { %639 = vmatpush1.msra.mxu1 %v4052_v26 }
  0x2a   :  { %640 = vmatprep.subr.mxu1 %v4060_v27 }
  0x2b   :  { %3358 = vmatmul.mubr.msk.f32.vlgmr.msra.gmra.mxu0 %vm67_vm1, %v4039_v24  ;;  %641 = vmatpush1.msra.mxu1 %v4070_v29 }
  0x2c   :  { %3370 = vmatpush3.msra.mxu0 %v4181_v46  ;;  %3360 = vmatprep.mubr.msk.f32.mxu0 %vm67_vm1, %v4075_v30 }
  0x2d   :  { %3371 = vmatprep.subr.mxu0 %v5444_v3  ;;  %642 = vmatprep.subr.mxu1 %v4081_v31 }
  0x2e   :  { %3372 = vmatpush3.msra.mxu0 %v4190_v47  ;;  %643 = vmatpush1.msra.mxu1 %v4087_v32 }
  0x2f   :  { %3373 = vmatprep.subr.mxu0 %v5444_v3  ;;  %3361 = vmatmul.mubr.msk.f32.gmra.mxu0 %vm67_vm1, %v33_v36 }
  0x30   :  { %3374 = vmatpush3.msra.mxu0 %v4200_v48  ;;  %3363 = vmatprep.mubr.msk.f32.mxu0 %vm67_vm1, %v34_v41 }
  0x31   :  { %3375 = vmatprep.subr.mxu0 %v5444_v3  ;;  %644 = vmatprep.subr.mxu1 %v4095_v33 }
  0x32   :  { %3376 = vmatpush3.msra.mxu0 %v4209_v49  ;;  %645 = vmatpush1.msra.mxu1 %v4105_v35 }
  0x33   :  { %3377 = vmatprep.subr.mxu0 %v5444_v3  ;;  %3364 = vmatmul.mubr.msk.f32.gmra.mxu0 %vm67_vm1, %v35_v43 }
  0x34   :  { %3378 = vmatpush3.msra.mxu0 %v4218_v50  ;;  %3366 = vmatprep.mubr.msk.f32.mxu0 %vm67_vm1, %v36_v44 }
  0x35   :  { %3379 = vmatprep.subr.mxu0 %v5444_v3  ;;  %646 = vmatprep.subr.mxu1 %v4114_v37 }
  0x36   :  { %3380 = vmatpush3.msra.mxu0 %v4227_v51  ;;  %647 = vmatpush1.msra.mxu1 %v4120_v38 }
  0x37   :  { %3381 = vmatprep.subr.mxu0 %v5444_v3  ;;  %3367 = vmatmul.mubr.msk.f32.gmra.mxu0 %vm67_vm1, %v37_v45 }
  0x38   :  { %3382 = vmatpush3.msra.mxu0 %v4236_v52  ;;  %3393 = vmatprep.mubr.msk.f32.mxu0 %vm3885_vm2, %v5444_v3 }
  0x39   :  { %3383 = vmatprep.subr.mxu0 %v5444_v3  ;;  %648 = vmatprep.subr.mxu1 %v4127_v39 }
  0x3a   :  { %3384 = vmatpush3.msra.mxu0 %v4245_v53  ;;  %649 = vmatpush1.msra.mxu1 %v4134_v40 }
  0x3b   :  { %3385 = vmatprep.subr.mxu0 %v5444_v3  ;;  %873 = vmatprep.subr.mxu1 %v3930_v1  ;;  %v55_v1 = vrot.slane %v50_v61, %v54_v60 }
  0x3c   :  { %3386 = vmatpush3.msra.mxu0 %v4255_v54 }
  0x3d   :  { %3387 = vmatprep.subr.mxu0 %v5444_v3 }
  0x3e   :  { %3388 = vmatpush3.msra.mxu0 %v4264_v55 }
  0x3f   :  { %3389 = vmatprep.subr.mxu0 %v5444_v3 }
  0x40   :  { %3390 = vmatpush3.msra.mxu0 %v4273_v56 }
  0x41   :  { %3391 = vmatprep.subr.mxu0 %v5444_v3 }
  0x42   :  { %3392 = vmatpush3.msra.mxu0 %v4280_v57 }
  0x43   :  { %3394 = vmatmul.mubr.msk.f32.vlgmr.msra.gmra.mxu0 %vm27_vm0, %v4140_v42  ;;  %3396 = vmatprep.subr.mxu0 %v5444_v3 }
  0x44   :  { %3397 = vmatpush3.msra.mxu0 %v4181_v46  ;;  %3420 = vmatprep.mubr.msk.f32.mxu0 %vm3885_vm2, %v5444_v3 }
  0x45   :  { %3398 = vmatprep.subr.mxu0 %v5444_v3 }
  0x46   :  { %3399 = vmatpush3.msra.mxu0 %v4190_v47 }
  0x47   :  { %3400 = vmatprep.subr.mxu0 %v5444_v3 }
  0x48   :  { %3401 = vmatpush3.msra.mxu0 %v4200_v48 }
  0x49   :  { %3402 = vmatprep.subr.mxu0 %v5444_v3 }
  0x4a   :  { %3403 = vmatpush3.msra.mxu0 %v4209_v49 }
  0x4b   :  { %3404 = vmatprep.subr.mxu0 %v5444_v3 }
  0x4c   :  { %3405 = vmatpush3.msra.mxu0 %v4218_v50 }
  0x4d   :  { %3406 = vmatprep.subr.mxu0 %v5444_v3 }
  0x4e   :  { %3407 = vmatpush3.msra.mxu0 %v4227_v51 }
  0x4f   :  { %3408 = vmatprep.subr.mxu0 %v5444_v3 }
  0x50   :  { %3409 = vmatpush3.msra.mxu0 %v4236_v52 }
  0x51   :  { %3410 = vmatprep.subr.mxu0 %v5444_v3 }
  0x52   :  { %3411 = vmatpush3.msra.mxu0 %v4245_v53 }
  0x53   :  { %3412 = vmatprep.subr.mxu0 %v5444_v3 }
  0x54   :  { %3413 = vmatpush3.msra.mxu0 %v4255_v54 }
  0x55   :  { %3414 = vmatprep.subr.mxu0 %v5444_v3 }
  0x56   :  { %3415 = vmatpush3.msra.mxu0 %v4264_v55 }
  0x57   :  { %3416 = vmatprep.subr.mxu0 %v5444_v3 }
  0x58   :  { %3417 = vmatpush3.msra.mxu0 %v4273_v56 }
  0x59   :  { %3418 = vmatprep.subr.mxu0 %v5444_v3 }
  0x5a   :  { %3419 = vmatpush3.msra.mxu0 %v4280_v57 }
  0x5b   :  { %3423 = vmatprep.subr.mxu0 %v5444_v3 }
  0xca   :  { %v158_v62 = vpop.f32.mrf.mxu0 }
  0xcc   :  { %v4317_v0 = vpop.f32.mrf.mxu0 }
  0xcf   :  { %v164_v2 = vpop.f32.mrf.mxu0 }
  0xd0   :  { %v4321_v7 = vadd.f32 %v164_v2, %v55_v1  ;;  %v62_v2 = vsub.s32 2, %v53_v59 }
  0xd1   :  { %v166_v9 = vpop.f32.mrf.mxu0 }
  0xd2   :  { %v4324_v11 = vadd.f32 %v166_v9, %v4319_v5 }
  0xd3   :  { %v170_v13 = vpop.f32.mrf.mxu0 }
  0xd4   :  { %v4326_v15 = vadd.f32 %v170_v13, %v55_v1 }
  0xd5   :  { %v172_v17 = vpop.f32.mrf.mxu0 }
  0xd6   :  { %v4329_v18 = vadd.f32 %v172_v17, %v4319_v5 }
  0xd7   :  { %v176_v22 = vpop.f32.mrf.mxu0 }
  0xd8   :  { %v4331_v24 = vadd.f32 %v176_v22, %v55_v1 }
  0xd9   :  { %v178_v28 = vpop.f32.mrf.mxu0 }
  0xda   :  { %v4334_v30 = vadd.f32 %v178_v28, %v4319_v5  ;;  %v63_v28 = vrot.slane %v50_v61, %v62_v2 }
  0xdb   :  { %v182_v34 = vpop.f32.mrf.mxu0 }
  0xdc   :  { %v4336_v36 = vadd.f32 %v182_v34, %v55_v1 }
  0xdd   :  { %v184_v41 = vpop.f32.mrf.mxu0 }
  0xde   :  { %5449 = vst [vmem:[#allocation6_spill] sm:$0xff] %v4336_v36  ;;  %v4339_v42 = vadd.f32 %v184_v41, %v4319_v5 }
  0xdf   :  { %v188_v43 = vpop.f32.mrf.mxu0 }
  0xe0   :  { %5450 = vst [vmem:[#allocation7_spill] sm:$0xff] %v4339_v42  ;;  %v4341_v44 = vadd.f32 %v188_v43, %v55_v1 }
  0xe1   :  { %v190_v45 = vpop.f32.mrf.mxu0 }
  0xe2   :  { %5451 = vst [vmem:[#allocation8_spill] sm:$0xff] %v4341_v44  ;;  %v4344_v58 = vadd.f32 %v190_v45, %v4319_v5 }
  0xe3   :  { %v194_v60 = vpop.f32.mrf.mxu0 }
  0xe4   :  { %5452 = vst [vmem:[#allocation9_spill] sm:$0xff] %v4344_v58  ;;  %v4346_v63 = vadd.f32 %v194_v60, %v55_v1 }
  0xe5   :  { %v196_v9 = vpop.f32.mrf.mxu0 }
  0xe6   :  { %5453 = vst [vmem:[#allocation10_spill] sm:$0xff] %v4346_v63  ;;  %v4349_v13 = vadd.f32 %v196_v9, %v4319_v5 }
  0xe7   :  { %v200_v17 = vpop.f32.mrf.mxu0 }
  0xe8   :  { %5454 = vst [vmem:[#allocation11_spill] sm:$0xff] %v4349_v13  ;;  %v4351_v22 = vadd.f32 %v200_v17, %v55_v1 }
  0xe9   :  { %v202_v34 = vpop.f32.mrf.mxu0 }
  0xea   :  { %5455 = vst [vmem:[#allocation12_spill] sm:$0xff] %v4351_v22  ;;  %v4354_v41 = vadd.f32 %v202_v34, %v4319_v5 }
  0xeb   :  { %v3359_v43 = vpop.f32.mrf.mxu0 }
  0xec   :  { %5456 = vst [vmem:[#allocation13_spill] sm:$0xff] %v4354_v41  ;;  %v4356_v3 = vadd.f32 %v3359_v43, %v63_v28 }
  0xed   :  { %v271_v45 = vpop.f32.mrf.mxu0 }
  0xee   :  { %v272_v43 = vadd.f32 %v271_v45, %v63_v28 }
  0xef   :  { %v3362_v58 = vpop.f32.mrf.mxu0 }
  0xf0   :  { %v4358_v60 = vadd.f32 %v3362_v58, %v63_v28 }
  0xf1   :  { %v281_v59 = vpop.f32.mrf.mxu0 }
  0xf2   :  { %v4360_v63 = vadd.f32 %v281_v59, %v63_v28  ;;  %v335_v59 = vld [vmem:[#allocation5] sm:$0xff] }
  0xf3   :  { %v3365_v9 = vpop.f32.mrf.mxu0 }
  0xf4   :  { %v4362_v13 = vadd.f32 %v3365_v9, %v63_v28  ;;  %v445_v9 = vpop.f32.mrf.mxu1 }
  0xf5   :  { %v291_v17 = vpop.f32.mrf.mxu0 }
  0xf6   :  { %5457 = vst [vmem:[#allocation14_spill] sm:$0xff] %v4362_v13  ;;  %v4364_v22 = vadd.f32 %v291_v17, %v63_v28  ;;  %v159_v17 = vadd.f32 %v158_v62, %v55_v1 }
  0xf7   :  { %v3368_v61 = vpop.f32.mrf.mxu0 }
  0xf8   :  { %v4366_v2 = vadd.f32 %v3368_v61, %v63_v28  ;;  %v520_v13 = vadd.f32 %v445_v9, %v159_v17 }
  0xf9   :  { %v301_v34 = vpop.f32.mrf.mxu0 }
  0xfa   :  { %5458 = vst [vmem:[#allocation15_spill] sm:$0xff] %v4366_v2  ;;  %v4368_v41 = vadd.f32 %v301_v34, %v63_v28  ;;  %v3124_v61 = vmul.f32 -1.442695, %v520_v13 }
 0x103   :  { %v516_v44 = vpop.f32.mrf.mxu0 }
 0x104   :  { %v522_v42 = vadd.f32 %v516_v44, %v272_v43 }
 0x105   :  { %v3395_v58 = vpop.f32.mrf.mxu0 }
 0x106   :  { %3680 = vtanh.f32 %v522_v42  ;;  %v447_v42 = vpop.f32.mrf.mxu1 }
 0x107   :  { %3682 = vpow2.f32 %v3124_v61 }
 0x113   :  { %v3681_v36 = vpop.eup %3680 }
 0x114   :  { %543 = vrot.lane.b32.xlu0 %v3681_v36, %s3886_s2  ;;  %v3683_v2 = vpop.eup %3682  ;;  %v161_v36 = vadd.f32 %v4317_v0, %v4319_v5 }
 0x115   :  { %v529_v34 = vadd.f32 1.0, %v3683_v2 }
 0x116   :  { %v521_v43 = vadd.f32 %v447_v42, %v161_v36 }
 0x117   :  { %3684 = vrcp.f32 %v529_v34 }
 0x118   :  { %537 = vrot.lane.b32.xlu0 %v335_v59, %s3886_s2  ;;  %v3125_v58 = vmul.f32 -1.442695, %v521_v43 }
 0x11a   :  { %3686 = vpow2.f32 %v3125_v58 }
 0x124   :  { %v3685_v28 = vpop.eup %3684 }
 0x127   :  { %v3687_v59 = vpop.eup %3686 }
 0x128   :  { %v530_v62 = vadd.f32 1.0, %v3687_v59 }
 0x12a   :  { %3688 = vrcp.f32 %v530_v62  ;;  %v5459_v62 = vmov 0.0  }
 0x137   :  { %v3689_v13 = vpop.eup %3688 }
 0x186   :  { %v544_v45 = vpop.permute.xlu0 %543 }
 0x187   :  { %v546_v44 = vmul.f32 %v3685_v28, %v544_v45 }
 0x189   :  { %548 = vrot.lane.b32.xlu1 %v546_v44, %s3886_s2 }
 0x18a   :  { %v538_v1 = vpop.permute.xlu0 %537 }
 0x18b   :  { %v540_v9 = vmul.f32 %v3685_v28, %v538_v1  ;;  %v541_v2 = vmul.f32 %v3689_v13, %v538_v1 }
 0x1fb   :  { %v549_v17 = vpop.permute.xlu1 %548 }
 0x1fc   :  { %v551_v61 = vadd.f32 %v549_v17, %v540_v9  ;;  %v552_v34 = vadd.f32 %v549_v17, %v541_v2 }
 0x1fe   :  { %3690 = vtanh.f32 %v551_v61 }
 0x1ff   :  { %3692 = vtanh.f32 %v552_v34 }
 0x20b   :  { %v3691_v45 = vpop.eup %3690 }
 0x20c   :  { %v3693_v44 = vpop.eup %3692  ;;  %557 = vrot.lane.b32.xlu1 %v3691_v45, %s3886_s2 }
 0x20d   :  { %559 = vrot.lane.b32.xlu0 %v3693_v44, %s3886_s2 }
 0x211   :  { %570 = vrot.lane.b32.xlu0 %v551_v61, %s3887_s12 }
 0x27e   :  { %v558_v0 = vpop.permute.xlu1 %557 }
 0x27f   :  { %v560_v5 = vpop.permute.xlu0 %559 }
 0x280   :  { %v561_v42 = vsel %vm27_vm0, %v558_v0, %v560_v5 }
 0x281   :  { %v563_v28 = vmul.f32 %v3689_v13, %v561_v42 }
 0x283   :  { %v571_v36 = vpop.permute.xlu0 %570  ;;  %565 = vrot.lane.b32.xlu1 %v563_v28, %s3888_s13 }
 0x284   :  { %573 = vst.msk [vmem:[#allocation5] sm:$0xff] %vm67_vm1, %v571_v36 }
 0x28b   :  { %v575_v43 = vld [vmem:[#allocation5] sm:$0xff] }
 0x28c   :  { %776 = vrot.lane.b32.xlu0 %v575_v43, %s3886_s2 }
 0x2f5   :  { %v566_v58 = vpop.permute.xlu1 %565 }
 0x2f6   :  { %568 = vst.msk [vmem:[#allocation4] sm:$0xff] %vm67_vm1, %v566_v58 }
 0x2fd   :  { %v574_v59 = vld [vmem:[#allocation4] sm:$0xff] }
 0x2fe   :  { %3126 = vmatmul.mubr.msk.f32.vlgmr.msra.gmra.mxu1 %vm27_vm0, %v574_v59  ;;  %3421 = vmatmul.mubr.msk.f32.vlgmr.msra.gmra.mxu0 %vm27_vm0, %v574_v59 }
 0x2ff   :  { %874 = vmatpush1.msra.mxu1 %v3945_v4  ;;  %3424 = vmatpush3.msra.mxu0 %v4181_v46 }
 0x300   :  { %875 = vmatprep.subr.mxu1 %v3953_v6  ;;  %3425 = vmatprep.subr.mxu0 %v5459_v62 }
 0x301   :  { %876 = vmatpush1.msra.mxu1 %v3962_v8  ;;  %3426 = vmatpush3.msra.mxu0 %v4190_v47 }
 0x302   :  { %877 = vmatprep.subr.mxu1 %v3971_v10  ;;  %3427 = vmatprep.subr.mxu0 %v5459_v62 }
 0x303   :  { %878 = vmatpush1.msra.mxu1 %v3979_v12  ;;  %3428 = vmatpush3.msra.mxu0 %v4200_v48 }
 0x304   :  { %879 = vmatprep.subr.mxu1 %v3988_v14  ;;  %3429 = vmatprep.subr.mxu0 %v5459_v62 }
 0x305   :  { %880 = vmatpush1.msra.mxu1 %v3997_v16  ;;  %3430 = vmatpush3.msra.mxu0 %v4209_v49 }
 0x306   :  { %881 = vmatprep.subr.mxu1 %v4012_v19  ;;  %3431 = vmatprep.subr.mxu0 %v5459_v62 }
 0x307   :  { %882 = vmatpush1.msra.mxu1 %v4018_v20  ;;  %3432 = vmatpush3.msra.mxu0 %v4218_v50 }
 0x308   :  { %883 = vmatprep.subr.mxu1 %v4025_v21  ;;  %3433 = vmatprep.subr.mxu0 %v5459_v62 }
 0x309   :  { %884 = vmatpush1.msra.mxu1 %v4034_v23  ;;  %3434 = vmatpush3.msra.mxu0 %v4227_v51 }
 0x30a   :  { %885 = vmatprep.subr.mxu1 %v4046_v25  ;;  %3435 = vmatprep.subr.mxu0 %v5459_v62 }
 0x30b   :  { %886 = vmatpush1.msra.mxu1 %v4052_v26  ;;  %3436 = vmatpush3.msra.mxu0 %v4236_v52 }
 0x30c   :  { %887 = vmatprep.subr.mxu1 %v4060_v27  ;;  %3437 = vmatprep.subr.mxu0 %v5459_v62 }
 0x30d   :  { %888 = vmatpush1.msra.mxu1 %v4070_v29  ;;  %3438 = vmatpush3.msra.mxu0 %v4245_v53 }
 0x30e   :  { %889 = vmatprep.subr.mxu1 %v4081_v31  ;;  %3439 = vmatprep.subr.mxu0 %v5459_v62 }
 0x30f   :  { %890 = vmatpush1.msra.mxu1 %v4087_v32  ;;  %3440 = vmatpush3.msra.mxu0 %v4255_v54 }
 0x310   :  { %891 = vmatprep.subr.mxu1 %v4095_v33  ;;  %3441 = vmatprep.subr.mxu0 %v5459_v62  ;;  %v777_v33 = vpop.permute.xlu0 %776 }
 0x311   :  { %892 = vmatpush1.msra.mxu1 %v4105_v35  ;;  %3442 = vmatpush3.msra.mxu0 %v4264_v55 }
 0x312   :  { %893 = vmatprep.subr.mxu1 %v4114_v37  ;;  %3443 = vmatprep.subr.mxu0 %v5459_v62 }
 0x313   :  { %894 = vmatpush1.msra.mxu1 %v4120_v38  ;;  %3444 = vmatpush3.msra.mxu0 %v4273_v56 }
 0x314   :  { %895 = vmatprep.subr.mxu1 %v4127_v39  ;;  %3445 = vmatprep.subr.mxu0 %v5459_v62 }
 0x315   :  { %896 = vmatpush1.msra.mxu1 %v4134_v40  ;;  %929 = vmatprep.mubr.f32.mxu1 %v5459_v62 }
 0x316   :  { %3446 = vmatpush3.msra.mxu0 %v4280_v57  ;;  %3447 = vmatprep.mubr.msk.f32.mxu0 %vm3885_vm2, %v5459_v62 }
 0x317   :  { %3450 = vmatprep.subr.mxu0 %v5459_v62 }
 0x3be   :  { %v755_v4 = vpop.f32.mrf.mxu0  ;;  %v684_v12 = vpop.f32.mrf.mxu1 }
 0x3bf   :  { %v761_v6 = vadd.f32 %v755_v4, %v4356_v3  ;;  %v759_v14 = vadd.f32 %v684_v12, %v4321_v7  ;;  %v4509_v12 = vld [vmem:[%s5438_s3 + $0xf8] sm:$0xff] }
 0x3c0   :  { %v3422_v8 = vpop.f32.mrf.mxu0  ;;  %v686_v26 = vpop.f32.mrf.mxu1 }
 0x3c1   :  { %3694 = vtanh.f32 %v761_v6  ;;  %v3128_v16 = vmul.f32 -1.442695, %v759_v14  ;;  %v760_v3 = vadd.f32 %v686_v26, %v4324_v11  ;;  %v4515_v14 = vld [vmem:[%s5438_s3 + $0xf0] sm:$0xff] }
 0x3c2   :  { %v4547_v26 = vld [vmem:[%s5438_s3 + $0xb0] sm:$0xff] }
 0x3c3   :  { %3696 = vpow2.f32 %v3128_v16  ;;  %v3129_v27 = vmul.f32 -1.442695, %v760_v3  ;;  %v4521_v16 = vld [vmem:[%s5438_s3 + $0xe0] sm:$0xff]  ;;  %v4553_v3 = vld [vmem:[%s5438_s3 + $0xa8] sm:$0xff] }
 0x3ce   :  { %v3695_v10 = vpop.eup %3694 }
 0x3cf   :  { %782 = vrot.lane.b32.xlu1 %v3695_v10, %s3886_s2  ;;  %v4504_v10 = vld [vmem:[%s5438_s3 + $0x108] sm:$0xff] }
 0x3d0   :  { %v3697_v19 = vpop.eup %3696 }
 0x3d1   :  { %v768_v20 = vadd.f32 1.0, %v3697_v19  ;;  %v4527_v19 = vld [vmem:[%s5438_s3 + $0xd8] sm:$0xff] }
 0x3d3   :  { %3698 = vrcp.f32 %v768_v20 }
 0x3d4   :  { %3700 = vpow2.f32 %v3129_v27  ;;  %v4559_v27 = vld [vmem:[%s5438_s3 + $0x98] sm:$0xff] }
 0x3e0   :  { %v3699_v21 = vpop.eup %3698 }
 0x3e1   :  { %v3701_v29 = vpop.eup %3700  ;;  %v779_v35 = vmul.f32 %v3699_v21, %v777_v33 }
 0x3e2   :  { %v769_v31 = vadd.f32 1.0, %v3701_v29  ;;  %v4565_v29 = vld [vmem:[%s5438_s3 + $0x90] sm:$0xff] }
 0x3e4   :  { %3702 = vrcp.f32 %v769_v31  ;;  %v4571_v31 = vld [vmem:[%s5438_s3 + $0x80] sm:$0xff] }
 0x3f1   :  { %v3703_v32 = vpop.eup %3702 }
 0x3f2   :  { %v780_v37 = vmul.f32 %v3703_v32, %v777_v33 }
 0x441   :  { %v783_v23 = vpop.permute.xlu1 %782 }
 0x442   :  { %v785_v25 = vmul.f32 %v3699_v21, %v783_v23  ;;  %v4533_v21 = vld [vmem:[%s5438_s3 + $0xc8] sm:$0xff] }
 0x444   :  { %787 = vrot.lane.b32.xlu1 %v785_v25, %s3886_s2  ;;  %v4540_v25 = vld [vmem:[%s5438_s3 + $0xc0] sm:$0xff] }
 0x4b6   :  { %v788_v38 = vpop.permute.xlu1 %787 }
 0x4b7   :  { %v790_v39 = vadd.f32 %v788_v38, %v779_v35  ;;  %v791_v40 = vadd.f32 %v788_v38, %v780_v37  ;;  %v4586_v38 = vld [vmem:[%s5438_s3 + $0x68] sm:$0xff] }
 0x4b9   :  { %3704 = vtanh.f32 %v790_v39 }
 0x4ba   :  { %3706 = vtanh.f32 %v791_v40 }
 0x4c6   :  { %v3705_v7 = vpop.eup %3704 }
 0x4c7   :  { %v3707_v1 = vpop.eup %3706  ;;  %796 = vrot.lane.b32.xlu0 %v3705_v7, %s3886_s2  ;;  %v4604_v7 = vld [vmem:[%s5438_s3 + $0x48] sm:$0xff] }
 0x4c8   :  { %798 = vrot.lane.b32.xlu1 %v3707_v1, %s3886_s2  ;;  %v4610_v1 = vld [vmem:[%s5438_s3 + $0x38] sm:$0xff] }
 0x4cc   :  { %811 = vrot.lane.b32.xlu1 %v790_v39, %s3887_s12  ;;  %v4592_v39 = vld [vmem:[%s5438_s3 + $0x60] sm:$0xff] }
 0x539   :  { %v797_v11 = vpop.permute.xlu0 %796 }
 0x53a   :  { %v799_v13 = vpop.permute.xlu1 %798 }
 0x53b   :  { %v800_v9 = vsel %vm27_vm0, %v797_v11, %v799_v13  ;;  %v4616_v11 = vld [vmem:[%s5438_s3 + $0x30] sm:$0xff]  ;;  %v4622_v13 = vld [vmem:[%s5438_s3 + $0x20] sm:$0xff] }
 0x53c   :  { %v802_v2 = vmul.f32 %v3703_v32, %v800_v9  ;;  %v4577_v32 = vld [vmem:[%s5438_s3 + $0x78] sm:$0xff] }
 0x53d   :  { %v4628_v9 = vld [vmem:[%s5438_s3 + $0x18] sm:$0xff] }
 0x53e   :  { %804 = vrot.lane.b32.xlu0 %v802_v2, %s3888_s13  ;;  %v812_v61 = vpop.permute.xlu1 %811  ;;  %v4633_v2 = vld [vmem:[%s5438_s3 + $0x8] sm:$0xff] }
 0x542   :  { %813 = vrot.lane.b32.xlu0 %v791_v40, %s3887_s12  ;;  %v4598_v40 = vld [vmem:[%s5438_s3 + $0x50] sm:$0xff] }
 0x5b0   :  { %v805_v17 = vpop.permute.xlu0 %804 }
 0x5b1   :  { %808 = vst.msk [vmem:[#allocation4] sm:$0xff] %vm807_vm3, %v805_v17  ;;  %v4638_v17 = vld [vmem:[%s5438_s3] sm:$0xff] }
 0x5b4   :  { %v814_v34 = vpop.permute.xlu0 %813 }
 0x5b5   :  { %v815_v45 = vsel %vm67_vm1, %v812_v61, %v814_v34 }
 0x5b6   :  { %817 = vst.msk [vmem:[#allocation5] sm:$0xff] %vm807_vm3, %v815_v45 }
 0x5b8   :  { %v818_v44 = vld [vmem:[#allocation4] sm:$0xff] }
 0x5b9   :  { %3130 = vmatmul.mubr.msk.f32.vlgmr.msra.gmra.mxu1 %vm27_vm0, %v818_v44  ;;  %3448 = vmatmul.mubr.msk.f32.vlgmr.msra.gmra.mxu0 %vm27_vm0, %v818_v44 }
 0x5ba   :  { %3451 = vmatpush3.msra.mxu0 %v4181_v46  ;;  %1188 = vmatprep.mubr.f32.mxu1 %v5459_v62 }
 0x5bb   :  { %3452 = vmatprep.subr.mxu0 %v5459_v62  ;;  %3474 = vmatprep.mubr.msk.f32.mxu0 %vm3885_vm2, %v5459_v62 }
 0x5bc   :  { %3453 = vmatpush3.msra.mxu0 %v4190_v47 }
 0x5bd   :  { %v819_v0 = vld [vmem:[#allocation5] sm:$0xff]  ;;  %3454 = vmatprep.subr.mxu0 %v5459_v62 }
 0x5be   :  { %1029 = vrot.lane.b32.xlu0 %v819_v0, %s3886_s2  ;;  %3455 = vmatpush3.msra.mxu0 %v4200_v48 }
 0x5bf   :  { %3456 = vmatprep.subr.mxu0 %v5459_v62 }
 0x5c0   :  { %3457 = vmatpush3.msra.mxu0 %v4209_v49 }
 0x5c1   :  { %3458 = vmatprep.subr.mxu0 %v5459_v62 }
 0x5c2   :  { %3459 = vmatpush3.msra.mxu0 %v4218_v50 }
 0x5c3   :  { %3460 = vmatprep.subr.mxu0 %v5459_v62 }
 0x5c4   :  { %3461 = vmatpush3.msra.mxu0 %v4227_v51 }
 0x5c5   :  { %3462 = vmatprep.subr.mxu0 %v5459_v62 }
 0x5c6   :  { %3463 = vmatpush3.msra.mxu0 %v4236_v52 }
 0x5c7   :  { %3464 = vmatprep.subr.mxu0 %v5459_v62 }
 0x5c8   :  { %3465 = vmatpush3.msra.mxu0 %v4245_v53 }
 0x5c9   :  { %3466 = vmatprep.subr.mxu0 %v5459_v62 }
 0x5ca   :  { %3467 = vmatpush3.msra.mxu0 %v4255_v54 }
 0x5cb   :  { %3468 = vmatprep.subr.mxu0 %v5459_v62 }
 0x5cc   :  { %3469 = vmatpush3.msra.mxu0 %v4264_v55 }
 0x5cd   :  { %3470 = vmatprep.subr.mxu0 %v5459_v62 }
 0x5ce   :  { %3471 = vmatpush3.msra.mxu0 %v4273_v56 }
 0x5cf   :  { %3472 = vmatprep.subr.mxu0 %v5459_v62 }
 0x5d0   :  { %3473 = vmatpush3.msra.mxu0 %v4280_v57 }
 0x5d1   :  { %3477 = vmatprep.subr.mxu0 %v5459_v62 }
 0x679   :  { %v1002_v46 = vpop.f32.mrf.mxu0  ;;  %v931_v50 = vpop.f32.mrf.mxu1 }
 0x67a   :  { %v4480_v47 = vadd.f32 %v1002_v46, %v4360_v63  ;;  %v1006_v51 = vadd.f32 %v931_v50, %v4326_v15  ;;  %v1030_v15 = vpop.permute.xlu0 %1029 }
 0x67b   :  { %v3449_v48 = vpop.f32.mrf.mxu0  ;;  %v933_v63 = vpop.f32.mrf.mxu1 }
 0x67c   :  { %3708 = vtanh.f32 %v4480_v47  ;;  %v3132_v52 = vmul.f32 -1.442695, %v1006_v51  ;;  %v1007_v5 = vadd.f32 %v933_v63, %v4329_v18  ;;  %v4499_v18 = vld [vmem:[%s5438_s3 + $0x110] sm:$0xff]  ;;  %v3134_v33 = vmul.f32 -1.442695, %v4480_v47 }
 0x67d   :  { %1132 = vmatprep.subr.mxu1 %v4499_v18 }
 0x67e   :  { %3710 = vpow2.f32 %v3132_v52  ;;  %v3133_v42 = vmul.f32 -1.442695, %v1007_v5  ;;  %1133 = vmatpush1.msra.mxu1 %v4504_v10 }
 0x67f   :  { %1134 = vmatprep.subr.mxu1 %v4509_v12 }
 0x680   :  { %1135 = vmatpush1.msra.mxu1 %v4515_v14 }
 0x681   :  { %1136 = vmatprep.subr.mxu1 %v4521_v16 }
 0x682   :  { %1137 = vmatpush1.msra.mxu1 %v4527_v19 }
 0x683   :  { %1138 = vmatprep.subr.mxu1 %v4533_v21 }
 0x684   :  { %1139 = vmatpush1.msra.mxu1 %v4540_v25 }
 0x685   :  { %1140 = vmatprep.subr.mxu1 %v4547_v26 }
 0x686   :  { %1141 = vmatpush1.msra.mxu1 %v4553_v3 }
 0x687   :  { %1142 = vmatprep.subr.mxu1 %v4559_v27 }
 0x688   :  { %1143 = vmatpush1.msra.mxu1 %v4565_v29 }
 0x689   :  { %v3709_v49 = vpop.eup %3708  ;;  %1144 = vmatprep.subr.mxu1 %v4571_v31 }
 0x68a   :  { %1035 = vrot.lane.b32.xlu1 %v3709_v49, %s3886_s2  ;;  %1145 = vmatpush1.msra.mxu1 %v4577_v32 }
 0x68b   :  { %v3711_v53 = vpop.eup %3710  ;;  %1146 = vmatprep.subr.mxu1 %v4586_v38 }
 0x68c   :  { %v1018_v54 = vadd.f32 1.0, %v3711_v53  ;;  %1147 = vmatpush1.msra.mxu1 %v4592_v39 }
 0x68d   :  { %1148 = vmatprep.subr.mxu1 %v4598_v40 }
 0x68e   :  { %3712 = vrcp.f32 %v1018_v54  ;;  %1149 = vmatpush1.msra.mxu1 %v4604_v7 }
 0x68f   :  { %3714 = vpow2.f32 %v3133_v42  ;;  %1150 = vmatprep.subr.mxu1 %v4610_v1 }
 0x690   :  { %1151 = vmatpush1.msra.mxu1 %v4616_v11 }
 0x691   :  { %1152 = vmatprep.subr.mxu1 %v4622_v13 }
 0x692   :  { %1153 = vmatpush1.msra.mxu1 %v4628_v9 }
 0x693   :  { %1154 = vmatprep.subr.mxu1 %v4633_v2 }
 0x694   :  { %1155 = vmatpush1.msra.mxu1 %v4638_v17 }
 0x695   :  { %1392 = vmatprep.subr.mxu1 %v4499_v18 }
 0x69b   :  { %v3713_v55 = vpop.eup %3712 }
 0x69c   :  { %v3715_v28 = vpop.eup %3714  ;;  %v1032_v58 = vmul.f32 %v3713_v55, %v1030_v15 }
 0x69d   :  { %v1019_v36 = vadd.f32 1.0, %v3715_v28 }
 0x69f   :  { %3716 = vrcp.f32 %v1019_v36 }
 0x6ac   :  { %v4487_v43 = vpop.eup %3716 }
 0x6ad   :  { %v1033_v59 = vmul.f32 %v4487_v43, %v1030_v15 }
 0x6fc   :  { %v1036_v56 = vpop.permute.xlu1 %1035 }
 0x6fd   :  { %v1038_v57 = vmul.f32 %v3713_v55, %v1036_v56 }
 0x6ff   :  { %1040 = vrot.lane.b32.xlu1 %v1038_v57, %s3886_s2 }
 0x771   :  { %v1041_v4 = vpop.permute.xlu1 %1040 }
 0x772   :  { %v4490_v6 = vadd.f32 %v1041_v4, %v1032_v58  ;;  %v4492_v8 = vadd.f32 %v1041_v4, %v1033_v59 }
 0x774   :  { %3718 = vtanh.f32 %v4490_v6 }
 0x775   :  { %3720 = vtanh.f32 %v4492_v8 }
 0x776   :  { %3722 = vpow2.f32 %v3134_v33 }
 0x781   :  { %v3719_v20 = vpop.eup %3718 }
 0x782   :  { %v3721_v23 = vpop.eup %3720  ;;  %1049 = vrot.lane.b32.xlu0 %v3719_v20, %s3886_s2 }
 0x783   :  { %1051 = vrot.lane.b32.xlu1 %v3721_v23, %s3886_s2  ;;  %v3723_v35 = vpop.eup %3722 }
 0x784   :  { %v1020_v37 = vadd.f32 1.0, %v3723_v35 }
 0x786   :  { %3724 = vrcp.f32 %v1020_v37 }
 0x793   :  { %v3725_v34 = vpop.eup %3724 }
 0x7f4   :  { %v1050_v61 = vpop.permute.xlu0 %1049 }
 0x7f5   :  { %v1052_v45 = vpop.permute.xlu1 %1051 }
 0x7f6   :  { %v1057_v44 = vmul.f32 %v3725_v34, %v1052_v45  ;;  %v1053_v0 = vsel %vm27_vm0, %v1050_v61, %v1052_v45  ;;  %v4695_v45 = vld [vmem:[%s5438_s3 + $0x118] sm:$0xff] }
 0x7f7   :  { %v1056_v46 = vmul.f32 %v4487_v43, %v1053_v0 }
 0x7f8   :  { %1062 = vrot.lane.b32.xlu1 %v1057_v44, %s3888_s13  ;;  %v4707_v44 = vld [vmem:[%s5438_s3 + $0xe8] sm:$0xff] }
 0x7f9   :  { %1060 = vrot.lane.b32.xlu0 %v1056_v46, %s3888_s13  ;;  %v4714_v46 = vld [vmem:[%s5438_s3 + $0xd0] sm:$0xff] }
 0x7fc   :  { %1071 = vrot.lane.b32.xlu1 %v4492_v8, %s3887_s12 }
 0x7fd   :  { %1069 = vrot.lane.b32.xlu0 %v4490_v6, %s3887_s12 }
 0x86a   :  { %v1063_v47 = vpop.permute.xlu1 %1062 }
 0x86b   :  { %v1061_v48 = vpop.permute.xlu0 %1060 }
 0x86c   :  { %v1064_v49 = vsel %vm807_vm3, %v1061_v48, %v1063_v47  ;;  %v4723_v48 = vld [vmem:[%s5438_s3 + $0xb8] sm:$0xff] }
 0x86d   :  { %1066 = vst.msk [vmem:[#allocation4] sm:$0xff] %vm27_vm0, %v1064_v49  ;;  %1076 = vst.msk [vmem:[#allocation3] sm:$0xff] %vm27_vm0, %v1064_v49  ;;  %v4730_v49 = vld [vmem:[%s5438_s3 + $0xa0] sm:$0xff] }
 0x86e   :  { %v1072_v50 = vpop.permute.xlu1 %1071 }
 0x86f   :  { %v1070_v51 = vpop.permute.xlu0 %1069 }
 0x870   :  { %v1073_v52 = vsel %vm67_vm1, %v1070_v51, %v1072_v50  ;;  %v4737_v50 = vld [vmem:[%s5438_s3 + $0x88] sm:$0xff] }
 0x871   :  { %1075 = vst.msk [vmem:[#allocation5] sm:$0xff] %vm27_vm0, %v1073_v52 }
 0x874   :  { %v1077_v53 = vld [vmem:[#allocation4] sm:$0xff] }
 0x875   :  { %3135 = vmatmul.mubr.msk.f32.vlgmr.msra.gmra.mxu1 %vm27_vm0, %v1077_v53  ;;  %3475 = vmatmul.mubr.msk.f32.vlgmr.msra.gmra.mxu0 %vm27_vm0, %v1077_v53 }
 0x876   :  { %1393 = vmatpush1.msra.mxu1 %v4504_v10  ;;  %1448 = vmatprep.mubr.f32.mxu1 %v5459_v62 }
 0x877   :  { %1394 = vmatprep.subr.mxu1 %v4509_v12  ;;  %3501 = vmatprep.mubr.msk.f32.mxu0 %vm3885_vm2, %v5459_v62 }
 0x878   :  { %v1078_v54 = vld [vmem:[#allocation5] sm:$0xff]  ;;  %1395 = vmatpush1.msra.mxu1 %v4515_v14  ;;  %3478 = vmatpush3.msra.mxu0 %v4695_v45 }
 0x879   :  { %1288 = vrot.lane.b32.xlu1 %v1078_v54, %s3886_s2  ;;  %1396 = vmatprep.subr.mxu1 %v4521_v16  ;;  %v4746_v54 = vld [vmem:[%s5438_s3 + $0x70] sm:$0xff] }
 0x87a   :  { %1397 = vmatpush1.msra.mxu1 %v4527_v19  ;;  %3479 = vmatprep.subr.mxu0 %v5459_v62 }
 0x87b   :  { %1398 = vmatprep.subr.mxu1 %v4533_v21 }
 0x87c   :  { %1399 = vmatpush1.msra.mxu1 %v4540_v25 }
 0x87d   :  { %1400 = vmatprep.subr.mxu1 %v4547_v26 }
 0x87e   :  { %1401 = vmatpush1.msra.mxu1 %v4553_v3 }
 0x87f   :  { %1402 = vmatprep.subr.mxu1 %v4559_v27 }
 0x880   :  { %1403 = vmatpush1.msra.mxu1 %v4565_v29 }
 0x881   :  { %1404 = vmatprep.subr.mxu1 %v4571_v31 }
 0x882   :  { %1405 = vmatpush1.msra.mxu1 %v4577_v32 }
 0x883   :  { %1406 = vmatprep.subr.mxu1 %v4586_v38 }
 0x884   :  { %1407 = vmatpush1.msra.mxu1 %v4592_v39 }
 0x885   :  { %1408 = vmatprep.subr.mxu1 %v4598_v40 }
 0x886   :  { %1409 = vmatpush1.msra.mxu1 %v4604_v7 }
 0x887   :  { %1410 = vmatprep.subr.mxu1 %v4610_v1 }
 0x888   :  { %1411 = vmatpush1.msra.mxu1 %v4616_v11 }
 0x889   :  { %1412 = vmatprep.subr.mxu1 %v4622_v13 }
 0x88a   :  { %1413 = vmatpush1.msra.mxu1 %v4628_v9 }
 0x88b   :  { %1414 = vmatprep.subr.mxu1 %v4633_v2 }
 0x88c   :  { %1415 = vmatpush1.msra.mxu1 %v4638_v17 }
 0x88d   :  { %1652 = vmatprep.subr.mxu1 %v4499_v18 }
 0x935   :  { %v1261_v55 = vpop.f32.mrf.mxu0  ;;  %v1190_v5 = vpop.f32.mrf.mxu1 }
 0x936   :  { %v1267_v56 = vadd.f32 %v1261_v55, %v4358_v60  ;;  %v1265_v42 = vadd.f32 %v1190_v5, %v4331_v24  ;;  %v1289_v24 = vpop.permute.xlu1 %1288  ;;  %v4753_v55 = vld [vmem:[%s5438_s3 + $0x58] sm:$0xff] }
 0x937   :  { %v3476_v57 = vpop.f32.mrf.mxu0  ;;  %v1192_v4 = vpop.f32.mrf.mxu1 }
 0x938   :  { %3726 = vtanh.f32 %v1267_v56  ;;  %v3137_v28 = vmul.f32 -1.442695, %v1265_v42  ;;  %v1266_v60 = vadd.f32 %v1192_v4, %v4334_v30  ;;  %v4700_v30 = vld [vmem:[%s5438_s3 + $0x100] sm:$0xff]  ;;  %v3139_v51 = vmul.f32 -1.442695, %v1267_v56  ;;  %v4767_v57 = vld [vmem:[%s5438_s3 + $0x28] sm:$0xff] }
 0x939   :  { %3480 = vmatpush3.msra.mxu0 %v4700_v30  ;;  %v4760_v56 = vld [vmem:[%s5438_s3 + $0x40] sm:$0xff] }
 0x93a   :  { %3728 = vpow2.f32 %v3137_v28  ;;  %v3138_v6 = vmul.f32 -1.442695, %v1266_v60  ;;  %3481 = vmatprep.subr.mxu0 %v5459_v62 }
 0x93b   :  { %3482 = vmatpush3.msra.mxu0 %v4707_v44 }
 0x93c   :  { %3483 = vmatprep.subr.mxu0 %v5459_v62 }
 0x93d   :  { %3484 = vmatpush3.msra.mxu0 %v4714_v46 }
 0x93e   :  { %3485 = vmatprep.subr.mxu0 %v5459_v62 }
 0x93f   :  { %3486 = vmatpush3.msra.mxu0 %v4723_v48 }
 0x940   :  { %3487 = vmatprep.subr.mxu0 %v5459_v62 }
 0x941   :  { %3488 = vmatpush3.msra.mxu0 %v4730_v49 }
 0x942   :  { %3489 = vmatprep.subr.mxu0 %v5459_v62 }
 0x943   :  { %3490 = vmatpush3.msra.mxu0 %v4737_v50 }
 0x944   :  { %3491 = vmatprep.subr.mxu0 %v5459_v62 }
 0x945   :  { %v3727_v63 = vpop.eup %3726  ;;  %3492 = vmatpush3.msra.mxu0 %v4746_v54 }
 0x946   :  { %1294 = vrot.lane.b32.xlu0 %v3727_v63, %s3886_s2  ;;  %3493 = vmatprep.subr.mxu0 %v5459_v62  ;;  %v4772_v63 = vld [vmem:[%s5438_s3 + $0x10] sm:$0xff] }
 0x947   :  { %v3729_v36 = vpop.eup %3728  ;;  %3494 = vmatpush3.msra.mxu0 %v4753_v55 }
 0x948   :  { %v1277_v43 = vadd.f32 1.0, %v3729_v36  ;;  %3495 = vmatprep.subr.mxu0 %v5459_v62 }
 0x949   :  { %3496 = vmatpush3.msra.mxu0 %v4760_v56 }
 0x94a   :  { %3730 = vrcp.f32 %v1277_v43  ;;  %3497 = vmatprep.subr.mxu0 %v5459_v62 }
 0x94b   :  { %3732 = vpow2.f32 %v3138_v6  ;;  %3498 = vmatpush3.msra.mxu0 %v4767_v57 }
 0x94c   :  { %3499 = vmatprep.subr.mxu0 %v5459_v62 }
 0x94d   :  { %3500 = vmatpush3.msra.mxu0 %v4772_v63 }
 0x94e   :  { %3504 = vmatprep.subr.mxu0 %v5459_v62 }
 0x957   :  { %v3731_v15 = vpop.eup %3730 }
 0x958   :  { %v3733_v8 = vpop.eup %3732  ;;  %v1291_v33 = vmul.f32 %v3731_v15, %v1289_v24 }
 0x959   :  { %v1278_v20 = vadd.f32 1.0, %v3733_v8 }
 0x95b   :  { %3734 = vrcp.f32 %v1278_v20 }
 0x968   :  { %v3735_v23 = vpop.eup %3734 }
 0x969   :  { %v1292_v35 = vmul.f32 %v3735_v23, %v1289_v24 }
 0x9b8   :  { %v1295_v58 = vpop.permute.xlu0 %1294 }
 0x9b9   :  { %v1297_v59 = vmul.f32 %v3731_v15, %v1295_v58 }
 0x9bb   :  { %1299 = vrot.lane.b32.xlu0 %v1297_v59, %s3886_s2 }
 0xa2d   :  { %v1300_v37 = vpop.permute.xlu0 %1299 }
 0xa2e   :  { %v1302_v61 = vadd.f32 %v1300_v37, %v1291_v33  ;;  %v1303_v34 = vadd.f32 %v1300_v37, %v1292_v35 }
 0xa30   :  { %3736 = vtanh.f32 %v1302_v61 }
 0xa31   :  { %3738 = vtanh.f32 %v1303_v34 }
 0xa32   :  { %3740 = vpow2.f32 %v3139_v51 }
 0xa3d   :  { %v3737_v0 = vpop.eup %3736 }
 0xa3e   :  { %v3739_v47 = vpop.eup %3738  ;;  %1308 = vrot.lane.b32.xlu1 %v3737_v0, %s3886_s2 }
 0xa3f   :  { %1310 = vrot.lane.b32.xlu0 %v3739_v47, %s3886_s2  ;;  %v3741_v52 = vpop.eup %3740 }
 0xa40   :  { %v1279_v53 = vadd.f32 1.0, %v3741_v52 }
 0xa42   :  { %3742 = vrcp.f32 %v1279_v53 }
 0xa4f   :  { %v3743_v42 = vpop.eup %3742 }
 0xab0   :  { %v1309_v5 = vpop.permute.xlu1 %1308 }
 0xab1   :  { %v1311_v28 = vpop.permute.xlu0 %1310 }
 0xab2   :  { %v1316_v36 = vmul.f32 %v3743_v42, %v1311_v28  ;;  %v1312_v43 = vsel %vm27_vm0, %v1309_v5, %v1311_v28 }
 0xab3   :  { %v1315_v15 = vmul.f32 %v3735_v23, %v1312_v43 }
 0xab4   :  { %1321 = vrot.lane.b32.xlu0 %v1316_v36, %s3888_s13 }
 0xab5   :  { %1319 = vrot.lane.b32.xlu1 %v1315_v15, %s3888_s13 }
 0xab8   :  { %1330 = vrot.lane.b32.xlu0 %v1303_v34, %s3887_s12  ;;  %v5460_v34 = vld [vmem:[#allocation6_spill] sm:$0xff] }
 0xab9   :  { %1328 = vrot.lane.b32.xlu1 %v1302_v61, %s3887_s12 }
 0xb26   :  { %v1322_v58 = vpop.permute.xlu0 %1321 }
 0xb27   :  { %v1320_v59 = vpop.permute.xlu1 %1319 }
 0xb28   :  { %v1323_v4 = vsel %vm807_vm3, %v1320_v59, %v1322_v58 }
 0xb29   :  { %1325 = vst.msk [vmem:[#allocation4] sm:$0xff] %vm27_vm0, %v1323_v4  ;;  %1336 = vst.msk [vmem:[#allocation3 + $0x8] sm:$0xff] %vm27_vm0, %v1323_v4 }
 0xb2a   :  { %v1331_v60 = vpop.permute.xlu0 %1330 }
 0xb2b   :  { %v1329_v6 = vpop.permute.xlu1 %1328 }
 0xb2c   :  { %v1332_v8 = vsel %vm67_vm1, %v1329_v6, %v1331_v60 }
 0xb2d   :  { %1334 = vst.msk [vmem:[#allocation5] sm:$0xff] %vm27_vm0, %v1332_v8 }
 0xb30   :  { %v1337_v20 = vld [vmem:[#allocation4] sm:$0xff] }
 0xb31   :  { %3140 = vmatmul.mubr.msk.f32.vlgmr.msra.gmra.mxu1 %vm27_vm0, %v1337_v20  ;;  %3502 = vmatmul.mubr.msk.f32.vlgmr.msra.gmra.mxu0 %vm27_vm0, %v1337_v20 }
 0xb32   :  { %1653 = vmatpush1.msra.mxu1 %v4504_v10  ;;  %3505 = vmatpush3.msra.mxu0 %v4695_v45 }
 0xb33   :  { %1654 = vmatprep.subr.mxu1 %v4509_v12  ;;  %3506 = vmatprep.subr.mxu0 %v5459_v62 }
 0xb34   :  { %v1338_v23 = vld [vmem:[#allocation5] sm:$0xff]  ;;  %1655 = vmatpush1.msra.mxu1 %v4515_v14  ;;  %3507 = vmatpush3.msra.mxu0 %v4700_v30 }
 0xb35   :  { %1548 = vrot.lane.b32.xlu0 %v1338_v23, %s3886_s2  ;;  %1656 = vmatprep.subr.mxu1 %v4521_v16 }
 0xb36   :  { %3508 = vmatprep.subr.mxu0 %v5459_v62  ;;  %1657 = vmatpush1.msra.mxu1 %v4527_v19 }
 0xb37   :  { %3509 = vmatpush3.msra.mxu0 %v4707_v44  ;;  %1658 = vmatprep.subr.mxu1 %v4533_v21 }
 0xb38   :  { %3510 = vmatprep.subr.mxu0 %v5459_v62  ;;  %1659 = vmatpush1.msra.mxu1 %v4540_v25 }
 0xb39   :  { %3511 = vmatpush3.msra.mxu0 %v4714_v46  ;;  %1660 = vmatprep.subr.mxu1 %v4547_v26 }
 0xb3a   :  { %3512 = vmatprep.subr.mxu0 %v5459_v62  ;;  %1661 = vmatpush1.msra.mxu1 %v4553_v3 }
 0xb3b   :  { %3513 = vmatpush3.msra.mxu0 %v4723_v48  ;;  %1662 = vmatprep.subr.mxu1 %v4559_v27 }
 0xb3c   :  { %3514 = vmatprep.subr.mxu0 %v5459_v62  ;;  %1663 = vmatpush1.msra.mxu1 %v4565_v29 }
 0xb3d   :  { %3515 = vmatpush3.msra.mxu0 %v4730_v49  ;;  %1664 = vmatprep.subr.mxu1 %v4571_v31 }
 0xb3e   :  { %3516 = vmatprep.subr.mxu0 %v5459_v62  ;;  %1665 = vmatpush1.msra.mxu1 %v4577_v32 }
 0xb3f   :  { %3517 = vmatpush3.msra.mxu0 %v4737_v50  ;;  %1666 = vmatprep.subr.mxu1 %v4586_v38 }
 0xb40   :  { %3518 = vmatprep.subr.mxu0 %v5459_v62  ;;  %1667 = vmatpush1.msra.mxu1 %v4592_v39 }
 0xb41   :  { %3519 = vmatpush3.msra.mxu0 %v4746_v54  ;;  %1668 = vmatprep.subr.mxu1 %v4598_v40 }
 0xb42   :  { %3520 = vmatprep.subr.mxu0 %v5459_v62  ;;  %1669 = vmatpush1.msra.mxu1 %v4604_v7 }
 0xb43   :  { %3521 = vmatpush3.msra.mxu0 %v4753_v55  ;;  %1670 = vmatprep.subr.mxu1 %v4610_v1 }
 0xb44   :  { %3522 = vmatprep.subr.mxu0 %v5459_v62  ;;  %1671 = vmatpush1.msra.mxu1 %v4616_v11 }
 0xb45   :  { %3523 = vmatpush3.msra.mxu0 %v4760_v56  ;;  %1672 = vmatprep.subr.mxu1 %v4622_v13 }
 0xb46   :  { %3524 = vmatprep.subr.mxu0 %v5459_v62  ;;  %1673 = vmatpush1.msra.mxu1 %v4628_v9 }
 0xb47   :  { %3525 = vmatpush3.msra.mxu0 %v4767_v57  ;;  %1674 = vmatprep.subr.mxu1 %v4633_v2 }
 0xb48   :  { %3526 = vmatprep.subr.mxu0 %v5459_v62  ;;  %1675 = vmatpush1.msra.mxu1 %v4638_v17 }
 0xb49   :  { %1708 = vmatprep.mubr.f32.mxu1 %v5459_v62  ;;  %3527 = vmatpush3.msra.mxu0 %v4772_v63 }
 0xb4a   :  { %3528 = vmatprep.mubr.msk.f32.mxu0 %vm3885_vm2, %v5459_v62  ;;  %1912 = vmatprep.subr.mxu1 %v4499_v18 }
 0xb4b   :  { %3531 = vmatprep.subr.mxu0 %v5459_v62 }
 0xba7   :  { %v1549_v59 = vpop.permute.xlu0 %1548 }
 0xbf1   :  { %v1521_v24 = vpop.f32.mrf.mxu0  ;;  %v1450_v61 = vpop.f32.mrf.mxu1 }
 0xbf2   :  { %v1527_v33 = vadd.f32 %v1521_v24, %v4364_v22  ;;  %v1525_v0 = vadd.f32 %v1450_v61, %v5460_v34  ;;  %v5461_v22 = vld [vmem:[#allocation7_spill] sm:$0xff] }
 0xbf3   :  { %v3503_v35 = vpop.f32.mrf.mxu0  ;;  %v1452_v42 = vpop.f32.mrf.mxu1 }
 0xbf4   :  { %3744 = vtanh.f32 %v1527_v33  ;;  %v3142_v47 = vmul.f32 -1.442695, %v1525_v0  ;;  %v1526_v28 = vadd.f32 %v1452_v42, %v5461_v22  ;;  %v3144_v35 = vmul.f32 -1.442695, %v1527_v33 }
 0xbf6   :  { %3746 = vpow2.f32 %v3142_v47  ;;  %v3143_v36 = vmul.f32 -1.442695, %v1526_v28 }
 0xc01   :  { %v3745_v37 = vpop.eup %3744 }
 0xc02   :  { %1554 = vrot.lane.b32.xlu1 %v3745_v37, %s3886_s2 }
 0xc03   :  { %v3747_v51 = vpop.eup %3746 }
 0xc04   :  { %v1537_v52 = vadd.f32 1.0, %v3747_v51 }
 0xc06   :  { %3748 = vrcp.f32 %v1537_v52 }
 0xc07   :  { %3750 = vpow2.f32 %v3143_v36 }
 0xc13   :  { %v3749_v53 = vpop.eup %3748 }
 0xc14   :  { %v3751_v43 = vpop.eup %3750  ;;  %v1551_v4 = vmul.f32 %v3749_v53, %v1549_v59 }
 0xc15   :  { %v1538_v15 = vadd.f32 1.0, %v3751_v43 }
 0xc17   :  { %3752 = vrcp.f32 %v1538_v15 }
 0xc24   :  { %v3753_v58 = vpop.eup %3752 }
 0xc25   :  { %v1552_v60 = vmul.f32 %v3753_v58, %v1549_v59 }
 0xc74   :  { %v1555_v18 = vpop.permute.xlu1 %1554 }
 0xc75   :  { %v1557_v5 = vmul.f32 %v3749_v53, %v1555_v18 }
 0xc77   :  { %1559 = vrot.lane.b32.xlu1 %v1557_v5, %s3886_s2 }
 0xce9   :  { %v1560_v6 = vpop.permute.xlu1 %1559 }
 0xcea   :  { %v1562_v8 = vadd.f32 %v1560_v6, %v1551_v4  ;;  %v1563_v20 = vadd.f32 %v1560_v6, %v1552_v60 }
 0xcec   :  { %3754 = vtanh.f32 %v1562_v8 }
 0xced   :  { %3756 = vtanh.f32 %v1563_v20 }
 0xcee   :  { %3758 = vpow2.f32 %v3144_v35 }
 0xcf9   :  { %v3755_v23 = vpop.eup %3754 }
 0xcfa   :  { %v3757_v24 = vpop.eup %3756  ;;  %1568 = vrot.lane.b32.xlu0 %v3755_v23, %s3886_s2 }
 0xcfb   :  { %1570 = vrot.lane.b32.xlu1 %v3757_v24, %s3886_s2  ;;  %v3759_v37 = vpop.eup %3758 }
 0xcfc   :  { %v1539_v61 = vadd.f32 1.0, %v3759_v37 }
 0xcfe   :  { %3760 = vrcp.f32 %v1539_v61 }
 0xd0b   :  { %v3761_v0 = vpop.eup %3760 }
 0xd6c   :  { %v1569_v34 = vpop.permute.xlu0 %1568 }
 0xd6d   :  { %v1571_v47 = vpop.permute.xlu1 %1570 }
 0xd6e   :  { %v1576_v51 = vmul.f32 %v3761_v0, %v1571_v47  ;;  %v1572_v52 = vsel %vm27_vm0, %v1569_v34, %v1571_v47 }
 0xd6f   :  { %v1575_v53 = vmul.f32 %v3753_v58, %v1572_v52 }
 0xd70   :  { %1581 = vrot.lane.b32.xlu1 %v1576_v51, %s3888_s13 }
 0xd71   :  { %1579 = vrot.lane.b32.xlu0 %v1575_v53, %s3888_s13 }
 0xd74   :  { %1590 = vrot.lane.b32.xlu1 %v1563_v20, %s3887_s12 }
 0xd75   :  { %1588 = vrot.lane.b32.xlu0 %v1562_v8, %s3887_s12 }
 0xde2   :  { %v1582_v33 = vpop.permute.xlu1 %1581 }
 0xde3   :  { %v1580_v18 = vpop.permute.xlu0 %1579 }
 0xde4   :  { %v1583_v5 = vsel %vm807_vm3, %v1580_v18, %v1582_v33 }
 0xde5   :  { %1585 = vst.msk [vmem:[#allocation4] sm:$0xff] %vm27_vm0, %v1583_v5  ;;  %1596 = vst.msk [vmem:[#allocation3 + $0x10] sm:$0xff] %vm27_vm0, %v1583_v5 }
 0xde6   :  { %v1591_v42 = vpop.permute.xlu1 %1590 }
 0xde7   :  { %v1589_v22 = vpop.permute.xlu0 %1588 }
 0xde8   :  { %v1592_v28 = vsel %vm67_vm1, %v1589_v22, %v1591_v42 }
 0xde9   :  { %1594 = vst.msk [vmem:[#allocation5] sm:$0xff] %vm27_vm0, %v1592_v28  ;;  %v5466_v28 = vld [vmem:[#allocation11_spill] sm:$0xff] }
 0xdec   :  { %v1597_v36 = vld [vmem:[#allocation4] sm:$0xff] }
 0xded   :  { %3145 = vmatmul.mubr.msk.f32.vlgmr.msra.gmra.mxu1 %vm27_vm0, %v1597_v36  ;;  %3529 = vmatmul.mubr.msk.f32.vlgmr.msra.gmra.mxu0 %vm27_vm0, %v1597_v36 }
 0xdee   :  { %1913 = vmatpush1.msra.mxu1 %v4504_v10  ;;  %3532 = vmatpush3.msra.mxu0 %v4695_v45 }
 0xdef   :  { %1914 = vmatprep.subr.mxu1 %v4509_v12  ;;  %3533 = vmatprep.subr.mxu0 %v5459_v62  ;;  %v5462_v12 = vld [vmem:[#allocation14_spill] sm:$0xff] }
 0xdf0   :  { %v1598_v43 = vld [vmem:[#allocation5] sm:$0xff]  ;;  %1915 = vmatpush1.msra.mxu1 %v4515_v14  ;;  %3534 = vmatpush3.msra.mxu0 %v4700_v30 }
 0xdf1   :  { %1808 = vrot.lane.b32.xlu1 %v1598_v43, %s3886_s2  ;;  %1916 = vmatprep.subr.mxu1 %v4521_v16 }
 0xdf2   :  { %3535 = vmatprep.subr.mxu0 %v5459_v62  ;;  %1917 = vmatpush1.msra.mxu1 %v4527_v19 }
 0xdf3   :  { %3536 = vmatpush3.msra.mxu0 %v4707_v44  ;;  %1918 = vmatprep.subr.mxu1 %v4533_v21 }
 0xdf4   :  { %3537 = vmatprep.subr.mxu0 %v5459_v62  ;;  %1919 = vmatpush1.msra.mxu1 %v4540_v25  ;;  %v5463_v25 = vld [vmem:[#allocation8_spill] sm:$0xff] }
 0xdf5   :  { %3538 = vmatpush3.msra.mxu0 %v4714_v46  ;;  %1920 = vmatprep.subr.mxu1 %v4547_v26 }
 0xdf6   :  { %3539 = vmatprep.subr.mxu0 %v5459_v62  ;;  %1921 = vmatpush1.msra.mxu1 %v4553_v3 }
 0xdf7   :  { %3540 = vmatpush3.msra.mxu0 %v4723_v48  ;;  %1922 = vmatprep.subr.mxu1 %v4559_v27 }
 0xdf8   :  { %3541 = vmatprep.subr.mxu0 %v5459_v62  ;;  %1923 = vmatpush1.msra.mxu1 %v4565_v29 }
 0xdf9   :  { %3542 = vmatpush3.msra.mxu0 %v4730_v49  ;;  %1924 = vmatprep.subr.mxu1 %v4571_v31 }
 0xdfa   :  { %3543 = vmatprep.subr.mxu0 %v5459_v62  ;;  %1925 = vmatpush1.msra.mxu1 %v4577_v32 }
 0xdfb   :  { %3544 = vmatpush3.msra.mxu0 %v4737_v50  ;;  %1926 = vmatprep.subr.mxu1 %v4586_v38 }
 0xdfc   :  { %3545 = vmatprep.subr.mxu0 %v5459_v62  ;;  %1927 = vmatpush1.msra.mxu1 %v4592_v39 }
 0xdfd   :  { %3546 = vmatpush3.msra.mxu0 %v4746_v54  ;;  %1928 = vmatprep.subr.mxu1 %v4598_v40  ;;  %v5464_v40 = vld [vmem:[#allocation9_spill] sm:$0xff] }
 0xdfe   :  { %3547 = vmatprep.subr.mxu0 %v5459_v62  ;;  %1929 = vmatpush1.msra.mxu1 %v4604_v7 }
 0xdff   :  { %3548 = vmatpush3.msra.mxu0 %v4753_v55  ;;  %1930 = vmatprep.subr.mxu1 %v4610_v1 }
 0xe00   :  { %3549 = vmatprep.subr.mxu0 %v5459_v62  ;;  %1931 = vmatpush1.msra.mxu1 %v4616_v11 }
 0xe01   :  { %3550 = vmatpush3.msra.mxu0 %v4760_v56  ;;  %1932 = vmatprep.subr.mxu1 %v4622_v13 }
 0xe02   :  { %3551 = vmatprep.subr.mxu0 %v5459_v62  ;;  %1933 = vmatpush1.msra.mxu1 %v4628_v9 }
 0xe03   :  { %3552 = vmatpush3.msra.mxu0 %v4767_v57  ;;  %1934 = vmatprep.subr.mxu1 %v4633_v2 }
 0xe04   :  { %3553 = vmatprep.subr.mxu0 %v5459_v62  ;;  %1935 = vmatpush1.msra.mxu1 %v4638_v17 }
 0xe05   :  { %1968 = vmatprep.mubr.f32.mxu1 %v5459_v62  ;;  %3554 = vmatpush3.msra.mxu0 %v4772_v63 }
 0xe06   :  { %3555 = vmatprep.mubr.msk.f32.mxu0 %vm3885_vm2, %v5459_v62  ;;  %3558 = vmatprep.subr.mxu0 %v5459_v62 }
 0xe63   :  { %v1809_v2 = vpop.permute.xlu1 %1808 }
 0xead   :  { %v1781_v10 = vpop.f32.mrf.mxu0  ;;  %v1710_v21 = vpop.f32.mrf.mxu1 }
 0xeae   :  { %v1787_v14 = vadd.f32 %v1781_v10, %v5462_v12  ;;  %v1785_v26 = vadd.f32 %v1710_v21, %v5463_v25 }
 0xeaf   :  { %v3530_v16 = vpop.f32.mrf.mxu0  ;;  %v1712_v39 = vpop.f32.mrf.mxu1 }
 0xeb0   :  { %3762 = vtanh.f32 %v1787_v14  ;;  %v3147_v3 = vmul.f32 -1.442695, %v1785_v26  ;;  %v1786_v7 = vadd.f32 %v1712_v39, %v5464_v40  ;;  %v3149_v8 = vmul.f32 -1.442695, %v1787_v14  ;;  %v5007_v39 = vld [vmem:[%s5438_s3 + $0xd8] sm:$0xff] }
 0xeb2   :  { %3764 = vpow2.f32 %v3147_v3  ;;  %v3148_v1 = vmul.f32 -1.442695, %v1786_v7  ;;  %v5013_v7 = vld [vmem:[%s5438_s3 + $0xc8] sm:$0xff] }
 0xebd   :  { %v3763_v19 = vpop.eup %3762 }
 0xebe   :  { %1814 = vrot.lane.b32.xlu0 %v3763_v19, %s3886_s2 }
 0xebf   :  { %v3765_v27 = vpop.eup %3764 }
 0xec0   :  { %v1797_v29 = vadd.f32 1.0, %v3765_v27  ;;  %v4979_v27 = vld [vmem:[%s5438_s3 + $0x110] sm:$0xff] }
 0xec1   :  { %2172 = vmatprep.subr.mxu1 %v4979_v27 }
 0xec2   :  { %3766 = vrcp.f32 %v1797_v29  ;;  %v4984_v29 = vld [vmem:[%s5438_s3 + $0x108] sm:$0xff] }
 0xec3   :  { %3768 = vpow2.f32 %v3148_v1 }
 0xecf   :  { %v3767_v31 = vpop.eup %3766 }
 0xed0   :  { %v3769_v11 = vpop.eup %3768  ;;  %v1811_v17 = vmul.f32 %v3767_v31, %v1809_v2 }
 0xed1   :  { %v1798_v13 = vadd.f32 1.0, %v3769_v11  ;;  %v5020_v11 = vld [vmem:[%s5438_s3 + $0xc0] sm:$0xff] }
 0xed3   :  { %3770 = vrcp.f32 %v1798_v13  ;;  %v5027_v13 = vld [vmem:[%s5438_s3 + $0xb0] sm:$0xff] }
 0xee0   :  { %v3771_v9 = vpop.eup %3770 }
 0xee1   :  { %v1812_v15 = vmul.f32 %v3771_v9, %v1809_v2  ;;  %v5039_v2 = vld [vmem:[%s5438_s3 + $0x98] sm:$0xff] }
 0xf30   :  { %v1815_v32 = vpop.permute.xlu0 %1814 }
 0xf31   :  { %v1817_v38 = vmul.f32 %v3767_v31, %v1815_v32  ;;  %v4989_v31 = vld [vmem:[%s5438_s3 + $0xf8] sm:$0xff]  ;;  %v4995_v32 = vld [vmem:[%s5438_s3 + $0xf0] sm:$0xff] }
 0xf33   :  { %1819 = vrot.lane.b32.xlu0 %v1817_v38, %s3886_s2  ;;  %v5001_v38 = vld [vmem:[%s5438_s3 + $0xe0] sm:$0xff] }
 0xfa5   :  { %v1820_v58 = vpop.permute.xlu0 %1819 }
 0xfa6   :  { %v1822_v59 = vadd.f32 %v1820_v58, %v1811_v17  ;;  %v1823_v4 = vadd.f32 %v1820_v58, %v1812_v15  ;;  %v5045_v17 = vld [vmem:[%s5438_s3 + $0x90] sm:$0xff]  ;;  %v5051_v15 = vld [vmem:[%s5438_s3 + $0x80] sm:$0xff]  ;;  %v5057_v58 = vld [vmem:[%s5438_s3 + $0x78] sm:$0xff] }
 0xfa8   :  { %3772 = vtanh.f32 %v1822_v59 }
 0xfa9   :  { %3774 = vtanh.f32 %v1823_v4 }
 0xfaa   :  { %3776 = vpow2.f32 %v3149_v8  ;;  %v5072_v8 = vld [vmem:[%s5438_s3 + $0x60] sm:$0xff] }
 0xfb5   :  { %v3773_v60 = vpop.eup %3772 }
 0xfb6   :  { %v3775_v6 = vpop.eup %3774  ;;  %1828 = vrot.lane.b32.xlu1 %v3773_v60, %s3886_s2 }
 0xfb7   :  { %1830 = vrot.lane.b32.xlu0 %v3775_v6, %s3886_s2  ;;  %v3777_v20 = vpop.eup %3776  ;;  %v5066_v6 = vld [vmem:[%s5438_s3 + $0x68] sm:$0xff] }
 0xfb8   :  { %v1799_v23 = vadd.f32 1.0, %v3777_v20  ;;  %v5078_v20 = vld [vmem:[%s5438_s3 + $0x50] sm:$0xff] }
 0xfba   :  { %3778 = vrcp.f32 %v1799_v23  ;;  %v5084_v23 = vld [vmem:[%s5438_s3 + $0x48] sm:$0xff] }
 0xfc7   :  { %v3779_v35 = vpop.eup %3778 }
0x1028   :  { %v1829_v24 = vpop.permute.xlu1 %1828 }
0x1029   :  { %v1831_v37 = vpop.permute.xlu0 %1830 }
0x102a   :  { %v1836_v61 = vmul.f32 %v3779_v35, %v1831_v37  ;;  %v1832_v34 = vsel %vm27_vm0, %v1829_v24, %v1831_v37  ;;  %v5090_v24 = vld [vmem:[%s5438_s3 + $0x38] sm:$0xff]  ;;  %v5096_v35 = vld [vmem:[%s5438_s3 + $0x30] sm:$0xff]  ;;  %v5102_v37 = vld [vmem:[%s5438_s3 + $0x20] sm:$0xff] }
0x102b   :  { %v1835_v0 = vmul.f32 %v3771_v9, %v1832_v34  ;;  %v5033_v9 = vld [vmem:[%s5438_s3 + $0xa8] sm:$0xff] }
0x102c   :  { %1841 = vrot.lane.b32.xlu0 %v1836_v61, %s3888_s13  ;;  %v5108_v61 = vld [vmem:[%s5438_s3 + $0x18] sm:$0xff]  ;;  %v5113_v34 = vld [vmem:[%s5438_s3 + $0x8] sm:$0xff] }
0x102d   :  { %1839 = vrot.lane.b32.xlu1 %v1835_v0, %s3888_s13  ;;  %v5118_v0 = vld [vmem:[%s5438_s3] sm:$0xff] }
0x1030   :  { %1850 = vrot.lane.b32.xlu0 %v1823_v4, %s3887_s12 }
0x1031   :  { %1848 = vrot.lane.b32.xlu1 %v1822_v59, %s3887_s12 }
0x109e   :  { %v1842_v47 = vpop.permute.xlu0 %1841 }
0x109f   :  { %v1840_v51 = vpop.permute.xlu1 %1839 }
0x10a0   :  { %v1843_v52 = vsel %vm807_vm3, %v1840_v51, %v1842_v47 }
0x10a1   :  { %1845 = vst.msk [vmem:[#allocation4] sm:$0xff] %vm27_vm0, %v1843_v52  ;;  %1856 = vst.msk [vmem:[#allocation3 + $0x18] sm:$0xff] %vm27_vm0, %v1843_v52 }
0x10a2   :  { %v1851_v53 = vpop.permute.xlu0 %1850 }
0x10a3   :  { %v1849_v33 = vpop.permute.xlu1 %1848 }
0x10a4   :  { %v1852_v18 = vsel %vm67_vm1, %v1849_v33, %v1851_v53 }
0x10a5   :  { %1854 = vst.msk [vmem:[#allocation5] sm:$0xff] %vm27_vm0, %v1852_v18 }
0x10a8   :  { %v1857_v5 = vld [vmem:[#allocation4] sm:$0xff] }
0x10a9   :  { %3150 = vmatmul.mubr.msk.f32.vlgmr.msra.gmra.mxu1 %vm27_vm0, %v1857_v5  ;;  %3556 = vmatmul.mubr.msk.f32.vlgmr.msra.gmra.mxu0 %vm27_vm0, %v1857_v5 }
0x10aa   :  { %3559 = vmatpush3.msra.mxu0 %v4695_v45  ;;  %2228 = vmatprep.mubr.f32.mxu1 %v5459_v62 }
0x10ab   :  { %3560 = vmatprep.subr.mxu0 %v5459_v62  ;;  %3582 = vmatprep.mubr.msk.f32.mxu0 %vm3885_vm2, %v5459_v62 }
0x10ac   :  { %v1858_v42 = vld [vmem:[#allocation5] sm:$0xff]  ;;  %3561 = vmatpush3.msra.mxu0 %v4700_v30  ;;  %2173 = vmatpush1.msra.mxu1 %v4984_v29 }
0x10ad   :  { %2068 = vrot.lane.b32.xlu0 %v1858_v42, %s3886_s2  ;;  %3562 = vmatprep.subr.mxu0 %v5459_v62 }
0x10ae   :  { %3563 = vmatpush3.msra.mxu0 %v4707_v44  ;;  %2174 = vmatprep.subr.mxu1 %v4989_v31 }
0x10af   :  { %3564 = vmatprep.subr.mxu0 %v5459_v62  ;;  %2175 = vmatpush1.msra.mxu1 %v4995_v32 }
0x10b0   :  { %3565 = vmatpush3.msra.mxu0 %v4714_v46  ;;  %2176 = vmatprep.subr.mxu1 %v5001_v38 }
0x10b1   :  { %3566 = vmatprep.subr.mxu0 %v5459_v62  ;;  %2177 = vmatpush1.msra.mxu1 %v5007_v39 }
0x10b2   :  { %3567 = vmatpush3.msra.mxu0 %v4723_v48  ;;  %2178 = vmatprep.subr.mxu1 %v5013_v7 }
0x10b3   :  { %3568 = vmatprep.subr.mxu0 %v5459_v62  ;;  %2179 = vmatpush1.msra.mxu1 %v5020_v11 }
0x10b4   :  { %3569 = vmatpush3.msra.mxu0 %v4730_v49  ;;  %v5465_v49 = vld [vmem:[#allocation10_spill] sm:$0xff]  ;;  %2180 = vmatprep.subr.mxu1 %v5027_v13 }
0x10b5   :  { %3570 = vmatprep.subr.mxu0 %v5459_v62  ;;  %2181 = vmatpush1.msra.mxu1 %v5033_v9 }
0x10b6   :  { %3571 = vmatpush3.msra.mxu0 %v4737_v50  ;;  %2182 = vmatprep.subr.mxu1 %v5039_v2 }
0x10b7   :  { %3572 = vmatprep.subr.mxu0 %v5459_v62  ;;  %2183 = vmatpush1.msra.mxu1 %v5045_v17 }
0x10b8   :  { %3573 = vmatpush3.msra.mxu0 %v4746_v54  ;;  %2184 = vmatprep.subr.mxu1 %v5051_v15 }
0x10b9   :  { %3574 = vmatprep.subr.mxu0 %v5459_v62  ;;  %2185 = vmatpush1.msra.mxu1 %v5057_v58 }
0x10ba   :  { %3575 = vmatpush3.msra.mxu0 %v4753_v55  ;;  %2186 = vmatprep.subr.mxu1 %v5066_v6 }
0x10bb   :  { %3576 = vmatprep.subr.mxu0 %v5459_v62  ;;  %2187 = vmatpush1.msra.mxu1 %v5072_v8 }
0x10bc   :  { %3577 = vmatpush3.msra.mxu0 %v4760_v56  ;;  %2188 = vmatprep.subr.mxu1 %v5078_v20 }
0x10bd   :  { %3578 = vmatprep.subr.mxu0 %v5459_v62  ;;  %2189 = vmatpush1.msra.mxu1 %v5084_v23 }
0x10be   :  { %3579 = vmatpush3.msra.mxu0 %v4767_v57  ;;  %2190 = vmatprep.subr.mxu1 %v5090_v24 }
0x10bf   :  { %3580 = vmatprep.subr.mxu0 %v5459_v62  ;;  %2191 = vmatpush1.msra.mxu1 %v5096_v35 }
0x10c0   :  { %3581 = vmatpush3.msra.mxu0 %v4772_v63  ;;  %2192 = vmatprep.subr.mxu1 %v5102_v37 }
0x10c1   :  { %3585 = vmatprep.subr.mxu0 %v5459_v62  ;;  %2193 = vmatpush1.msra.mxu1 %v5108_v61 }
0x10c2   :  { %2194 = vmatprep.subr.mxu1 %v5113_v34 }
0x10c3   :  { %2195 = vmatpush1.msra.mxu1 %v5118_v0 }
0x10c4   :  { %2429 = vmatprep.subr.mxu1 %v4979_v27 }
0x111f   :  { %v2069_v16 = vpop.permute.xlu0 %2068 }
0x1169   :  { %v2041_v45 = vpop.f32.mrf.mxu0  ;;  %v1970_v48 = vpop.f32.mrf.mxu1 }
0x116a   :  { %v4960_v30 = vadd.f32 %v2041_v45, %v4368_v41  ;;  %v2045_v50 = vadd.f32 %v1970_v48, %v5465_v49 }
0x116b   :  { %v3557_v44 = vpop.f32.mrf.mxu0  ;;  %v1972_v41 = vpop.f32.mrf.mxu1 }
0x116c   :  { %3780 = vtanh.f32 %v4960_v30  ;;  %v3152_v54 = vmul.f32 -1.442695, %v2045_v50  ;;  %v2046_v36 = vadd.f32 %v1972_v41, %v5466_v28  ;;  %v3154_v59 = vmul.f32 -1.442695, %v4960_v30 }
0x116e   :  { %3782 = vpow2.f32 %v3152_v54  ;;  %v3153_v43 = vmul.f32 -1.442695, %v2046_v36  ;;  %v5467_v54 = vld [vmem:[#allocation15_spill] sm:$0xff] }
0x1179   :  { %v3781_v46 = vpop.eup %3780 }
0x117a   :  { %2074 = vrot.lane.b32.xlu1 %v3781_v46, %s3886_s2 }
0x117b   :  { %v3783_v55 = vpop.eup %3782 }
0x117c   :  { %v2057_v56 = vadd.f32 1.0, %v3783_v55 }
0x117e   :  { %3784 = vrcp.f32 %v2057_v56 }
0x117f   :  { %3786 = vpow2.f32 %v3153_v43 }
0x118b   :  { %v3785_v57 = vpop.eup %3784 }
0x118c   :  { %v3787_v10 = vpop.eup %3786  ;;  %v2071_v19 = vmul.f32 %v3785_v57, %v2069_v16 }
0x118d   :  { %v2058_v12 = vadd.f32 1.0, %v3787_v10 }
0x118f   :  { %3788 = vrcp.f32 %v2058_v12 }
0x119c   :  { %v4967_v14 = vpop.eup %3788 }
0x119d   :  { %v2072_v21 = vmul.f32 %v4967_v14, %v2069_v16 }
0x11ec   :  { %v2075_v63 = vpop.permute.xlu1 %2074 }
0x11ed   :  { %v2077_v22 = vmul.f32 %v3785_v57, %v2075_v63 }
0x11ef   :  { %2079 = vrot.lane.b32.xlu1 %v2077_v22, %s3886_s2  ;;  %v5468_v22 = vld [vmem:[#allocation12_spill] sm:$0xff] }
0x1261   :  { %v2080_v25 = vpop.permute.xlu1 %2079 }
0x1262   :  { %v4970_v26 = vadd.f32 %v2080_v25, %v2071_v19  ;;  %v4972_v3 = vadd.f32 %v2080_v25, %v2072_v21  ;;  %v5469_v19 = vld [vmem:[#allocation13_spill] sm:$0xff] }
0x1264   :  { %3790 = vtanh.f32 %v4970_v26 }
0x1265   :  { %3792 = vtanh.f32 %v4972_v3 }
0x1266   :  { %3794 = vpow2.f32 %v3154_v59 }
0x1271   :  { %v3791_v40 = vpop.eup %3790 }
0x1272   :  { %v3793_v1 = vpop.eup %3792  ;;  %2088 = vrot.lane.b32.xlu0 %v3791_v40, %s3886_s2 }
0x1273   :  { %2090 = vrot.lane.b32.xlu1 %v3793_v1, %s3886_s2  ;;  %v3795_v4 = vpop.eup %3794 }
0x1274   :  { %v2059_v60 = vadd.f32 1.0, %v3795_v4 }
0x1276   :  { %3796 = vrcp.f32 %v2059_v60 }
0x1283   :  { %v3797_v51 = vpop.eup %3796 }
0x12e4   :  { %v2089_v47 = vpop.permute.xlu0 %2088 }
0x12e5   :  { %v2091_v52 = vpop.permute.xlu1 %2090 }
0x12e6   :  { %v2096_v53 = vmul.f32 %v3797_v51, %v2091_v52  ;;  %v2092_v33 = vsel %vm27_vm0, %v2089_v47, %v2091_v52  ;;  %v5175_v51 = vld [vmem:[%s5438_s3 + $0x118] sm:$0xff]  ;;  %v5180_v52 = vld [vmem:[%s5438_s3 + $0x100] sm:$0xff] }
0x12e7   :  { %v2095_v18 = vmul.f32 %v4967_v14, %v2092_v33 }
0x12e8   :  { %2101 = vrot.lane.b32.xlu1 %v2096_v53, %s3888_s13  ;;  %v5187_v53 = vld [vmem:[%s5438_s3 + $0xe8] sm:$0xff] }
0x12e9   :  { %2099 = vrot.lane.b32.xlu0 %v2095_v18, %s3888_s13  ;;  %v5194_v18 = vld [vmem:[%s5438_s3 + $0xd0] sm:$0xff] }
0x12ec   :  { %2110 = vrot.lane.b32.xlu1 %v4972_v3, %s3887_s12 }
0x12ed   :  { %2108 = vrot.lane.b32.xlu0 %v4970_v26, %s3887_s12 }
0x135a   :  { %v2102_v5 = vpop.permute.xlu1 %2101 }
0x135b   :  { %v2100_v42 = vpop.permute.xlu0 %2099 }
0x135c   :  { %v2103_v45 = vsel %vm807_vm3, %v2100_v42, %v2102_v5  ;;  %v5203_v42 = vld [vmem:[%s5438_s3 + $0xb8] sm:$0xff] }
0x135d   :  { %2105 = vst.msk [vmem:[#allocation4] sm:$0xff] %vm27_vm0, %v2103_v45  ;;  %2116 = vst.msk [vmem:[#allocation3 + $0x20] sm:$0xff] %vm27_vm0, %v2103_v45  ;;  %v5210_v45 = vld [vmem:[%s5438_s3 + $0xa0] sm:$0xff] }
0x135e   :  { %v2111_v30 = vpop.permute.xlu1 %2110 }
0x135f   :  { %v2109_v44 = vpop.permute.xlu0 %2108 }
0x1360   :  { %v2112_v46 = vsel %vm67_vm1, %v2109_v44, %v2111_v30  ;;  %v5217_v30 = vld [vmem:[%s5438_s3 + $0x88] sm:$0xff] }
0x1361   :  { %2114 = vst.msk [vmem:[#allocation5] sm:$0xff] %vm27_vm0, %v2112_v46 }
0x1364   :  { %v2117_v48 = vld [vmem:[#allocation4] sm:$0xff] }
0x1365   :  { %3155 = vmatmul.mubr.msk.f32.vlgmr.msra.gmra.mxu1 %vm27_vm0, %v2117_v48  ;;  %3583 = vmatmul.mubr.msk.f32.vlgmr.msra.gmra.mxu0 %vm27_vm0, %v2117_v48 }
0x1366   :  { %2430 = vmatpush1.msra.mxu1 %v4984_v29  ;;  %2485 = vmatprep.mubr.f32.mxu1 %v5459_v62 }
0x1367   :  { %2431 = vmatprep.subr.mxu1 %v4989_v31  ;;  %3609 = vmatprep.mubr.msk.f32.mxu0 %vm3885_vm2, %v5459_v62 }
0x1368   :  { %v2118_v49 = vld [vmem:[#allocation5] sm:$0xff]  ;;  %2432 = vmatpush1.msra.mxu1 %v4995_v32  ;;  %3586 = vmatpush3.msra.mxu0 %v5175_v51 }
0x1369   :  { %2328 = vrot.lane.b32.xlu1 %v2118_v49, %s3886_s2  ;;  %2433 = vmatprep.subr.mxu1 %v5001_v38  ;;  %v5226_v49 = vld [vmem:[%s5438_s3 + $0x70] sm:$0xff] }
0x136a   :  { %2434 = vmatpush1.msra.mxu1 %v5007_v39  ;;  %3587 = vmatprep.subr.mxu0 %v5459_v62 }
0x136b   :  { %2435 = vmatprep.subr.mxu1 %v5013_v7  ;;  %3588 = vmatpush3.msra.mxu0 %v5180_v52 }
0x136c   :  { %2436 = vmatpush1.msra.mxu1 %v5020_v11  ;;  %3589 = vmatprep.subr.mxu0 %v5459_v62 }
0x136d   :  { %2437 = vmatprep.subr.mxu1 %v5027_v13  ;;  %3590 = vmatpush3.msra.mxu0 %v5187_v53 }
0x136e   :  { %2438 = vmatpush1.msra.mxu1 %v5033_v9  ;;  %3591 = vmatprep.subr.mxu0 %v5459_v62 }
0x136f   :  { %2439 = vmatprep.subr.mxu1 %v5039_v2  ;;  %3592 = vmatpush3.msra.mxu0 %v5194_v18 }
0x1370   :  { %2440 = vmatpush1.msra.mxu1 %v5045_v17  ;;  %3593 = vmatprep.subr.mxu0 %v5459_v62 }
0x1371   :  { %2441 = vmatprep.subr.mxu1 %v5051_v15  ;;  %3594 = vmatpush3.msra.mxu0 %v5203_v42 }
0x1372   :  { %2442 = vmatpush1.msra.mxu1 %v5057_v58  ;;  %3595 = vmatprep.subr.mxu0 %v5459_v62 }
0x1373   :  { %2443 = vmatprep.subr.mxu1 %v5066_v6  ;;  %3596 = vmatpush3.msra.mxu0 %v5210_v45 }
0x1374   :  { %2444 = vmatpush1.msra.mxu1 %v5072_v8  ;;  %3597 = vmatprep.subr.mxu0 %v5459_v62 }
0x1375   :  { %2445 = vmatprep.subr.mxu1 %v5078_v20  ;;  %3598 = vmatpush3.msra.mxu0 %v5217_v30 }
0x1376   :  { %2446 = vmatpush1.msra.mxu1 %v5084_v23  ;;  %3599 = vmatprep.subr.mxu0 %v5459_v62 }
0x1377   :  { %2447 = vmatprep.subr.mxu1 %v5090_v24  ;;  %3600 = vmatpush3.msra.mxu0 %v5226_v49 }
0x1378   :  { %2448 = vmatpush1.msra.mxu1 %v5096_v35  ;;  %3601 = vmatprep.subr.mxu0 %v5459_v62 }
0x1379   :  { %2449 = vmatprep.subr.mxu1 %v5102_v37 }
0x137a   :  { %2450 = vmatpush1.msra.mxu1 %v5108_v61 }
0x137b   :  { %2451 = vmatprep.subr.mxu1 %v5113_v34 }
0x137c   :  { %2452 = vmatpush1.msra.mxu1 %v5118_v0 }
0x137d   :  { %2682 = vmatprep.subr.mxu1 %v4979_v27 }
0x13db   :  { %v2329_v40 = vpop.permute.xlu1 %2328 }
0x1425   :  { %v2301_v50 = vpop.f32.mrf.mxu0  ;;  %v2230_v63 = vpop.f32.mrf.mxu1 }
0x1426   :  { %v2307_v55 = vadd.f32 %v2301_v50, %v5467_v54  ;;  %v2305_v41 = vadd.f32 %v2230_v63, %v5468_v22  ;;  %v5233_v50 = vld [vmem:[%s5438_s3 + $0x58] sm:$0xff] }
0x1427   :  { %v3584_v56 = vpop.f32.mrf.mxu0  ;;  %v2232_v16 = vpop.f32.mrf.mxu1  ;;  %3602 = vmatpush3.msra.mxu0 %v5233_v50 }
0x1428   :  { %3798 = vtanh.f32 %v2307_v55  ;;  %v3157_v28 = vmul.f32 -1.442695, %v2305_v41  ;;  %v2306_v21 = vadd.f32 %v2232_v16, %v5469_v19  ;;  %v3159_v44 = vmul.f32 -1.442695, %v2307_v55  ;;  %3603 = vmatprep.subr.mxu0 %v5459_v62  ;;  %v5240_v55 = vld [vmem:[%s5438_s3 + $0x40] sm:$0xff]  ;;  %v5247_v56 = vld [vmem:[%s5438_s3 + $0x28] sm:$0xff] }
0x1429   :  { %3604 = vmatpush3.msra.mxu0 %v5240_v55 }
0x142a   :  { %3800 = vpow2.f32 %v3157_v28  ;;  %v3158_v25 = vmul.f32 -1.442695, %v2306_v21  ;;  %3605 = vmatprep.subr.mxu0 %v5459_v62 }
0x142b   :  { %3606 = vmatpush3.msra.mxu0 %v5247_v56 }
0x142c   :  { %3607 = vmatprep.subr.mxu0 %v5459_v62 }
0x1435   :  { %v3799_v57 = vpop.eup %3798 }
0x1436   :  { %2334 = vrot.lane.b32.xlu0 %v3799_v57, %s3886_s2  ;;  %v5252_v57 = vld [vmem:[%s5438_s3 + $0x10] sm:$0xff] }
0x1437   :  { %v3801_v36 = vpop.eup %3800  ;;  %3608 = vmatpush3.msra.mxu0 %v5252_v57 }
0x1438   :  { %v2317_v43 = vadd.f32 1.0, %v3801_v36  ;;  %3612 = vmatprep.subr.mxu0 %v5459_v62 }
0x143a   :  { %3802 = vrcp.f32 %v2317_v43 }
0x143b   :  { %3804 = vpow2.f32 %v3158_v25 }
0x1447   :  { %v3803_v10 = vpop.eup %3802 }
0x1448   :  { %v3805_v26 = vpop.eup %3804  ;;  %v2331_v1 = vmul.f32 %v3803_v10, %v2329_v40 }
0x1449   :  { %v2318_v3 = vadd.f32 1.0, %v3805_v26 }
0x144b   :  { %3806 = vrcp.f32 %v2318_v3 }
0x1458   :  { %v3807_v27 = vpop.eup %3806 }
0x1459   :  { %v2332_v59 = vmul.f32 %v3807_v27, %v2329_v40 }
0x14a8   :  { %v2335_v12 = vpop.permute.xlu0 %2334 }
0x14a9   :  { %v2337_v14 = vmul.f32 %v3803_v10, %v2335_v12 }
0x14ab   :  { %2339 = vrot.lane.b32.xlu0 %v2337_v14, %s3886_s2 }
0x151d   :  { %v2340_v4 = vpop.permute.xlu0 %2339 }
0x151e   :  { %v2342_v60 = vadd.f32 %v2340_v4, %v2331_v1  ;;  %v2343_v47 = vadd.f32 %v2340_v4, %v2332_v59 }
0x1520   :  { %3808 = vtanh.f32 %v2342_v60 }
0x1521   :  { %3810 = vtanh.f32 %v2343_v47 }
0x1522   :  { %3812 = vpow2.f32 %v3159_v44 }
0x152d   :  { %v3809_v33 = vpop.eup %3808 }
0x152e   :  { %v3811_v5 = vpop.eup %3810  ;;  %2348 = vrot.lane.b32.xlu1 %v3809_v33, %s3886_s2 }
0x152f   :  { %2350 = vrot.lane.b32.xlu0 %v3811_v5, %s3886_s2  ;;  %v3813_v46 = vpop.eup %3812 }
0x1530   :  { %v2319_v48 = vadd.f32 1.0, %v3813_v46 }
0x1532   :  { %3814 = vrcp.f32 %v2319_v48  ;;  %v2902_v48 = vld [vmem:[%s5441_s4 + $0x50] sm:$0xff] }
0x153f   :  { %v3815_v41 = vpop.eup %3814 }
0x15a0   :  { %v2349_v63 = vpop.permute.xlu1 %2348 }
0x15a1   :  { %v2351_v28 = vpop.permute.xlu0 %2350 }
0x15a2   :  { %v2356_v36 = vmul.f32 %v3815_v41, %v2351_v28  ;;  %v2352_v43 = vsel %vm27_vm0, %v2349_v63, %v2351_v28  ;;  %v2898_v63 = vld [vmem:[%s5441_s4 + $0x30] sm:$0xff]  ;;  %v2897_v41 = vld [vmem:[%s5441_s4 + $0x28] sm:$0xff]  ;;  %v2896_v28 = vld [vmem:[%s5441_s4 + $0x20] sm:$0xff] }
0x15a3   :  { %v2355_v10 = vmul.f32 %v3807_v27, %v2352_v43  ;;  %v2894_v43 = vld [vmem:[%s5441_s4 + $0x10] sm:$0xff] }
0x15a4   :  { %2361 = vrot.lane.b32.xlu0 %v2356_v36, %s3888_s13  ;;  %v2895_v36 = vld [vmem:[%s5441_s4 + $0x18] sm:$0xff] }
0x15a5   :  { %2359 = vrot.lane.b32.xlu1 %v2355_v10, %s3888_s13  ;;  %v2893_v10 = vld [vmem:[%s5441_s4 + $0x8] sm:$0xff] }
0x15a8   :  { %2370 = vrot.lane.b32.xlu0 %v2343_v47, %s3887_s12  ;;  %v2903_v47 = vld [vmem:[%s5441_s4 + $0x58] sm:$0xff] }
0x15a9   :  { %2368 = vrot.lane.b32.xlu1 %v2342_v60, %s3887_s12 }
0x1616   :  { %v2362_v12 = vpop.permute.xlu0 %2361 }
0x1617   :  { %v2360_v14 = vpop.permute.xlu1 %2359 }
0x1618   :  { %v2363_v16 = vsel %vm807_vm3, %v2360_v14, %v2362_v12  ;;  %v2892_v12 = vld [vmem:[%s5441_s4] sm:$0xff]  ;;  %v2885_v14 = vld [vmem:[#allocation3 + $0x8] sm:$0xff] }
0x1619   :  { %2365 = vst.msk [vmem:[#allocation4] sm:$0xff] %vm27_vm0, %v2363_v16  ;;  %2376 = vst.msk [vmem:[#allocation3 + $0x28] sm:$0xff] %vm27_vm0, %v2363_v16  ;;  %v2886_v16 = vld [vmem:[#allocation3 + $0x10] sm:$0xff] }
0x161a   :  { %v2371_v21 = vpop.permute.xlu0 %2370 }
0x161b   :  { %v2369_v25 = vpop.permute.xlu1 %2368 }
0x161c   :  { %v2372_v26 = vsel %vm67_vm1, %v2369_v25, %v2371_v21  ;;  %v2887_v21 = vld [vmem:[#allocation3 + $0x18] sm:$0xff]  ;;  %v2888_v25 = vld [vmem:[#allocation3 + $0x20] sm:$0xff] }
0x161d   :  { %2374 = vst.msk [vmem:[#allocation5] sm:$0xff] %vm27_vm0, %v2372_v26 }
0x1620   :  { %v2377_v3 = vld [vmem:[#allocation4] sm:$0xff]  ;;  %v2889_v26 = vld [vmem:[#allocation3 + $0x28] sm:$0xff] }
0x1621   :  { %3160 = vmatmul.mubr.msk.f32.vlgmr.msra.gmra.mxu1 %vm27_vm0, %v2377_v3  ;;  %3610 = vmatmul.mubr.msk.f32.vlgmr.msra.gmra.mxu0 %vm27_vm0, %v2377_v3 }
0x1622   :  { %2683 = vmatpush1.msra.mxu1 %v4984_v29  ;;  %3613 = vmatpush3.msra.mxu0 %v5175_v51 }
0x1623   :  { %2684 = vmatprep.subr.mxu1 %v4989_v31  ;;  %3614 = vmatprep.subr.mxu0 %v5459_v62 }
0x1624   :  { %v2378_v27 = vld [vmem:[#allocation5] sm:$0xff]  ;;  %2685 = vmatpush1.msra.mxu1 %v4995_v32  ;;  %3615 = vmatpush3.msra.mxu0 %v5180_v52 }
0x1625   :  { %2585 = vrot.lane.b32.xlu0 %v2378_v27, %s3886_s2  ;;  %2686 = vmatprep.subr.mxu1 %v5001_v38 }
0x1626   :  { %2687 = vmatpush1.msra.mxu1 %v5007_v39  ;;  %3616 = vmatprep.subr.mxu0 %v5459_v62 }
0x1627   :  { %2688 = vmatprep.subr.mxu1 %v5013_v7  ;;  %3617 = vmatpush3.msra.mxu0 %v5187_v53 }
0x1628   :  { %2689 = vmatpush1.msra.mxu1 %v5020_v11  ;;  %3618 = vmatprep.subr.mxu0 %v5459_v62 }
0x1629   :  { %2690 = vmatprep.subr.mxu1 %v5027_v13  ;;  %3619 = vmatpush3.msra.mxu0 %v5194_v18 }
0x162a   :  { %2691 = vmatpush1.msra.mxu1 %v5033_v9  ;;  %3620 = vmatprep.subr.mxu0 %v5459_v62 }
0x162b   :  { %2692 = vmatprep.subr.mxu1 %v5039_v2  ;;  %3621 = vmatpush3.msra.mxu0 %v5203_v42 }
0x162c   :  { %2693 = vmatpush1.msra.mxu1 %v5045_v17  ;;  %3622 = vmatprep.subr.mxu0 %v5459_v62 }
0x162d   :  { %2694 = vmatprep.subr.mxu1 %v5051_v15  ;;  %3623 = vmatpush3.msra.mxu0 %v5210_v45 }
0x162e   :  { %2695 = vmatpush1.msra.mxu1 %v5057_v58  ;;  %3624 = vmatprep.subr.mxu0 %v5459_v62 }
0x162f   :  { %2696 = vmatprep.subr.mxu1 %v5066_v6  ;;  %3625 = vmatpush3.msra.mxu0 %v5217_v30 }
0x1630   :  { %2697 = vmatpush1.msra.mxu1 %v5072_v8  ;;  %3626 = vmatprep.subr.mxu0 %v5459_v62 }
0x1631   :  { %2698 = vmatprep.subr.mxu1 %v5078_v20  ;;  %3627 = vmatpush3.msra.mxu0 %v5226_v49  ;;  %v2884_v49 = vld [vmem:[#allocation3] sm:$0xff] }
0x1632   :  { %2699 = vmatpush1.msra.mxu1 %v5084_v23  ;;  %3628 = vmatprep.subr.mxu0 %v5459_v62 }
0x1633   :  { %2700 = vmatprep.subr.mxu1 %v5090_v24  ;;  %3629 = vmatpush3.msra.mxu0 %v5233_v50  ;;  %v2901_v50 = vld [vmem:[%s5441_s4 + $0x48] sm:$0xff] }
0x1634   :  { %2701 = vmatpush1.msra.mxu1 %v5096_v35  ;;  %3630 = vmatprep.subr.mxu0 %v5459_v62 }
0x1635   :  { %2702 = vmatprep.subr.mxu1 %v5102_v37  ;;  %3631 = vmatpush3.msra.mxu0 %v5240_v55 }
0x1636   :  { %2703 = vmatpush1.msra.mxu1 %v5108_v61  ;;  %3632 = vmatprep.subr.mxu0 %v5459_v62 }
0x1637   :  { %2704 = vmatprep.subr.mxu1 %v5113_v34  ;;  %3633 = vmatpush3.msra.mxu0 %v5247_v56  ;;  %v2900_v56 = vld [vmem:[%s5441_s4 + $0x40] sm:$0xff] }
0x1638   :  { %2705 = vmatpush1.msra.mxu1 %v5118_v0  ;;  %3634 = vmatprep.subr.mxu0 %v5459_v62 }
0x1639   :  { %2738 = vmatprep.mubr.f32.mxu1 %v5459_v62  ;;  %3635 = vmatpush3.msra.mxu0 %v5252_v57  ;;  %v2899_v57 = vld [vmem:[%s5441_s4 + $0x38] sm:$0xff] }
0x163a   :  { %3636 = vmatprep.mubr.msk.f32.mxu0 %vm3885_vm2, %v5459_v62  ;;  %3639 = vmatprep.subr.mxu1 %v2903_v47 }
0x1697   :  { %v2586_v24 = vpop.permute.xlu0 %2585 }
0x16e1   :  { %v2558_v29 = vpop.f32.mrf.mxu0  ;;  %v2487_v39 = vpop.f32.mrf.mxu1 }
0x16e2   :  { %v2564_v31 = vadd.f32 %v2558_v29, %v5467_v54  ;;  %v2562_v7 = vadd.f32 %v2487_v39, %v5468_v22 }
0x16e3   :  { %v3611_v32 = vpop.f32.mrf.mxu0  ;;  %v2489_v62 = vpop.f32.mrf.mxu1 }
0x16e4   :  { %3816 = vtanh.f32 %v2564_v31  ;;  %v3162_v11 = vmul.f32 -1.442695, %v2562_v7  ;;  %v2563_v58 = vadd.f32 %v2489_v62, %v5469_v19  ;;  %v3164_v59 = vmul.f32 -1.442695, %v2564_v31  ;;  %v5389_v7 = vld [vmem:[%s5442_s5] ss:$0 sm:$0xff] }
0x16e6   :  { %3818 = vpow2.f32 %v3162_v11  ;;  %v3163_v6 = vmul.f32 -1.442695, %v2563_v58 }
0x16f1   :  { %v3817_v38 = vpop.eup %3816 }
0x16f2   :  { %2591 = vrot.lane.b32.xlu1 %v3817_v38, %s3886_s2 }
0x16f3   :  { %v3819_v13 = vpop.eup %3818 }
0x16f4   :  { %v2574_v9 = vadd.f32 1.0, %v3819_v13 }
0x16f6   :  { %3820 = vrcp.f32 %v2574_v9 }
0x16f7   :  { %3822 = vpow2.f32 %v3163_v6 }
0x1703   :  { %v3821_v2 = vpop.eup %3820 }
0x1704   :  { %v3823_v8 = vpop.eup %3822  ;;  %v2588_v35 = vmul.f32 %v3821_v2, %v2586_v24 }
0x1705   :  { %v2575_v20 = vadd.f32 1.0, %v3823_v8 }
0x1707   :  { %3824 = vrcp.f32 %v2575_v20 }
0x1714   :  { %v3825_v23 = vpop.eup %3824 }
0x1715   :  { %v2589_v37 = vmul.f32 %v3825_v23, %v2586_v24 }
0x1764   :  { %v2592_v17 = vpop.permute.xlu1 %2591 }
0x1765   :  { %v2594_v15 = vmul.f32 %v3821_v2, %v2592_v17 }
0x1767   :  { %2596 = vrot.lane.b32.xlu1 %v2594_v15, %s3886_s2 }
0x17d9   :  { %v2597_v61 = vpop.permute.xlu1 %2596 }
0x17da   :  { %v2599_v34 = vadd.f32 %v2597_v61, %v2588_v35  ;;  %v2600_v0 = vadd.f32 %v2597_v61, %v2589_v37 }
0x17dc   :  { %3826 = vtanh.f32 %v2599_v34 }
0x17dd   :  { %3828 = vtanh.f32 %v2600_v0 }
0x17de   :  { %3830 = vpow2.f32 %v3164_v59 }
0x17e9   :  { %v3827_v40 = vpop.eup %3826 }
0x17ea   :  { %v3829_v1 = vpop.eup %3828  ;;  %2605 = vrot.lane.b32.xlu0 %v3827_v40, %s3886_s2 }
0x17eb   :  { %2607 = vrot.lane.b32.xlu1 %v3829_v1, %s3886_s2  ;;  %v3831_v4 = vpop.eup %3830 }
0x17ec   :  { %v2576_v60 = vadd.f32 1.0, %v3831_v4 }
0x17ee   :  { %3832 = vrcp.f32 %v2576_v60 }
0x17fb   :  { %v3833_v52 = vpop.eup %3832 }
0x185c   :  { %v2606_v51 = vpop.permute.xlu0 %2605 }
0x185d   :  { %v2608_v53 = vpop.permute.xlu1 %2607 }
0x185e   :  { %v2613_v33 = vmul.f32 %v3833_v52, %v2608_v53  ;;  %v2609_v18 = vsel %vm27_vm0, %v2606_v51, %v2608_v53 }
0x185f   :  { %v2612_v5 = vmul.f32 %v3825_v23, %v2609_v18 }
0x1860   :  { %2618 = vrot.lane.b32.xlu1 %v2613_v33, %s3888_s13 }
0x1861   :  { %2616 = vrot.lane.b32.xlu0 %v2612_v5, %s3888_s13 }
0x1865   :  { %2625 = vrot.lane.b32.xlu0 %v2600_v0, %s3887_s12 }
0x18d2   :  { %v2619_v42 = vpop.permute.xlu1 %2618 }
0x18d3   :  { %v2617_v45 = vpop.permute.xlu0 %2616 }
0x18d4   :  { %v2620_v30 = vsel %vm807_vm3, %v2617_v45, %v2619_v42 }
0x18d5   :  { %2623 = vst.msk [vmem:[#allocation4] sm:$0xff] %vm2622_vm4, %v2620_v30 }
0x18d6   :  { %2629 = vst.msk [vmem:[#allocation3 + $0x30] sm:$0xff] %vm27_vm0, %v2620_v30 }
0x18d7   :  { %v2626_v44 = vpop.permute.xlu0 %2625 }
0x18d8   :  { %2628 = vst.msk [vmem:[#allocation5] sm:$0xff] %vm2622_vm4, %v2626_v44 }
0x18dc   :  { %v2630_v46 = vld [vmem:[#allocation4] sm:$0xff] }
0x18dd   :  { %3165 = vmatmul.mubr.msk.f32.vlgmr.msra.gmra.mxu1 %vm27_vm0, %v2630_v46  ;;  %3637 = vmatmul.mubr.msk.f32.vlgmr.msra.gmra.mxu0 %vm27_vm0, %v2630_v46  ;;  %v2890_v3 = vld [vmem:[#allocation3 + $0x30] sm:$0xff] }
0x18de   :  { %3640 = vmatpush3.msra.mxu1 %v2903_v47  ;;  %3663 = vmatprep.mubr.msk.f32.mxu1 %vm27_vm0, %v2884_v49 }
0x18df   :  { %3641 = vmatprep.subr.mxu1 %v2902_v48  ;;  %v2631_v55 = vld [vmem:[#allocation5] sm:$0xff] }
0x18e0   :  { %3642 = vmatpush3.msra.mxu1 %v2902_v48  ;;  %2838 = vrot.lane.b32.xlu0 %v2631_v55, %s3886_s2 }
0x18e1   :  { %3643 = vmatprep.subr.mxu1 %v2901_v50 }
0x18e2   :  { %3644 = vmatpush3.msra.mxu1 %v2901_v50 }
0x18e3   :  { %3645 = vmatprep.subr.mxu1 %v2900_v56 }
0x18e4   :  { %3646 = vmatpush3.msra.mxu1 %v2900_v56 }
0x18e5   :  { %3647 = vmatprep.subr.mxu1 %v2899_v57 }
0x18e6   :  { %3648 = vmatpush3.msra.mxu1 %v2899_v57 }
0x18e7   :  { %3649 = vmatprep.subr.mxu1 %v2898_v63 }
0x18e8   :  { %3650 = vmatpush3.msra.mxu1 %v2898_v63 }
0x18e9   :  { %3651 = vmatprep.subr.mxu1 %v2897_v41 }
0x18ea   :  { %3652 = vmatpush3.msra.mxu1 %v2897_v41 }
0x18eb   :  { %3653 = vmatprep.subr.mxu1 %v2896_v28 }
0x18ec   :  { %3654 = vmatpush3.msra.mxu1 %v2896_v28 }
0x18ed   :  { %3655 = vmatprep.subr.mxu1 %v2895_v36 }
0x18ee   :  { %3656 = vmatpush3.msra.mxu1 %v2895_v36 }
0x18ef   :  { %3657 = vmatprep.subr.mxu1 %v2894_v43 }
0x18f0   :  { %3658 = vmatpush3.msra.mxu1 %v2894_v43 }
0x18f1   :  { %3659 = vmatprep.subr.mxu1 %v2893_v10 }
0x18f2   :  { %3660 = vmatpush3.msra.mxu1 %v2893_v10 }
0x18f3   :  { %3661 = vmatprep.subr.mxu1 %v2892_v12 }
0x18f4   :  { %3662 = vmatpush3.msra.mxu1 %v2892_v12 }
0x18f5   :  { %3664 = vmatmul.mubr.msk.f32.vlgmr.msra.gmra.mxu1 %vm27_vm0, %v2885_v14 }
0x18f6   :  { %3666 = vmatprep.mubr.msk.f32.mxu1 %vm27_vm0, %v2886_v16 }
0x18f9   :  { %3667 = vmatmul.mubr.msk.f32.gmra.mxu1 %vm27_vm0, %v2887_v21 }
0x18fa   :  { %3669 = vmatprep.mubr.msk.f32.mxu1 %vm27_vm0, %v2888_v25 }
0x18fd   :  { %3670 = vmatmul.mubr.msk.f32.gmra.mxu1 %vm27_vm0, %v2889_v26 }
0x18fe   :  { %3672 = vmatprep.mubr.msk.f32.mxu1 %vm27_vm0, %v2890_v3 }
0x199d   :  { %v2811_v27 = vpop.f32.mrf.mxu0  ;;  %v2740_v38 = vpop.f32.mrf.mxu1 }
0x199e   :  { %v5380_v29 = vadd.f32 %v2811_v27, %v5467_v54  ;;  %v2815_v48 = vadd.f32 %v2740_v38, %v5468_v22  ;;  %v2839_v22 = vpop.permute.xlu0 %2838 }
0x199f   :  { %v3638_v31 = vpop.f32.mrf.mxu0  ;;  %v5384_v39 = vpop.f32.mrf.mxu1 }
0x19a0   :  { %3834 = vtanh.f32 %v5380_v29  ;;  %v3167_v49 = vmul.f32 -1.442695, %v2815_v48  ;;  %v2816_v41 = vadd.f32 %v5384_v39, %v5469_v19  ;;  %v3169_v19 = vmul.f32 -1.442695, %v5380_v29 }
0x19a2   :  { %v3168_v28 = vmul.f32 -1.442695, %v2816_v41 }
0x19ad   :  { %v3835_v32 = vpop.eup %3834 }
0x19ae   :  { %2844 = vrot.lane.b32.xlu1 %v3835_v32, %s3886_s2 }
0x19b5   :  { %v3665_v11 = vpop.f32.mrf.mxu1 }
0x19b6   :  { %v3007_v13 = vadd.f32 %v3665_v11, %v5389_v7 }
0x19b7   :  { %v3001_v9 = vpop.f32.mrf.mxu1 }
0x19b8   :  { %v3180_v54 = vmul.f32 -1.442695, %v3007_v13  ;;  %v3002_v2 = vadd.f32 %v5389_v7, %v3001_v9 }
0x19b9   :  { %v3668_v17 = vpop.f32.mrf.mxu1 }
0x19ba   :  { %3836 = vpow2.f32 %v3180_v54  ;;  %v3179_v15 = vmul.f32 -1.442695, %v3002_v2  ;;  %v3017_v62 = vadd.f32 %v3668_v17, %v5389_v7 }
0x19bb   :  { %v3011_v58 = vpop.f32.mrf.mxu1 }
0x19bc   :  { %3838 = vpow2.f32 %v3179_v15  ;;  %v3182_v6 = vmul.f32 -1.442695, %v3017_v62  ;;  %v3012_v8 = vadd.f32 %v5389_v7, %v3011_v58 }
0x19bd   :  { %v3671_v20 = vpop.f32.mrf.mxu1 }
0x19be   :  { %3840 = vpow2.f32 %v3182_v6  ;;  %v3181_v23 = vmul.f32 -1.442695, %v3012_v8  ;;  %v3027_v24 = vadd.f32 %v3671_v20, %v5389_v7 }
0x19bf   :  { %v3021_v35 = vpop.f32.mrf.mxu1 }
0x19c0   :  { %3842 = vpow2.f32 %v3181_v23  ;;  %v3184_v37 = vmul.f32 -1.442695, %v3027_v24  ;;  %v3022_v61 = vadd.f32 %v5389_v7, %v3021_v35 }
0x19c2   :  { %3844 = vpow2.f32 %v3184_v37  ;;  %v3183_v34 = vmul.f32 -1.442695, %v3022_v61 }
0x19c4   :  { %3846 = vpow2.f32 %v3183_v34 }
0x19c7   :  { %v3837_v0 = vpop.eup %3836 }
0x19c8   :  { %v3065_v40 = vadd.f32 1.0, %v3837_v0 }
0x19c9   :  { %v3839_v1 = vpop.eup %3838 }
0x19ca   :  { %3848 = vrcp.f32 %v3065_v40  ;;  %v3064_v59 = vadd.f32 1.0, %v3839_v1 }
0x19cb   :  { %v3841_v4 = vpop.eup %3840 }
0x19cc   :  { %3850 = vrcp.f32 %v3064_v59  ;;  %v3067_v60 = vadd.f32 1.0, %v3841_v4 }
0x19cd   :  { %v3843_v47 = vpop.eup %3842 }
0x19ce   :  { %3852 = vrcp.f32 %v3067_v60  ;;  %v3066_v51 = vadd.f32 1.0, %v3843_v47 }
0x19cf   :  { %v3845_v52 = vpop.eup %3844 }
0x19d0   :  { %3854 = vrcp.f32 %v3066_v51  ;;  %v3069_v53 = vadd.f32 1.0, %v3845_v52 }
0x19d1   :  { %v3847_v33 = vpop.eup %3846 }
0x19d2   :  { %3856 = vrcp.f32 %v3069_v53  ;;  %v3068_v18 = vadd.f32 1.0, %v3847_v33 }
0x19d4   :  { %3858 = vrcp.f32 %v3068_v18 }
0x19d5   :  { %3860 = vpow2.f32 %v3167_v49 }
0x19d7   :  { %v3849_v5 = vpop.eup %3848 }
0x19d8   :  { %3089 = vst [vmem:[%s5443_s6 + $0x8] sm:$0xff] %v3849_v5 }
0x19d9   :  { %v3851_v42 = vpop.eup %3850 }
0x19da   :  { %3088 = vst [vmem:[%s5443_s6] sm:$0xff] %v3851_v42 }
0x19db   :  { %v3853_v45 = vpop.eup %3852 }
0x19dc   :  { %3091 = vst [vmem:[%s5443_s6 + $0x18] sm:$0xff] %v3853_v45 }
0x19dd   :  { %v3855_v30 = vpop.eup %3854 }
0x19de   :  { %3090 = vst [vmem:[%s5443_s6 + $0x10] sm:$0xff] %v3855_v30 }
0x19df   :  { %v3857_v44 = vpop.eup %3856 }
0x19e0   :  { %3093 = vst [vmem:[%s5443_s6 + $0x28] sm:$0xff] %v3857_v44 }
0x19e1   :  { %v3859_v46 = vpop.eup %3858 }
0x19e2   :  { %3092 = vst [vmem:[%s5443_s6 + $0x20] sm:$0xff] %v3859_v46  ;;  %v3861_v50 = vpop.eup %3860 }
0x19e3   :  { %v2827_v55 = vadd.f32 1.0, %v3861_v50 }
0x19e5   :  { %3862 = vrcp.f32 %v2827_v55 }
0x19e6   :  { %3864 = vpow2.f32 %v3168_v28 }
0x19f2   :  { %v3863_v56 = vpop.eup %3862 }
0x19f3   :  { %v3865_v36 = vpop.eup %3864  ;;  %v2841_v12 = vmul.f32 %v3863_v56, %v2839_v22 }
0x19f4   :  { %v2828_v43 = vadd.f32 1.0, %v3865_v36 }
0x19f6   :  { %3866 = vrcp.f32 %v2828_v43 }
0x1a03   :  { %v3867_v10 = vpop.eup %3866 }
0x1a04   :  { %v2842_v14 = vmul.f32 %v3867_v10, %v2839_v22 }
0x1a20   :  { %v2845_v57 = vpop.permute.xlu1 %2844 }
0x1a21   :  { %v2847_v63 = vmul.f32 %v3863_v56, %v2845_v57 }
0x1a23   :  { %2849 = vrot.lane.b32.xlu1 %v2847_v63, %s3886_s2 }
0x1a95   :  { %v2850_v16 = vpop.permute.xlu1 %2849 }
0x1a96   :  { %v2852_v21 = vadd.f32 %v2850_v16, %v2841_v12  ;;  %v2853_v25 = vadd.f32 %v2850_v16, %v2842_v14 }
0x1a98   :  { %3868 = vtanh.f32 %v2852_v21 }
0x1a99   :  { %3870 = vtanh.f32 %v2853_v25 }
0x1a9a   :  { %3872 = vpow2.f32 %v3169_v19 }
0x1aa5   :  { %v3869_v26 = vpop.eup %3868 }
0x1aa6   :  { %v3871_v3 = vpop.eup %3870  ;;  %2858 = vrot.lane.b32.xlu0 %v3869_v26, %s3886_s2 }
0x1aa7   :  { %2860 = vrot.lane.b32.xlu1 %v3871_v3, %s3886_s2  ;;  %v3873_v27 = vpop.eup %3872 }
0x1aa8   :  { %v2829_v31 = vadd.f32 1.0, %v3873_v27 }
0x1aaa   :  { %3874 = vrcp.f32 %v2829_v31 }
0x1ab7   :  { %v3875_v38 = vpop.eup %3874 }
0x1b18   :  { %v2859_v32 = vpop.permute.xlu0 %2858 }
0x1b19   :  { %v2861_v39 = vpop.permute.xlu1 %2860 }
0x1b1a   :  { %v2866_v11 = vmul.f32 %v3875_v38, %v2861_v39  ;;  %v2862_v13 = vsel %vm27_vm0, %v2859_v32, %v2861_v39 }
0x1b1b   :  { %v2865_v9 = vmul.f32 %v3867_v10, %v2862_v13 }
0x1b1c   :  { %2868 = vrot.lane.b32.xlu0 %v2866_v11, %s3888_s13 }
0x1b1d   :  { %2879 = vrot.lane.b32.xlu1 %v2865_v9, %s3888_s13 }
0x1b20   :  { %2874 = vrot.lane.b32.xlu0 %v2853_v25, %s3887_s12 }
0x1b8e   :  { %v2869_v54 = vpop.permute.xlu0 %2868 }
0x1b8f   :  { %2872 = vst.msk [vmem:[#allocation4] sm:$0xff] %vm2871_vm5, %v2869_v54  ;;  %v2880_v29 = vpop.permute.xlu1 %2879 }
0x1b90   :  { %v2881_v2 = vsel %vm807_vm3, %v2880_v29, %v2869_v54 }
0x1b91   :  { %2883 = vst.msk [vmem:[#allocation3 + $0x38] sm:$0xff] %vm27_vm0, %v2881_v2 }
0x1b92   :  { %v2875_v17 = vpop.permute.xlu0 %2874 }
0x1b93   :  { %2877 = vst.msk [vmem:[#allocation5] sm:$0xff] %vm2871_vm5, %v2875_v17 }
0x1b98   :  { %v2891_v15 = vld [vmem:[#allocation3 + $0x38] sm:$0xff] }
0x1b99   :  { %3673 = vmatmul.mubr.msk.f32.gmra.mxu1 %vm27_vm0, %v2891_v15 }
0x1c59   :  { %v3674_v62 = vpop.f32.mrf.mxu1 }
0x1c5a   :  { %v3037_v58 = vadd.f32 %v3674_v62, %v5389_v7 }
0x1c5b   :  { %v3031_v6 = vpop.f32.mrf.mxu1 }
0x1c5c   :  { %v3186_v8 = vmul.f32 -1.442695, %v3037_v58  ;;  %v3032_v20 = vadd.f32 %v5389_v7, %v3031_v6 }
0x1c5e   :  { %3876 = vpow2.f32 %v3186_v8  ;;  %v3185_v23 = vmul.f32 -1.442695, %v3032_v20 }
0x1c60   :  { %3878 = vpow2.f32 %v3185_v23 }
0x1c6b   :  { %v3877_v24 = vpop.eup %3876 }
0x1c6c   :  { %v3071_v35 = vadd.f32 1.0, %v3877_v24 }
0x1c6d   :  { %v3879_v37 = vpop.eup %3878 }
0x1c6e   :  { %3880 = vrcp.f32 %v3071_v35  ;;  %v3070_v61 = vadd.f32 1.0, %v3879_v37 }
0x1c70   :  { %3882 = vrcp.f32 %v3070_v61 }
0x1c7b   :  { %v3881_v34 = vpop.eup %3880 }
0x1c7c   :  { %3095 = vst [vmem:[%s5443_s6 + $0x38] sm:$0xff] %v3881_v34 }
0x1c7d   :  { %v3883_v0 = vpop.eup %3882 }
0x1c7e   :  { %3094 = vst [vmem:[%s5443_s6 + $0x30] sm:$0xff] %v3883_v0 }

</bundles_post_ra>
